<compile_context>
chip_gen: v5e
topology: v5e:2x2
jax: 0.10.0
libtpu: 0.0.40
codegen_flags: <defaults>
</compile_context>

<pallas_src>
import functools

import numpy as np
import jax
import jax.numpy as jnp
from jax.experimental import pallas as pl
from jax.experimental.pallas import tpu as pltpu

B = 2        # batch
T = 8        # sequence length
D_IN = 10    # raw decoder_inputs feature dim (nn.Linear(10, hidden//2))
ENC_IN = 10  # encoder input feature dim
H = 32       # decoder.hidden_dim (== encoder hidden dim); hidden//2 = 16
OUT = 3      # decoder output dim (head requires exactly 3 channels)
A_DIM = 6    # atten_features channel count


def _leaky(x):
    return jnp.where(x >= 0, x, 0.01 * x)


def _gru_cell(gi, gh, h):
    # PyTorch GRU semantics: n-gate hidden bias stays inside the r-multiplied
    # term (gh already contains b_hh), r/z gates are plain sigmoids.
    r = jax.nn.sigmoid(gi[:, :H] + gh[:, :H])
    z = jax.nn.sigmoid(gi[:, H:2 * H] + gh[:, H:2 * H])
    n = jnp.tanh(gi[:, 2 * H:] + r * gh[:, 2 * H:])
    return (1.0 - z) * n + z * h


# --------------------------------------------------------------------------
# One fused kernel: encoder GRU -> MLP on decoder inputs -> decoder GRU ->
# batched dot-attention + combine + output projection -> head (grouped conv
# with final linear folded in). Everything lives in VMEM; one store at the end.
# --------------------------------------------------------------------------
def seq2seq_kernel(data_ref, w96_ref, w32_ref, w3_ref, out_ref,
                   *, use_dec_inputs, use_atten):
    f32 = jnp.float32
    bf16 = jnp.bfloat16

    data = data_ref[...]                                   # (B, T, 26), one load
    x_flat = data[..., :ENC_IN].reshape(B * T, ENC_IN)     # encoder inputs

    # ---- weight slab slices (static offsets, hoisted out of the loops) ----
    enc_wih = w96_ref[pl.ds(0, ENC_IN), :]                 # (10, 96)
    enc_whh = w96_ref[pl.ds(16, H), :].astype(bf16)        # (32, 96) bf16 recurrence
    enc_bih = w96_ref[pl.ds(48, 1), :]                     # (1, 96)
    enc_bhh = w96_ref[pl.ds(56, 1), :]
    dec_wih = w96_ref[pl.ds(64, H), :]
    dec_whh = w96_ref[pl.ds(96, H), :].astype(bf16)
    dec_bih = w96_ref[pl.ds(128, 1), :]
    dec_bhh = w96_ref[pl.ds(136, 1), :]

    # ---------------- encoder GRU: x-side matmul hoisted out of the loop ----
    gi_enc = (jnp.dot(x_flat, enc_wih, preferred_element_type=f32)
              + enc_bih).reshape(B, T, 3 * H)              # (B, T, 96)

    h = jnp.zeros((B, H), f32)
    enc_hs = []
    for t in range(T):                                     # static unroll; h in vregs
        gh = jnp.dot(h.astype(bf16), enc_whh, preferred_element_type=f32) + enc_bhh
        h = _gru_cell(gi_enc[:, t, :], gh, h)
        enc_hs.append(h)
    enc_out = jnp.concatenate([hh[:, None, :] for hh in enc_hs], axis=1)  # (B,T,H)
    enc_hidden = h                                         # (B, H)

    # ---------------- decoder inputs: Linear->LeakyReLU->Linear->LeakyReLU --
    if use_dec_inputs:
        w1 = w32_ref[pl.ds(0, D_IN), :]                    # (10, 32)  (cols 16: zero)
        b1 = w32_ref[pl.ds(16, 1), :]
        w2 = w32_ref[pl.ds(24, H), :]                      # (32, 32)  (rows 16: zero)
        b2 = w32_ref[pl.ds(56, 1), :]
        d = data[..., ENC_IN:ENC_IN + D_IN].reshape(B * T, D_IN)
        d = _leaky(jnp.dot(d, w1, preferred_element_type=f32) + b1)
        d = _leaky(jnp.dot(d, w2, preferred_element_type=f32) + b2)
        gi_dec = (jnp.dot(d, dec_wih, preferred_element_type=f32)
                  + dec_bih).reshape(B, T, 3 * H)
    else:
        # decoder_inputs = zeros_like(encoder_outputs)  =>  gi = b_ih
        gi_dec = jnp.broadcast_to(dec_bih.reshape(1, 1, 3 * H), (B, T, 3 * H))

    # ---------------- decoder GRU ------------------------------------------
    h = enc_hidden
    dec_hs = []
    for t in range(T):
        gh = jnp.dot(h.astype(bf16), dec_whh, preferred_element_type=f32) + dec_bhh
        h = _gru_cell(gi_dec[:, t, :], gh, h)
        dec_hs.append(h)
    h_all = jnp.concatenate([hh[:, None, :] for hh in dec_hs], axis=1)    # (B,T,H)

    # ---------------- attention for all decoder steps at once (MXU dots) ----
    scores = jnp.einsum('bqh,bkh->bqk', h_all, enc_out,
                        preferred_element_type=f32)        # (B, T, T)
    m = jnp.max(scores, axis=-1, keepdims=True)
    e = jnp.exp(scores - m)
    attn = e * pl.reciprocal(jnp.sum(e, axis=-1, keepdims=True), approx=True)
    ctx = jnp.einsum('bqk,bkh->bqh', attn, enc_out,
                     preferred_element_type=f32)           # (B, T, H)

    # combine (split W_c -> no lane concat) + tanh output projection
    wc_h = w32_ref[pl.ds(64, H), :]
    wc_c = w32_ref[pl.ds(96, H), :]
    bc = w32_ref[pl.ds(128, 1), :]
    wo = w3_ref[pl.ds(0, H), :]                            # (32, 3)
    bo = w3_ref[pl.ds(32, 1), :]
    h_flat = h_all.reshape(B * T, H)
    c_flat = ctx.reshape(B * T, H)
    comb = jnp.tanh(jnp.dot(h_flat, wc_h, preferred_element_type=f32)
                    + jnp.dot(c_flat, wc_c, preferred_element_type=f32) + bc)
    dec_out = jnp.tanh(jnp.dot(comb, wo, preferred_element_type=f32) + bo)  # (B*T,3)

    # ---------------- head --------------------------------------------------
    if use_atten:
        # Grouped Conv1d(9,3,3,groups=3,padding=1) + final Linear(3,3), with
        # the channel interleave and the final linear pre-folded into the
        # per-tap weights on the host.  out[t] = P0[t-1] + P1[t] + P2[t+1] + b.
        a_flat = data[..., ENC_IN + D_IN:ENC_IN + D_IN + A_DIM].reshape(B * T, A_DIM)
        wo_f = w3_ref[pl.ds(40, 9), :]                     # 3 taps of (3, 3)
        wa_f = w3_ref[pl.ds(56, 18), :]                    # 3 taps of (6, 3)
        b_f = w3_ref[pl.ds(80, 1), :]                      # fused bias (1, 3)
        taps = []
        for k in range(3):
            pk = (jnp.dot(dec_out, wo_f[3 * k:3 * k + 3, :], preferred_element_type=f32)
                  + jnp.dot(a_flat, wa_f[6 * k:6 * k + 6, :], preferred_element_type=f32))
            taps.append(pk.reshape(B, T, OUT))
        zrow = jnp.zeros((B, 1, OUT), f32)
        y = (jnp.concatenate([zrow, taps[0][:, :T - 1, :]], axis=1)   # P0 shifted +1
             + taps[1]
             + jnp.concatenate([taps[2][:, 1:, :], zrow], axis=1)     # P2 shifted -1
             + b_f)
        out_ref[...] = y                                   # single store
    else:
        flw = w3_ref[pl.ds(88, 3), :]
        flb = w3_ref[pl.ds(96, 1), :]
        y = jnp.dot(dec_out, flw, preferred_element_type=f32) + flb
        out_ref[...] = y.reshape(B, T, OUT)


# --------------------------------------------------------------------------
# Wrapper: host-side weight packing (4 DMAs total) + one pallas_call
# --------------------------------------------------------------------------
def seq2seq_forward(p, input_vars, decoder_inputs=None, atten_features=None):
    use_dec = decoder_inputs is not None
    use_att = atten_features is not None
    f32 = jnp.float32
    dec_in = (decoder_inputs if use_dec else jnp.zeros((B, T, D_IN), f32)).astype(f32)
    att = (atten_features if use_att else jnp.zeros((B, T, A_DIM), f32)).astype(f32)

    # Activation slab: lanes [0:10]=encoder input, [10:20]=decoder inputs,
    # [20:26]=attention features.
    data = jnp.concatenate([input_vars.astype(f32), dec_in, att], axis=-1)   # (B,T,26)

    def pad_rows(a, rows):
        a = jnp.asarray(a, f32)
        return jnp.pad(a, ((0, rows - a.shape[0]), (0, 0)))

    # ---- weight slab 1: lane width 96 (GRU matrices + biases), 8-row aligned
    w96 = jnp.concatenate([
        pad_rows(p['enc']['w_ih'], 16),    # data rows   0:10
        pad_rows(p['enc']['w_hh'], 32),    # rows       16:48
        pad_rows(p['enc']['b_ih'], 8),     # row        48
        pad_rows(p['enc']['b_hh'], 8),     # row        56
        pad_rows(p['dec']['w_ih'], 32),    # rows       64:96
        pad_rows(p['dec']['w_hh'], 32),    # rows       96:128
        pad_rows(p['dec']['b_ih'], 8),     # row       128
        pad_rows(p['dec']['b_hh'], 8),     # row       136
    ], axis=0)                             # (144, 96)

    # ---- weight slab 2: lane width 32 (MLP padded 16->32, combine weights) -
    half = H // 2
    w1p = jnp.pad(p['w1'], ((0, 0), (0, H - half)))   # zero cols 16:32
    b1p = jnp.pad(p['b1'], ((0, 0), (0, H - half)))
    w2p = jnp.pad(p['w2'], ((0, H - half), (0, 0)))   # zero rows 16:32
    w32 = jnp.concatenate([
        pad_rows(w1p, 16),                 # data rows   0:10
        pad_rows(b1p, 8),                  # row        16
        w2p,                               # rows       24:56
        pad_rows(p['b2'], 8),              # row        56
        jnp.asarray(p['dec']['w_c'][:H, :], f32),   # rows 64:96  (hidden half)
        jnp.asarray(p['dec']['w_c'][H:, :], f32),   # rows 96:128 (context half)
        pad_rows(p['dec']['b_c'], 8),      # row       128
    ], axis=0)                             # (136, 32)

    # ---- weight slab 3: lane width 3 (output proj + fully-fused head) ------
    flwT = jnp.asarray(p['fl_w'], f32).T               # (in, out)
    conv_w = jnp.asarray(p['conv_w'], f32)             # (out g, in c, tap k)
    maskA = np.zeros((A_DIM, 3), np.float32)
    maskB = np.zeros((A_DIM, 3), np.float32)
    for g in range(3):
        maskA[2 * g, g] = 1.0
        maskB[2 * g + 1, g] = 1.0
    maskA = jnp.asarray(maskA); maskB = jnp.asarray(maskB)
    eye3 = jnp.eye(3, dtype=f32)
    wo_taps, wa_taps = [], []
    for k in range(3):
        wo_k = conv_w[:, 0, k][:, None] * eye3                               # (3,3)
        wa_k = maskA * conv_w[:, 1, k][None, :] + maskB * conv_w[:, 2, k][None, :]
        wo_taps.append(wo_k @ flwT)        # fold final Linear(3,3) into conv
        wa_taps.append(wa_k @ flwT)
    b_fused = p['conv_b'].reshape(1, 3) @ flwT + p['fl_b'].reshape(1, 3)
    w3 = jnp.concatenate([
        jnp.asarray(p['dec']['w_o'], f32),          # rows  0:32
        pad_rows(p['dec']['b_o'], 8),               # row  32
        pad_rows(jnp.concatenate(wo_taps, 0), 16),  # data rows 40:49
        pad_rows(jnp.concatenate(wa_taps, 0), 24),  # data rows 56:74
        pad_rows(b_fused, 8),                       # row  80
        pad_rows(flwT, 8),                          # data rows 88:91
        pad_rows(p['fl_b'].reshape(1, 3), 8),       # row  96
    ], axis=0)                                      # (104, 3)

    kern = functools.partial(seq2seq_kernel,
                             use_dec_inputs=use_dec, use_atten=use_att)

    def full(shape):
        return pl.BlockSpec(shape, lambda i, _s=shape: (0,) * len(_s))

    in_arrays = [data, w96, w32, w3]
    return pl.pallas_call(
        kern,
        out_shape=jax.ShapeDtypeStruct((B, T, OUT), jnp.float32),
        grid=(1,),
        in_specs=[full(a.shape) for a in in_arrays],
        out_specs=full((B, T, OUT)),
        compiler_params=pltpu.CompilerParams(dimension_semantics=("arbitrary",)),
    )(*in_arrays)


# --------------------------------------------------------------------------
# Parameters (deterministic, synthetic). PyTorch-style layouts kept where the
# layout is semantically meaningful (conv weight (out, in/groups, k), linear
# weight (out, in)); GRU weights stored pre-transposed (in, 3H).
# --------------------------------------------------------------------------
def init_params(key):
    ks = iter(jax.random.split(key, 24))

    def w(shape, scale=0.15):
        return (scale * jax.random.normal(next(ks), shape)).astype(jnp.float32)

    p = {}
    # encoder GRU (injected submodule; synthetic single-layer GRU, gates r,z,n)
    p['enc'] = dict(w_ih=w((ENC_IN, 3 * H)), w_hh=w((H, 3 * H)),
                    b_ih=w((1, 3 * H)), b_hh=w((1, 3 * H)))
    # decoder GRU + attention combine + output projection (injected submodule)
    p['dec'] = dict(w_ih=w((H, 3 * H)), w_hh=w((H, 3 * H)),
                    b_ih=w((1, 3 * H)), b_hh=w((1, 3 * H)),
                    w_c=w((2 * H, H)), b_c=w((1, H)),
                    w_o=w((H, OUT)), b_o=w((1, OUT)))
    # Seq2Seq's own layers
    p['w1'] = w((D_IN, H // 2)); p['b1'] = w((1, H // 2))            # Linear(10, 16)
    p['w2'] = w((H // 2, H));    p['b2'] = w((1, H))                 # Linear(16, 32)
    p['conv_w'] = w((3, 3, 3))      # Conv1d(9,3,3,groups=3) weight (out, in/g, k)
    p['conv_b'] = w((3,))
    p['fl_w'] = w((3, 3))           # Linear(3,3) weight (out, in)
    p['fl_b'] = w((3,))
    return p


if __name__ == "__main__":
    key = jax.random.PRNGKey(0)
    k0, k1, k2, k3 = jax.random.split(key, 4)
    input_vars = jax.random.normal(k0, (B, T, ENC_IN), jnp.float32)
    decoder_inputs = jax.random.normal(k1, (B, T, D_IN), jnp.float32)
    atten_features = jax.random.normal(k2, (B, T, A_DIM), jnp.float32)
    params = init_params(k3)

    fwd = jax.jit(seq2seq_forward)
    out = fwd(params, input_vars, decoder_inputs, atten_features)
    out = jax.block_until_ready(out)
    assert out.shape == (B, T, 3), out.shape
    assert bool(jnp.all(jnp.isfinite(out)))
    print("KERNEL_OK")
</pallas_src>

<mosaic_0001>
module attributes {stable_mosaic.version = 11 : i64} {
  func.func @seq2seq_kernel(%arg0: i32, %arg1: memref<2x8x26xf32, #tpu.memory_space<vmem>>, %arg2: memref<144x96xf32, #tpu.memory_space<vmem>>, %arg3: memref<136x32xf32, #tpu.memory_space<vmem>>, %arg4: memref<104x3xf32, #tpu.memory_space<vmem>>, %arg5: memref<2x8x3xf32, #tpu.memory_space<vmem>>) attributes {dimension_semantics = [#tpu.dimension_semantics<arbitrary>], iteration_bounds = array<i64: 1>, scalar_prefetch = 0 : i64, scratch_operands = 0 : i64, tpu.core_type = #tpu.core_type<tc>, window_params = [{pipeline_mode = #tpu.pipeline_mode<synchronous>, transform_indices = @transform_0, window_bounds = array<i64: 2, 8, 26>}, {pipeline_mode = #tpu.pipeline_mode<synchronous>, transform_indices = @transform_1, window_bounds = array<i64: 144, 96>}, {pipeline_mode = #tpu.pipeline_mode<synchronous>, transform_indices = @transform_2, window_bounds = array<i64: 136, 32>}, {pipeline_mode = #tpu.pipeline_mode<synchronous>, transform_indices = @transform_3, window_bounds = array<i64: 104, 3>}, {pipeline_mode = #tpu.pipeline_mode<synchronous>, transform_indices = @transform_4, window_bounds = array<i64: 2, 8, 3>}]} {
    %c0 = arith.constant 0 : index
    %c0_0 = arith.constant 0 : index
    %c0_1 = arith.constant 0 : index
    %0 = vector.load %arg1[%c0, %c0_0, %c0_1] : memref<2x8x26xf32, #tpu.memory_space<vmem>>, vector<2x8x26xf32>
    %1 = vector.extract_strided_slice %0 {offsets = [0, 0, 0], sizes = [2, 8, 10], strides = [1, 1, 1]} : vector<2x8x26xf32> to vector<2x8x10xf32>
    %2 = vector.shape_cast %1 : vector<2x8x10xf32> to vector<16x10xf32>
    %c0_2 = arith.constant 0 : index
    %c0_3 = arith.constant 0 : index
    %3 = vector.load %arg2[%c0_2, %c0_3] : memref<144x96xf32, #tpu.memory_space<vmem>>, vector<10x96xf32>
    %c16 = arith.constant 16 : index
    %c0_4 = arith.constant 0 : index
    %4 = vector.load %arg2[%c16, %c0_4] : memref<144x96xf32, #tpu.memory_space<vmem>>, vector<32x96xf32>
    %5 = arith.truncf %4 : vector<32x96xf32> to vector<32x96xbf16>
    %c48 = arith.constant 48 : index
    %c0_5 = arith.constant 0 : index
    %6 = vector.load %arg2[%c48, %c0_5] : memref<144x96xf32, #tpu.memory_space<vmem>>, vector<1x96xf32>
    %c56 = arith.constant 56 : index
    %c0_6 = arith.constant 0 : index
    %7 = vector.load %arg2[%c56, %c0_6] : memref<144x96xf32, #tpu.memory_space<vmem>>, vector<1x96xf32>
    %c64 = arith.constant 64 : index
    %c0_7 = arith.constant 0 : index
    %8 = vector.load %arg2[%c64, %c0_7] : memref<144x96xf32, #tpu.memory_space<vmem>>, vector<32x96xf32>
    %c96 = arith.constant 96 : index
    %c0_8 = arith.constant 0 : index
    %9 = vector.load %arg2[%c96, %c0_8] : memref<144x96xf32, #tpu.memory_space<vmem>>, vector<32x96xf32>
    %10 = arith.truncf %9 : vector<32x96xf32> to vector<32x96xbf16>
    %c128 = arith.constant 128 : index
    %c0_9 = arith.constant 0 : index
    %11 = vector.load %arg2[%c128, %c0_9] : memref<144x96xf32, #tpu.memory_space<vmem>>, vector<1x96xf32>
    %c136 = arith.constant 136 : index
    %c0_10 = arith.constant 0 : index
    %12 = vector.load %arg2[%c136, %c0_10] : memref<144x96xf32, #tpu.memory_space<vmem>>, vector<1x96xf32>
    %cst = arith.constant dense<0.000000e+00> : vector<16x96xf32>
    %13 = tpu.matmul %2, %3, %cst {dimension_numbers = #tpu.dot_dimension_numbers<[1], [0], [0], [1], [0, 0, 1, 1], [], []>} : vector<16x10xf32>, vector<10x96xf32>, vector<16x96xf32> -> vector<16x96xf32>
    %14 = vector.broadcast %6 : vector<1x96xf32> to vector<16x96xf32>
    %15 = arith.addf %13, %14 : vector<16x96xf32>
    %16 = vector.shape_cast %15 : vector<16x96xf32> to vector<2x8x96xf32>
    %cst_11 = arith.constant 0.000000e+00 : f32
    %17 = vector.broadcast %cst_11 : f32 to vector<2x32xf32>
    %18 = arith.truncf %17 : vector<2x32xf32> to vector<2x32xbf16>
    %cst_12 = arith.constant dense<0.000000e+00> : vector<2x96xf32>
    %19 = tpu.matmul %18, %5, %cst_12 {dimension_numbers = #tpu.dot_dimension_numbers<[1], [0], [0], [1], [0, 0, 1, 1], [], []>} : vector<2x32xbf16>, vector<32x96xbf16>, vector<2x96xf32> -> vector<2x96xf32>
    %20 = vector.broadcast %7 : vector<1x96xf32> to vector<2x96xf32>
    %21 = arith.addf %19, %20 : vector<2x96xf32>
    %22 = vector.extract_strided_slice %16 {offsets = [0, 0, 0], sizes = [2, 1, 96], strides = [1, 1, 1]} : vector<2x8x96xf32> to vector<2x1x96xf32>
    %23 = vector.shape_cast %22 : vector<2x1x96xf32> to vector<2x96xf32>
    %24 = vector.extract_strided_slice %23 {offsets = [0, 0], sizes = [2, 32], strides = [1, 1]} : vector<2x96xf32> to vector<2x32xf32>
    %25 = vector.extract_strided_slice %21 {offsets = [0, 0], sizes = [2, 32], strides = [1, 1]} : vector<2x96xf32> to vector<2x32xf32>
    %26 = arith.addf %24, %25 : vector<2x32xf32>
    %27 = arith.negf %26 : vector<2x32xf32>
    %28 = math.exp %27 : vector<2x32xf32>
    %cst_13 = arith.constant 1.000000e+00 : f32
    %29 = vector.broadcast %cst_13 : f32 to vector<2x32xf32>
    %30 = arith.addf %29, %28 : vector<2x32xf32>
    %31 = arith.divf %29, %30 : vector<2x32xf32>
    %32 = vector.extract_strided_slice %23 {offsets = [0, 32], sizes = [2, 32], strides = [1, 1]} : vector<2x96xf32> to vector<2x32xf32>
    %33 = vector.extract_strided_slice %21 {offsets = [0, 32], sizes = [2, 32], strides = [1, 1]} : vector<2x96xf32> to vector<2x32xf32>
    %34 = arith.addf %32, %33 : vector<2x32xf32>
    %35 = arith.negf %34 : vector<2x32xf32>
    %36 = math.exp %35 : vector<2x32xf32>
    %cst_14 = arith.constant 1.000000e+00 : f32
    %37 = vector.broadcast %cst_14 : f32 to vector<2x32xf32>
    %38 = arith.addf %37, %36 : vector<2x32xf32>
    %39 = arith.divf %37, %38 : vector<2x32xf32>
    %40 = vector.extract_strided_slice %23 {offsets = [0, 64], sizes = [2, 32], strides = [1, 1]} : vector<2x96xf32> to vector<2x32xf32>
    %41 = vector.extract_strided_slice %21 {offsets = [0, 64], sizes = [2, 32], strides = [1, 1]} : vector<2x96xf32> to vector<2x32xf32>
    %42 = arith.mulf %31, %41 : vector<2x32xf32>
    %43 = arith.addf %40, %42 : vector<2x32xf32>
    %44 = math.tanh %43 : vector<2x32xf32>
    %cst_15 = arith.constant 1.000000e+00 : f32
    %45 = vector.broadcast %cst_15 : f32 to vector<2x32xf32>
    %46 = arith.subf %45, %39 : vector<2x32xf32>
    %47 = arith.mulf %46, %44 : vector<2x32xf32>
    %48 = arith.mulf %39, %17 : vector<2x32xf32>
    %49 = arith.addf %47, %48 : vector<2x32xf32>
    %50 = arith.truncf %49 : vector<2x32xf32> to vector<2x32xbf16>
    %cst_16 = arith.constant dense<0.000000e+00> : vector<2x96xf32>
    %51 = tpu.matmul %50, %5, %cst_16 {dimension_numbers = #tpu.dot_dimension_numbers<[1], [0], [0], [1], [0, 0, 1, 1], [], []>} : vector<2x32xbf16>, vector<32x96xbf16>, vector<2x96xf32> -> vector<2x96xf32>
    %52 = vector.broadcast %7 : vector<1x96xf32> to vector<2x96xf32>
    %53 = arith.addf %51, %52 : vector<2x96xf32>
    %54 = vector.extract_strided_slice %16 {offsets = [0, 1, 0], sizes = [2, 1, 96], strides = [1, 1, 1]} : vector<2x8x96xf32> to vector<2x1x96xf32>
    %55 = vector.shape_cast %54 : vector<2x1x96xf32> to vector<2x96xf32>
    %56 = vector.extract_strided_slice %55 {offsets = [0, 0], sizes = [2, 32], strides = [1, 1]} : vector<2x96xf32> to vector<2x32xf32>
    %57 = vector.extract_strided_slice %53 {offsets = [0, 0], sizes = [2, 32], strides = [1, 1]} : vector<2x96xf32> to vector<2x32xf32>
    %58 = arith.addf %56, %57 : vector<2x32xf32>
    %59 = arith.negf %58 : vector<2x32xf32>
    %60 = math.exp %59 : vector<2x32xf32>
    %cst_17 = arith.constant 1.000000e+00 : f32
    %61 = vector.broadcast %cst_17 : f32 to vector<2x32xf32>
    %62 = arith.addf %61, %60 : vector<2x32xf32>
    %63 = arith.divf %61, %62 : vector<2x32xf32>
    %64 = vector.extract_strided_slice %55 {offsets = [0, 32], sizes = [2, 32], strides = [1, 1]} : vector<2x96xf32> to vector<2x32xf32>
    %65 = vector.extract_strided_slice %53 {offsets = [0, 32], sizes = [2, 32], strides = [1, 1]} : vector<2x96xf32> to vector<2x32xf32>
    %66 = arith.addf %64, %65 : vector<2x32xf32>
    %67 = arith.negf %66 : vector<2x32xf32>
    %68 = math.exp %67 : vector<2x32xf32>
    %cst_18 = arith.constant 1.000000e+00 : f32
    %69 = vector.broadcast %cst_18 : f32 to vector<2x32xf32>
    %70 = arith.addf %69, %68 : vector<2x32xf32>
    %71 = arith.divf %69, %70 : vector<2x32xf32>
    %72 = vector.extract_strided_slice %55 {offsets = [0, 64], sizes = [2, 32], strides = [1, 1]} : vector<2x96xf32> to vector<2x32xf32>
    %73 = vector.extract_strided_slice %53 {offsets = [0, 64], sizes = [2, 32], strides = [1, 1]} : vector<2x96xf32> to vector<2x32xf32>
    %74 = arith.mulf %63, %73 : vector<2x32xf32>
    %75 = arith.addf %72, %74 : vector<2x32xf32>
    %76 = math.tanh %75 : vector<2x32xf32>
    %cst_19 = arith.constant 1.000000e+00 : f32
    %77 = vector.broadcast %cst_19 : f32 to vector<2x32xf32>
    %78 = arith.subf %77, %71 : vector<2x32xf32>
    %79 = arith.mulf %78, %76 : vector<2x32xf32>
    %80 = arith.mulf %71, %49 : vector<2x32xf32>
    %81 = arith.addf %79, %80 : vector<2x32xf32>
    %82 = arith.truncf %81 : vector<2x32xf32> to vector<2x32xbf16>
    %cst_20 = arith.constant dense<0.000000e+00> : vector<2x96xf32>
    %83 = tpu.matmul %82, %5, %cst_20 {dimension_numbers = #tpu.dot_dimension_numbers<[1], [0], [0], [1], [0, 0, 1, 1], [], []>} : vector<2x32xbf16>, vector<32x96xbf16>, vector<2x96xf32> -> vector<2x96xf32>
    %84 = vector.broadcast %7 : vector<1x96xf32> to vector<2x96xf32>
    %85 = arith.addf %83, %84 : vector<2x96xf32>
    %86 = vector.extract_strided_slice %16 {offsets = [0, 2, 0], sizes = [2, 1, 96], strides = [1, 1, 1]} : vector<2x8x96xf32> to vector<2x1x96xf32>
    %87 = vector.shape_cast %86 : vector<2x1x96xf32> to vector<2x96xf32>
    %88 = vector.extract_strided_slice %87 {offsets = [0, 0], sizes = [2, 32], strides = [1, 1]} : vector<2x96xf32> to vector<2x32xf32>
    %89 = vector.extract_strided_slice %85 {offsets = [0, 0], sizes = [2, 32], strides = [1, 1]} : vector<2x96xf32> to vector<2x32xf32>
    %90 = arith.addf %88, %89 : vector<2x32xf32>
    %91 = arith.negf %90 : vector<2x32xf32>
    %92 = math.exp %91 : vector<2x32xf32>
    %cst_21 = arith.constant 1.000000e+00 : f32
    %93 = vector.broadcast %cst_21 : f32 to vector<2x32xf32>
    %94 = arith.addf %93, %92 : vector<2x32xf32>
    %95 = arith.divf %93, %94 : vector<2x32xf32>
    %96 = vector.extract_strided_slice %87 {offsets = [0, 32], sizes = [2, 32], strides = [1, 1]} : vector<2x96xf32> to vector<2x32xf32>
    %97 = vector.extract_strided_slice %85 {offsets = [0, 32], sizes = [2, 32], strides = [1, 1]} : vector<2x96xf32> to vector<2x32xf32>
    %98 = arith.addf %96, %97 : vector<2x32xf32>
    %99 = arith.negf %98 : vector<2x32xf32>
    %100 = math.exp %99 : vector<2x32xf32>
    %cst_22 = arith.constant 1.000000e+00 : f32
    %101 = vector.broadcast %cst_22 : f32 to vector<2x32xf32>
    %102 = arith.addf %101, %100 : vector<2x32xf32>
    %103 = arith.divf %101, %102 : vector<2x32xf32>
    %104 = vector.extract_strided_slice %87 {offsets = [0, 64], sizes = [2, 32], strides = [1, 1]} : vector<2x96xf32> to vector<2x32xf32>
    %105 = vector.extract_strided_slice %85 {offsets = [0, 64], sizes = [2, 32], strides = [1, 1]} : vector<2x96xf32> to vector<2x32xf32>
    %106 = arith.mulf %95, %105 : vector<2x32xf32>
    %107 = arith.addf %104, %106 : vector<2x32xf32>
    %108 = math.tanh %107 : vector<2x32xf32>
    %cst_23 = arith.constant 1.000000e+00 : f32
    %109 = vector.broadcast %cst_23 : f32 to vector<2x32xf32>
    %110 = arith.subf %109, %103 : vector<2x32xf32>
    %111 = arith.mulf %110, %108 : vector<2x32xf32>
    %112 = arith.mulf %103, %81 : vector<2x32xf32>
    %113 = arith.addf %111, %112 : vector<2x32xf32>
    %114 = arith.truncf %113 : vector<2x32xf32> to vector<2x32xbf16>
    %cst_24 = arith.constant dense<0.000000e+00> : vector<2x96xf32>
    %115 = tpu.matmul %114, %5, %cst_24 {dimension_numbers = #tpu.dot_dimension_numbers<[1], [0], [0], [1], [0, 0, 1, 1], [], []>} : vector<2x32xbf16>, vector<32x96xbf16>, vector<2x96xf32> -> vector<2x96xf32>
    %116 = vector.broadcast %7 : vector<1x96xf32> to vector<2x96xf32>
    %117 = arith.addf %115, %116 : vector<2x96xf32>
    %118 = vector.extract_strided_slice %16 {offsets = [0, 3, 0], sizes = [2, 1, 96], strides = [1, 1, 1]} : vector<2x8x96xf32> to vector<2x1x96xf32>
    %119 = vector.shape_cast %118 : vector<2x1x96xf32> to vector<2x96xf32>
    %120 = vector.extract_strided_slice %119 {offsets = [0, 0], sizes = [2, 32], strides = [1, 1]} : vector<2x96xf32> to vector<2x32xf32>
    %121 = vector.extract_strided_slice %117 {offsets = [0, 0], sizes = [2, 32], strides = [1, 1]} : vector<2x96xf32> to vector<2x32xf32>
    %122 = arith.addf %120, %121 : vector<2x32xf32>
    %123 = arith.negf %122 : vector<2x32xf32>
    %124 = math.exp %123 : vector<2x32xf32>
    %cst_25 = arith.constant 1.000000e+00 : f32
    %125 = vector.broadcast %cst_25 : f32 to vector<2x32xf32>
    %126 = arith.addf %125, %124 : vector<2x32xf32>
    %127 = arith.divf %125, %126 : vector<2x32xf32>
    %128 = vector.extract_strided_slice %119 {offsets = [0, 32], sizes = [2, 32], strides = [1, 1]} : vector<2x96xf32> to vector<2x32xf32>
    %129 = vector.extract_strided_slice %117 {offsets = [0, 32], sizes = [2, 32], strides = [1, 1]} : vector<2x96xf32> to vector<2x32xf32>
    %130 = arith.addf %128, %129 : vector<2x32xf32>
    %131 = arith.negf %130 : vector<2x32xf32>
    %132 = math.exp %131 : vector<2x32xf32>
    %cst_26 = arith.constant 1.000000e+00 : f32
    %133 = vector.broadcast %cst_26 : f32 to vector<2x32xf32>
    %134 = arith.addf %133, %132 : vector<2x32xf32>
    %135 = arith.divf %133, %134 : vector<2x32xf32>
    %136 = vector.extract_strided_slice %119 {offsets = [0, 64], sizes = [2, 32], strides = [1, 1]} : vector<2x96xf32> to vector<2x32xf32>
    %137 = vector.extract_strided_slice %117 {offsets = [0, 64], sizes = [2, 32], strides = [1, 1]} : vector<2x96xf32> to vector<2x32xf32>
    %138 = arith.mulf %127, %137 : vector<2x32xf32>
    %139 = arith.addf %136, %138 : vector<2x32xf32>
    %140 = math.tanh %139 : vector<2x32xf32>
    %cst_27 = arith.constant 1.000000e+00 : f32
    %141 = vector.broadcast %cst_27 : f32 to vector<2x32xf32>
    %142 = arith.subf %141, %135 : vector<2x32xf32>
    %143 = arith.mulf %142, %140 : vector<2x32xf32>
    %144 = arith.mulf %135, %113 : vector<2x32xf32>
    %145 = arith.addf %143, %144 : vector<2x32xf32>
    %146 = arith.truncf %145 : vector<2x32xf32> to vector<2x32xbf16>
    %cst_28 = arith.constant dense<0.000000e+00> : vector<2x96xf32>
    %147 = tpu.matmul %146, %5, %cst_28 {dimension_numbers = #tpu.dot_dimension_numbers<[1], [0], [0], [1], [0, 0, 1, 1], [], []>} : vector<2x32xbf16>, vector<32x96xbf16>, vector<2x96xf32> -> vector<2x96xf32>
    %148 = vector.broadcast %7 : vector<1x96xf32> to vector<2x96xf32>
    %149 = arith.addf %147, %148 : vector<2x96xf32>
    %150 = vector.extract_strided_slice %16 {offsets = [0, 4, 0], sizes = [2, 1, 96], strides = [1, 1, 1]} : vector<2x8x96xf32> to vector<2x1x96xf32>
    %151 = vector.shape_cast %150 : vector<2x1x96xf32> to vector<2x96xf32>
    %152 = vector.extract_strided_slice %151 {offsets = [0, 0], sizes = [2, 32], strides = [1, 1]} : vector<2x96xf32> to vector<2x32xf32>
    %153 = vector.extract_strided_slice %149 {offsets = [0, 0], sizes = [2, 32], strides = [1, 1]} : vector<2x96xf32> to vector<2x32xf32>
    %154 = arith.addf %152, %153 : vector<2x32xf32>
    %155 = arith.negf %154 : vector<2x32xf32>
    %156 = math.exp %155 : vector<2x32xf32>
    %cst_29 = arith.constant 1.000000e+00 : f32
    %157 = vector.broadcast %cst_29 : f32 to vector<2x32xf32>
    %158 = arith.addf %157, %156 : vector<2x32xf32>
    %159 = arith.divf %157, %158 : vector<2x32xf32>
    %160 = vector.extract_strided_slice %151 {offsets = [0, 32], sizes = [2, 32], strides = [1, 1]} : vector<2x96xf32> to vector<2x32xf32>
    %161 = vector.extract_strided_slice %149 {offsets = [0, 32], sizes = [2, 32], strides = [1, 1]} : vector<2x96xf32> to vector<2x32xf32>
    %162 = arith.addf %160, %161 : vector<2x32xf32>
    %163 = arith.negf %162 : vector<2x32xf32>
    %164 = math.exp %163 : vector<2x32xf32>
    %cst_30 = arith.constant 1.000000e+00 : f32
    %165 = vector.broadcast %cst_30 : f32 to vector<2x32xf32>
    %166 = arith.addf %165, %164 : vector<2x32xf32>
    %167 = arith.divf %165, %166 : vector<2x32xf32>
    %168 = vector.extract_strided_slice %151 {offsets = [0, 64], sizes = [2, 32], strides = [1, 1]} : vector<2x96xf32> to vector<2x32xf32>
    %169 = vector.extract_strided_slice %149 {offsets = [0, 64], sizes = [2, 32], strides = [1, 1]} : vector<2x96xf32> to vector<2x32xf32>
    %170 = arith.mulf %159, %169 : vector<2x32xf32>
    %171 = arith.addf %168, %170 : vector<2x32xf32>
    %172 = math.tanh %171 : vector<2x32xf32>
    %cst_31 = arith.constant 1.000000e+00 : f32
    %173 = vector.broadcast %cst_31 : f32 to vector<2x32xf32>
    %174 = arith.subf %173, %167 : vector<2x32xf32>
    %175 = arith.mulf %174, %172 : vector<2x32xf32>
    %176 = arith.mulf %167, %145 : vector<2x32xf32>
    %177 = arith.addf %175, %176 : vector<2x32xf32>
    %178 = arith.truncf %177 : vector<2x32xf32> to vector<2x32xbf16>
    %cst_32 = arith.constant dense<0.000000e+00> : vector<2x96xf32>
    %179 = tpu.matmul %178, %5, %cst_32 {dimension_numbers = #tpu.dot_dimension_numbers<[1], [0], [0], [1], [0, 0, 1, 1], [], []>} : vector<2x32xbf16>, vector<32x96xbf16>, vector<2x96xf32> -> vector<2x96xf32>
    %180 = vector.broadcast %7 : vector<1x96xf32> to vector<2x96xf32>
    %181 = arith.addf %179, %180 : vector<2x96xf32>
    %182 = vector.extract_strided_slice %16 {offsets = [0, 5, 0], sizes = [2, 1, 96], strides = [1, 1, 1]} : vector<2x8x96xf32> to vector<2x1x96xf32>
    %183 = vector.shape_cast %182 : vector<2x1x96xf32> to vector<2x96xf32>
    %184 = vector.extract_strided_slice %183 {offsets = [0, 0], sizes = [2, 32], strides = [1, 1]} : vector<2x96xf32> to vector<2x32xf32>
    %185 = vector.extract_strided_slice %181 {offsets = [0, 0], sizes = [2, 32], strides = [1, 1]} : vector<2x96xf32> to vector<2x32xf32>
    %186 = arith.addf %184, %185 : vector<2x32xf32>
    %187 = arith.negf %186 : vector<2x32xf32>
    %188 = math.exp %187 : vector<2x32xf32>
    %cst_33 = arith.constant 1.000000e+00 : f32
    %189 = vector.broadcast %cst_33 : f32 to vector<2x32xf32>
    %190 = arith.addf %189, %188 : vector<2x32xf32>
    %191 = arith.divf %189, %190 : vector<2x32xf32>
    %192 = vector.extract_strided_slice %183 {offsets = [0, 32], sizes = [2, 32], strides = [1, 1]} : vector<2x96xf32> to vector<2x32xf32>
    %193 = vector.extract_strided_slice %181 {offsets = [0, 32], sizes = [2, 32], strides = [1, 1]} : vector<2x96xf32> to vector<2x32xf32>
    %194 = arith.addf %192, %193 : vector<2x32xf32>
    %195 = arith.negf %194 : vector<2x32xf32>
    %196 = math.exp %195 : vector<2x32xf32>
    %cst_34 = arith.constant 1.000000e+00 : f32
    %197 = vector.broadcast %cst_34 : f32 to vector<2x32xf32>
    %198 = arith.addf %197, %196 : vector<2x32xf32>
    %199 = arith.divf %197, %198 : vector<2x32xf32>
    %200 = vector.extract_strided_slice %183 {offsets = [0, 64], sizes = [2, 32], strides = [1, 1]} : vector<2x96xf32> to vector<2x32xf32>
    %201 = vector.extract_strided_slice %181 {offsets = [0, 64], sizes = [2, 32], strides = [1, 1]} : vector<2x96xf32> to vector<2x32xf32>
    %202 = arith.mulf %191, %201 : vector<2x32xf32>
    %203 = arith.addf %200, %202 : vector<2x32xf32>
    %204 = math.tanh %203 : vector<2x32xf32>
    %cst_35 = arith.constant 1.000000e+00 : f32
    %205 = vector.broadcast %cst_35 : f32 to vector<2x32xf32>
    %206 = arith.subf %205, %199 : vector<2x32xf32>
    %207 = arith.mulf %206, %204 : vector<2x32xf32>
    %208 = arith.mulf %199, %177 : vector<2x32xf32>
    %209 = arith.addf %207, %208 : vector<2x32xf32>
    %210 = arith.truncf %209 : vector<2x32xf32> to vector<2x32xbf16>
    %cst_36 = arith.constant dense<0.000000e+00> : vector<2x96xf32>
    %211 = tpu.matmul %210, %5, %cst_36 {dimension_numbers = #tpu.dot_dimension_numbers<[1], [0], [0], [1], [0, 0, 1, 1], [], []>} : vector<2x32xbf16>, vector<32x96xbf16>, vector<2x96xf32> -> vector<2x96xf32>
    %212 = vector.broadcast %7 : vector<1x96xf32> to vector<2x96xf32>
    %213 = arith.addf %211, %212 : vector<2x96xf32>
    %214 = vector.extract_strided_slice %16 {offsets = [0, 6, 0], sizes = [2, 1, 96], strides = [1, 1, 1]} : vector<2x8x96xf32> to vector<2x1x96xf32>
    %215 = vector.shape_cast %214 : vector<2x1x96xf32> to vector<2x96xf32>
    %216 = vector.extract_strided_slice %215 {offsets = [0, 0], sizes = [2, 32], strides = [1, 1]} : vector<2x96xf32> to vector<2x32xf32>
    %217 = vector.extract_strided_slice %213 {offsets = [0, 0], sizes = [2, 32], strides = [1, 1]} : vector<2x96xf32> to vector<2x32xf32>
    %218 = arith.addf %216, %217 : vector<2x32xf32>
    %219 = arith.negf %218 : vector<2x32xf32>
    %220 = math.exp %219 : vector<2x32xf32>
    %cst_37 = arith.constant 1.000000e+00 : f32
    %221 = vector.broadcast %cst_37 : f32 to vector<2x32xf32>
    %222 = arith.addf %221, %220 : vector<2x32xf32>
    %223 = arith.divf %221, %222 : vector<2x32xf32>
    %224 = vector.extract_strided_slice %215 {offsets = [0, 32], sizes = [2, 32], strides = [1, 1]} : vector<2x96xf32> to vector<2x32xf32>
    %225 = vector.extract_strided_slice %213 {offsets = [0, 32], sizes = [2, 32], strides = [1, 1]} : vector<2x96xf32> to vector<2x32xf32>
    %226 = arith.addf %224, %225 : vector<2x32xf32>
    %227 = arith.negf %226 : vector<2x32xf32>
    %228 = math.exp %227 : vector<2x32xf32>
    %cst_38 = arith.constant 1.000000e+00 : f32
    %229 = vector.broadcast %cst_38 : f32 to vector<2x32xf32>
    %230 = arith.addf %229, %228 : vector<2x32xf32>
    %231 = arith.divf %229, %230 : vector<2x32xf32>
    %232 = vector.extract_strided_slice %215 {offsets = [0, 64], sizes = [2, 32], strides = [1, 1]} : vector<2x96xf32> to vector<2x32xf32>
    %233 = vector.extract_strided_slice %213 {offsets = [0, 64], sizes = [2, 32], strides = [1, 1]} : vector<2x96xf32> to vector<2x32xf32>
    %234 = arith.mulf %223, %233 : vector<2x32xf32>
    %235 = arith.addf %232, %234 : vector<2x32xf32>
    %236 = math.tanh %235 : vector<2x32xf32>
    %cst_39 = arith.constant 1.000000e+00 : f32
    %237 = vector.broadcast %cst_39 : f32 to vector<2x32xf32>
    %238 = arith.subf %237, %231 : vector<2x32xf32>
    %239 = arith.mulf %238, %236 : vector<2x32xf32>
    %240 = arith.mulf %231, %209 : vector<2x32xf32>
    %241 = arith.addf %239, %240 : vector<2x32xf32>
    %242 = arith.truncf %241 : vector<2x32xf32> to vector<2x32xbf16>
    %cst_40 = arith.constant dense<0.000000e+00> : vector<2x96xf32>
    %243 = tpu.matmul %242, %5, %cst_40 {dimension_numbers = #tpu.dot_dimension_numbers<[1], [0], [0], [1], [0, 0, 1, 1], [], []>} : vector<2x32xbf16>, vector<32x96xbf16>, vector<2x96xf32> -> vector<2x96xf32>
    %244 = vector.broadcast %7 : vector<1x96xf32> to vector<2x96xf32>
    %245 = arith.addf %243, %244 : vector<2x96xf32>
    %246 = vector.extract_strided_slice %16 {offsets = [0, 7, 0], sizes = [2, 1, 96], strides = [1, 1, 1]} : vector<2x8x96xf32> to vector<2x1x96xf32>
    %247 = vector.shape_cast %246 : vector<2x1x96xf32> to vector<2x96xf32>
    %248 = vector.extract_strided_slice %247 {offsets = [0, 0], sizes = [2, 32], strides = [1, 1]} : vector<2x96xf32> to vector<2x32xf32>
    %249 = vector.extract_strided_slice %245 {offsets = [0, 0], sizes = [2, 32], strides = [1, 1]} : vector<2x96xf32> to vector<2x32xf32>
    %250 = arith.addf %248, %249 : vector<2x32xf32>
    %251 = arith.negf %250 : vector<2x32xf32>
    %252 = math.exp %251 : vector<2x32xf32>
    %cst_41 = arith.constant 1.000000e+00 : f32
    %253 = vector.broadcast %cst_41 : f32 to vector<2x32xf32>
    %254 = arith.addf %253, %252 : vector<2x32xf32>
    %255 = arith.divf %253, %254 : vector<2x32xf32>
    %256 = vector.extract_strided_slice %247 {offsets = [0, 32], sizes = [2, 32], strides = [1, 1]} : vector<2x96xf32> to vector<2x32xf32>
    %257 = vector.extract_strided_slice %245 {offsets = [0, 32], sizes = [2, 32], strides = [1, 1]} : vector<2x96xf32> to vector<2x32xf32>
    %258 = arith.addf %256, %257 : vector<2x32xf32>
    %259 = arith.negf %258 : vector<2x32xf32>
    %260 = math.exp %259 : vector<2x32xf32>
    %cst_42 = arith.constant 1.000000e+00 : f32
    %261 = vector.broadcast %cst_42 : f32 to vector<2x32xf32>
    %262 = arith.addf %261, %260 : vector<2x32xf32>
    %263 = arith.divf %261, %262 : vector<2x32xf32>
    %264 = vector.extract_strided_slice %247 {offsets = [0, 64], sizes = [2, 32], strides = [1, 1]} : vector<2x96xf32> to vector<2x32xf32>
    %265 = vector.extract_strided_slice %245 {offsets = [0, 64], sizes = [2, 32], strides = [1, 1]} : vector<2x96xf32> to vector<2x32xf32>
    %266 = arith.mulf %255, %265 : vector<2x32xf32>
    %267 = arith.addf %264, %266 : vector<2x32xf32>
    %268 = math.tanh %267 : vector<2x32xf32>
    %cst_43 = arith.constant 1.000000e+00 : f32
    %269 = vector.broadcast %cst_43 : f32 to vector<2x32xf32>
    %270 = arith.subf %269, %263 : vector<2x32xf32>
    %271 = arith.mulf %270, %268 : vector<2x32xf32>
    %272 = arith.mulf %263, %241 : vector<2x32xf32>
    %273 = arith.addf %271, %272 : vector<2x32xf32>
    %274 = vector.shape_cast %49 : vector<2x32xf32> to vector<2x1x32xf32>
    %275 = vector.shape_cast %81 : vector<2x32xf32> to vector<2x1x32xf32>
    %276 = vector.shape_cast %113 : vector<2x32xf32> to vector<2x1x32xf32>
    %277 = vector.shape_cast %145 : vector<2x32xf32> to vector<2x1x32xf32>
    %278 = vector.shape_cast %177 : vector<2x32xf32> to vector<2x1x32xf32>
    %279 = vector.shape_cast %209 : vector<2x32xf32> to vector<2x1x32xf32>
    %280 = vector.shape_cast %241 : vector<2x32xf32> to vector<2x1x32xf32>
    %281 = vector.shape_cast %273 : vector<2x32xf32> to vector<2x1x32xf32>
    %282 = tpu.concatenate %274, %275, %276, %277, %278, %279, %280, %281 in 1 : vector<2x1x32xf32>, vector<2x1x32xf32>, vector<2x1x32xf32>, vector<2x1x32xf32>, vector<2x1x32xf32>, vector<2x1x32xf32>, vector<2x1x32xf32>, vector<2x1x32xf32> -> vector<2x8x32xf32>
    %c0_44 = arith.constant 0 : index
    %c0_45 = arith.constant 0 : index
    %283 = vector.load %arg3[%c0_44, %c0_45] : memref<136x32xf32, #tpu.memory_space<vmem>>, vector<10x32xf32>
    %c16_46 = arith.constant 16 : index
    %c0_47 = arith.constant 0 : index
    %284 = vector.load %arg3[%c16_46, %c0_47] : memref<136x32xf32, #tpu.memory_space<vmem>>, vector<1x32xf32>
    %c24 = arith.constant 24 : index
    %c0_48 = arith.constant 0 : index
    %285 = vector.load %arg3[%c24, %c0_48] : memref<136x32xf32, #tpu.memory_space<vmem>>, vector<32x32xf32>
    %c56_49 = arith.constant 56 : index
    %c0_50 = arith.constant 0 : index
    %286 = vector.load %arg3[%c56_49, %c0_50] : memref<136x32xf32, #tpu.memory_space<vmem>>, vector<1x32xf32>
    %287 = vector.extract_strided_slice %0 {offsets = [0, 0, 10], sizes = [2, 8, 10], strides = [1, 1, 1]} : vector<2x8x26xf32> to vector<2x8x10xf32>
    %288 = vector.shape_cast %287 : vector<2x8x10xf32> to vector<16x10xf32>
    %cst_51 = arith.constant dense<0.000000e+00> : vector<16x32xf32>
    %289 = tpu.matmul %288, %283, %cst_51 {dimension_numbers = #tpu.dot_dimension_numbers<[1], [0], [0], [1], [0, 0, 1, 1], [], []>} : vector<16x10xf32>, vector<10x32xf32>, vector<16x32xf32> -> vector<16x32xf32>
    %290 = vector.broadcast %284 : vector<1x32xf32> to vector<16x32xf32>
    %291 = arith.addf %289, %290 : vector<16x32xf32>
    %cst_52 = arith.constant 0.000000e+00 : f32
    %292 = vector.broadcast %cst_52 : f32 to vector<16x32xf32>
    %293 = arith.cmpf oge, %291, %292 : vector<16x32xf32>
    %cst_53 = arith.constant 0.00999999977 : f32
    %294 = vector.broadcast %cst_53 : f32 to vector<16x32xf32>
    %295 = arith.mulf %294, %291 : vector<16x32xf32>
    %296 = arith.select %293, %291, %295 : vector<16x32xi1>, vector<16x32xf32>
    %cst_54 = arith.constant dense<0.000000e+00> : vector<16x32xf32>
    %297 = tpu.matmul %296, %285, %cst_54 {dimension_numbers = #tpu.dot_dimension_numbers<[1], [0], [0], [1], [0, 0, 1, 1], [], []>} : vector<16x32xf32>, vector<32x32xf32>, vector<16x32xf32> -> vector<16x32xf32>
    %298 = vector.broadcast %286 : vector<1x32xf32> to vector<16x32xf32>
    %299 = arith.addf %297, %298 : vector<16x32xf32>
    %cst_55 = arith.constant 0.000000e+00 : f32
    %300 = vector.broadcast %cst_55 : f32 to vector<16x32xf32>
    %301 = arith.cmpf oge, %299, %300 : vector<16x32xf32>
    %cst_56 = arith.constant 0.00999999977 : f32
    %302 = vector.broadcast %cst_56 : f32 to vector<16x32xf32>
    %303 = arith.mulf %302, %299 : vector<16x32xf32>
    %304 = arith.select %301, %299, %303 : vector<16x32xi1>, vector<16x32xf32>
    %cst_57 = arith.constant dense<0.000000e+00> : vector<16x96xf32>
    %305 = tpu.matmul %304, %8, %cst_57 {dimension_numbers = #tpu.dot_dimension_numbers<[1], [0], [0], [1], [0, 0, 1, 1], [], []>} : vector<16x32xf32>, vector<32x96xf32>, vector<16x96xf32> -> vector<16x96xf32>
    %306 = vector.broadcast %11 : vector<1x96xf32> to vector<16x96xf32>
    %307 = arith.addf %305, %306 : vector<16x96xf32>
    %308 = vector.shape_cast %307 : vector<16x96xf32> to vector<2x8x96xf32>
    %309 = arith.truncf %273 : vector<2x32xf32> to vector<2x32xbf16>
    %cst_58 = arith.constant dense<0.000000e+00> : vector<2x96xf32>
    %310 = tpu.matmul %309, %10, %cst_58 {dimension_numbers = #tpu.dot_dimension_numbers<[1], [0], [0], [1], [0, 0, 1, 1], [], []>} : vector<2x32xbf16>, vector<32x96xbf16>, vector<2x96xf32> -> vector<2x96xf32>
    %311 = vector.broadcast %12 : vector<1x96xf32> to vector<2x96xf32>
    %312 = arith.addf %310, %311 : vector<2x96xf32>
    %313 = vector.extract_strided_slice %308 {offsets = [0, 0, 0], sizes = [2, 1, 96], strides = [1, 1, 1]} : vector<2x8x96xf32> to vector<2x1x96xf32>
    %314 = vector.shape_cast %313 : vector<2x1x96xf32> to vector<2x96xf32>
    %315 = vector.extract_strided_slice %314 {offsets = [0, 0], sizes = [2, 32], strides = [1, 1]} : vector<2x96xf32> to vector<2x32xf32>
    %316 = vector.extract_strided_slice %312 {offsets = [0, 0], sizes = [2, 32], strides = [1, 1]} : vector<2x96xf32> to vector<2x32xf32>
    %317 = arith.addf %315, %316 : vector<2x32xf32>
    %318 = arith.negf %317 : vector<2x32xf32>
    %319 = math.exp %318 : vector<2x32xf32>
    %cst_59 = arith.constant 1.000000e+00 : f32
    %320 = vector.broadcast %cst_59 : f32 to vector<2x32xf32>
    %321 = arith.addf %320, %319 : vector<2x32xf32>
    %322 = arith.divf %320, %321 : vector<2x32xf32>
    %323 = vector.extract_strided_slice %314 {offsets = [0, 32], sizes = [2, 32], strides = [1, 1]} : vector<2x96xf32> to vector<2x32xf32>
    %324 = vector.extract_strided_slice %312 {offsets = [0, 32], sizes = [2, 32], strides = [1, 1]} : vector<2x96xf32> to vector<2x32xf32>
    %325 = arith.addf %323, %324 : vector<2x32xf32>
    %326 = arith.negf %325 : vector<2x32xf32>
    %327 = math.exp %326 : vector<2x32xf32>
    %cst_60 = arith.constant 1.000000e+00 : f32
    %328 = vector.broadcast %cst_60 : f32 to vector<2x32xf32>
    %329 = arith.addf %328, %327 : vector<2x32xf32>
    %330 = arith.divf %328, %329 : vector<2x32xf32>
    %331 = vector.extract_strided_slice %314 {offsets = [0, 64], sizes = [2, 32], strides = [1, 1]} : vector<2x96xf32> to vector<2x32xf32>
    %332 = vector.extract_strided_slice %312 {offsets = [0, 64], sizes = [2, 32], strides = [1, 1]} : vector<2x96xf32> to vector<2x32xf32>
    %333 = arith.mulf %322, %332 : vector<2x32xf32>
    %334 = arith.addf %331, %333 : vector<2x32xf32>
    %335 = math.tanh %334 : vector<2x32xf32>
    %cst_61 = arith.constant 1.000000e+00 : f32
    %336 = vector.broadcast %cst_61 : f32 to vector<2x32xf32>
    %337 = arith.subf %336, %330 : vector<2x32xf32>
    %338 = arith.mulf %337, %335 : vector<2x32xf32>
    %339 = arith.mulf %330, %273 : vector<2x32xf32>
    %340 = arith.addf %338, %339 : vector<2x32xf32>
    %341 = arith.truncf %340 : vector<2x32xf32> to vector<2x32xbf16>
    %cst_62 = arith.constant dense<0.000000e+00> : vector<2x96xf32>
    %342 = tpu.matmul %341, %10, %cst_62 {dimension_numbers = #tpu.dot_dimension_numbers<[1], [0], [0], [1], [0, 0, 1, 1], [], []>} : vector<2x32xbf16>, vector<32x96xbf16>, vector<2x96xf32> -> vector<2x96xf32>
    %343 = vector.broadcast %12 : vector<1x96xf32> to vector<2x96xf32>
    %344 = arith.addf %342, %343 : vector<2x96xf32>
    %345 = vector.extract_strided_slice %308 {offsets = [0, 1, 0], sizes = [2, 1, 96], strides = [1, 1, 1]} : vector<2x8x96xf32> to vector<2x1x96xf32>
    %346 = vector.shape_cast %345 : vector<2x1x96xf32> to vector<2x96xf32>
    %347 = vector.extract_strided_slice %346 {offsets = [0, 0], sizes = [2, 32], strides = [1, 1]} : vector<2x96xf32> to vector<2x32xf32>
    %348 = vector.extract_strided_slice %344 {offsets = [0, 0], sizes = [2, 32], strides = [1, 1]} : vector<2x96xf32> to vector<2x32xf32>
    %349 = arith.addf %347, %348 : vector<2x32xf32>
    %350 = arith.negf %349 : vector<2x32xf32>
    %351 = math.exp %350 : vector<2x32xf32>
    %cst_63 = arith.constant 1.000000e+00 : f32
    %352 = vector.broadcast %cst_63 : f32 to vector<2x32xf32>
    %353 = arith.addf %352, %351 : vector<2x32xf32>
    %354 = arith.divf %352, %353 : vector<2x32xf32>
    %355 = vector.extract_strided_slice %346 {offsets = [0, 32], sizes = [2, 32], strides = [1, 1]} : vector<2x96xf32> to vector<2x32xf32>
    %356 = vector.extract_strided_slice %344 {offsets = [0, 32], sizes = [2, 32], strides = [1, 1]} : vector<2x96xf32> to vector<2x32xf32>
    %357 = arith.addf %355, %356 : vector<2x32xf32>
    %358 = arith.negf %357 : vector<2x32xf32>
    %359 = math.exp %358 : vector<2x32xf32>
    %cst_64 = arith.constant 1.000000e+00 : f32
    %360 = vector.broadcast %cst_64 : f32 to vector<2x32xf32>
    %361 = arith.addf %360, %359 : vector<2x32xf32>
    %362 = arith.divf %360, %361 : vector<2x32xf32>
    %363 = vector.extract_strided_slice %346 {offsets = [0, 64], sizes = [2, 32], strides = [1, 1]} : vector<2x96xf32> to vector<2x32xf32>
    %364 = vector.extract_strided_slice %344 {offsets = [0, 64], sizes = [2, 32], strides = [1, 1]} : vector<2x96xf32> to vector<2x32xf32>
    %365 = arith.mulf %354, %364 : vector<2x32xf32>
    %366 = arith.addf %363, %365 : vector<2x32xf32>
    %367 = math.tanh %366 : vector<2x32xf32>
    %cst_65 = arith.constant 1.000000e+00 : f32
    %368 = vector.broadcast %cst_65 : f32 to vector<2x32xf32>
    %369 = arith.subf %368, %362 : vector<2x32xf32>
    %370 = arith.mulf %369, %367 : vector<2x32xf32>
    %371 = arith.mulf %362, %340 : vector<2x32xf32>
    %372 = arith.addf %370, %371 : vector<2x32xf32>
    %373 = arith.truncf %372 : vector<2x32xf32> to vector<2x32xbf16>
    %cst_66 = arith.constant dense<0.000000e+00> : vector<2x96xf32>
    %374 = tpu.matmul %373, %10, %cst_66 {dimension_numbers = #tpu.dot_dimension_numbers<[1], [0], [0], [1], [0, 0, 1, 1], [], []>} : vector<2x32xbf16>, vector<32x96xbf16>, vector<2x96xf32> -> vector<2x96xf32>
    %375 = vector.broadcast %12 : vector<1x96xf32> to vector<2x96xf32>
    %376 = arith.addf %374, %375 : vector<2x96xf32>
    %377 = vector.extract_strided_slice %308 {offsets = [0, 2, 0], sizes = [2, 1, 96], strides = [1, 1, 1]} : vector<2x8x96xf32> to vector<2x1x96xf32>
    %378 = vector.shape_cast %377 : vector<2x1x96xf32> to vector<2x96xf32>
    %379 = vector.extract_strided_slice %378 {offsets = [0, 0], sizes = [2, 32], strides = [1, 1]} : vector<2x96xf32> to vector<2x32xf32>
    %380 = vector.extract_strided_slice %376 {offsets = [0, 0], sizes = [2, 32], strides = [1, 1]} : vector<2x96xf32> to vector<2x32xf32>
    %381 = arith.addf %379, %380 : vector<2x32xf32>
    %382 = arith.negf %381 : vector<2x32xf32>
    %383 = math.exp %382 : vector<2x32xf32>
    %cst_67 = arith.constant 1.000000e+00 : f32
    %384 = vector.broadcast %cst_67 : f32 to vector<2x32xf32>
    %385 = arith.addf %384, %383 : vector<2x32xf32>
    %386 = arith.divf %384, %385 : vector<2x32xf32>
    %387 = vector.extract_strided_slice %378 {offsets = [0, 32], sizes = [2, 32], strides = [1, 1]} : vector<2x96xf32> to vector<2x32xf32>
    %388 = vector.extract_strided_slice %376 {offsets = [0, 32], sizes = [2, 32], strides = [1, 1]} : vector<2x96xf32> to vector<2x32xf32>
    %389 = arith.addf %387, %388 : vector<2x32xf32>
    %390 = arith.negf %389 : vector<2x32xf32>
    %391 = math.exp %390 : vector<2x32xf32>
    %cst_68 = arith.constant 1.000000e+00 : f32
    %392 = vector.broadcast %cst_68 : f32 to vector<2x32xf32>
    %393 = arith.addf %392, %391 : vector<2x32xf32>
    %394 = arith.divf %392, %393 : vector<2x32xf32>
    %395 = vector.extract_strided_slice %378 {offsets = [0, 64], sizes = [2, 32], strides = [1, 1]} : vector<2x96xf32> to vector<2x32xf32>
    %396 = vector.extract_strided_slice %376 {offsets = [0, 64], sizes = [2, 32], strides = [1, 1]} : vector<2x96xf32> to vector<2x32xf32>
    %397 = arith.mulf %386, %396 : vector<2x32xf32>
    %398 = arith.addf %395, %397 : vector<2x32xf32>
    %399 = math.tanh %398 : vector<2x32xf32>
    %cst_69 = arith.constant 1.000000e+00 : f32
    %400 = vector.broadcast %cst_69 : f32 to vector<2x32xf32>
    %401 = arith.subf %400, %394 : vector<2x32xf32>
    %402 = arith.mulf %401, %399 : vector<2x32xf32>
    %403 = arith.mulf %394, %372 : vector<2x32xf32>
    %404 = arith.addf %402, %403 : vector<2x32xf32>
    %405 = arith.truncf %404 : vector<2x32xf32> to vector<2x32xbf16>
    %cst_70 = arith.constant dense<0.000000e+00> : vector<2x96xf32>
    %406 = tpu.matmul %405, %10, %cst_70 {dimension_numbers = #tpu.dot_dimension_numbers<[1], [0], [0], [1], [0, 0, 1, 1], [], []>} : vector<2x32xbf16>, vector<32x96xbf16>, vector<2x96xf32> -> vector<2x96xf32>
    %407 = vector.broadcast %12 : vector<1x96xf32> to vector<2x96xf32>
    %408 = arith.addf %406, %407 : vector<2x96xf32>
    %409 = vector.extract_strided_slice %308 {offsets = [0, 3, 0], sizes = [2, 1, 96], strides = [1, 1, 1]} : vector<2x8x96xf32> to vector<2x1x96xf32>
    %410 = vector.shape_cast %409 : vector<2x1x96xf32> to vector<2x96xf32>
    %411 = vector.extract_strided_slice %410 {offsets = [0, 0], sizes = [2, 32], strides = [1, 1]} : vector<2x96xf32> to vector<2x32xf32>
    %412 = vector.extract_strided_slice %408 {offsets = [0, 0], sizes = [2, 32], strides = [1, 1]} : vector<2x96xf32> to vector<2x32xf32>
    %413 = arith.addf %411, %412 : vector<2x32xf32>
    %414 = arith.negf %413 : vector<2x32xf32>
    %415 = math.exp %414 : vector<2x32xf32>
    %cst_71 = arith.constant 1.000000e+00 : f32
    %416 = vector.broadcast %cst_71 : f32 to vector<2x32xf32>
    %417 = arith.addf %416, %415 : vector<2x32xf32>
    %418 = arith.divf %416, %417 : vector<2x32xf32>
    %419 = vector.extract_strided_slice %410 {offsets = [0, 32], sizes = [2, 32], strides = [1, 1]} : vector<2x96xf32> to vector<2x32xf32>
    %420 = vector.extract_strided_slice %408 {offsets = [0, 32], sizes = [2, 32], strides = [1, 1]} : vector<2x96xf32> to vector<2x32xf32>
    %421 = arith.addf %419, %420 : vector<2x32xf32>
    %422 = arith.negf %421 : vector<2x32xf32>
    %423 = math.exp %422 : vector<2x32xf32>
    %cst_72 = arith.constant 1.000000e+00 : f32
    %424 = vector.broadcast %cst_72 : f32 to vector<2x32xf32>
    %425 = arith.addf %424, %423 : vector<2x32xf32>
    %426 = arith.divf %424, %425 : vector<2x32xf32>
    %427 = vector.extract_strided_slice %410 {offsets = [0, 64], sizes = [2, 32], strides = [1, 1]} : vector<2x96xf32> to vector<2x32xf32>
    %428 = vector.extract_strided_slice %408 {offsets = [0, 64], sizes = [2, 32], strides = [1, 1]} : vector<2x96xf32> to vector<2x32xf32>
    %429 = arith.mulf %418, %428 : vector<2x32xf32>
    %430 = arith.addf %427, %429 : vector<2x32xf32>
    %431 = math.tanh %430 : vector<2x32xf32>
    %cst_73 = arith.constant 1.000000e+00 : f32
    %432 = vector.broadcast %cst_73 : f32 to vector<2x32xf32>
    %433 = arith.subf %432, %426 : vector<2x32xf32>
    %434 = arith.mulf %433, %431 : vector<2x32xf32>
    %435 = arith.mulf %426, %404 : vector<2x32xf32>
    %436 = arith.addf %434, %435 : vector<2x32xf32>
    %437 = arith.truncf %436 : vector<2x32xf32> to vector<2x32xbf16>
    %cst_74 = arith.constant dense<0.000000e+00> : vector<2x96xf32>
    %438 = tpu.matmul %437, %10, %cst_74 {dimension_numbers = #tpu.dot_dimension_numbers<[1], [0], [0], [1], [0, 0, 1, 1], [], []>} : vector<2x32xbf16>, vector<32x96xbf16>, vector<2x96xf32> -> vector<2x96xf32>
    %439 = vector.broadcast %12 : vector<1x96xf32> to vector<2x96xf32>
    %440 = arith.addf %438, %439 : vector<2x96xf32>
    %441 = vector.extract_strided_slice %308 {offsets = [0, 4, 0], sizes = [2, 1, 96], strides = [1, 1, 1]} : vector<2x8x96xf32> to vector<2x1x96xf32>
    %442 = vector.shape_cast %441 : vector<2x1x96xf32> to vector<2x96xf32>
    %443 = vector.extract_strided_slice %442 {offsets = [0, 0], sizes = [2, 32], strides = [1, 1]} : vector<2x96xf32> to vector<2x32xf32>
    %444 = vector.extract_strided_slice %440 {offsets = [0, 0], sizes = [2, 32], strides = [1, 1]} : vector<2x96xf32> to vector<2x32xf32>
    %445 = arith.addf %443, %444 : vector<2x32xf32>
    %446 = arith.negf %445 : vector<2x32xf32>
    %447 = math.exp %446 : vector<2x32xf32>
    %cst_75 = arith.constant 1.000000e+00 : f32
    %448 = vector.broadcast %cst_75 : f32 to vector<2x32xf32>
    %449 = arith.addf %448, %447 : vector<2x32xf32>
    %450 = arith.divf %448, %449 : vector<2x32xf32>
    %451 = vector.extract_strided_slice %442 {offsets = [0, 32], sizes = [2, 32], strides = [1, 1]} : vector<2x96xf32> to vector<2x32xf32>
    %452 = vector.extract_strided_slice %440 {offsets = [0, 32], sizes = [2, 32], strides = [1, 1]} : vector<2x96xf32> to vector<2x32xf32>
    %453 = arith.addf %451, %452 : vector<2x32xf32>
    %454 = arith.negf %453 : vector<2x32xf32>
    %455 = math.exp %454 : vector<2x32xf32>
    %cst_76 = arith.constant 1.000000e+00 : f32
    %456 = vector.broadcast %cst_76 : f32 to vector<2x32xf32>
    %457 = arith.addf %456, %455 : vector<2x32xf32>
    %458 = arith.divf %456, %457 : vector<2x32xf32>
    %459 = vector.extract_strided_slice %442 {offsets = [0, 64], sizes = [2, 32], strides = [1, 1]} : vector<2x96xf32> to vector<2x32xf32>
    %460 = vector.extract_strided_slice %440 {offsets = [0, 64], sizes = [2, 32], strides = [1, 1]} : vector<2x96xf32> to vector<2x32xf32>
    %461 = arith.mulf %450, %460 : vector<2x32xf32>
    %462 = arith.addf %459, %461 : vector<2x32xf32>
    %463 = math.tanh %462 : vector<2x32xf32>
    %cst_77 = arith.constant 1.000000e+00 : f32
    %464 = vector.broadcast %cst_77 : f32 to vector<2x32xf32>
    %465 = arith.subf %464, %458 : vector<2x32xf32>
    %466 = arith.mulf %465, %463 : vector<2x32xf32>
    %467 = arith.mulf %458, %436 : vector<2x32xf32>
    %468 = arith.addf %466, %467 : vector<2x32xf32>
    %469 = arith.truncf %468 : vector<2x32xf32> to vector<2x32xbf16>
    %cst_78 = arith.constant dense<0.000000e+00> : vector<2x96xf32>
    %470 = tpu.matmul %469, %10, %cst_78 {dimension_numbers = #tpu.dot_dimension_numbers<[1], [0], [0], [1], [0, 0, 1, 1], [], []>} : vector<2x32xbf16>, vector<32x96xbf16>, vector<2x96xf32> -> vector<2x96xf32>
    %471 = vector.broadcast %12 : vector<1x96xf32> to vector<2x96xf32>
    %472 = arith.addf %470, %471 : vector<2x96xf32>
    %473 = vector.extract_strided_slice %308 {offsets = [0, 5, 0], sizes = [2, 1, 96], strides = [1, 1, 1]} : vector<2x8x96xf32> to vector<2x1x96xf32>
    %474 = vector.shape_cast %473 : vector<2x1x96xf32> to vector<2x96xf32>
    %475 = vector.extract_strided_slice %474 {offsets = [0, 0], sizes = [2, 32], strides = [1, 1]} : vector<2x96xf32> to vector<2x32xf32>
    %476 = vector.extract_strided_slice %472 {offsets = [0, 0], sizes = [2, 32], strides = [1, 1]} : vector<2x96xf32> to vector<2x32xf32>
    %477 = arith.addf %475, %476 : vector<2x32xf32>
    %478 = arith.negf %477 : vector<2x32xf32>
    %479 = math.exp %478 : vector<2x32xf32>
    %cst_79 = arith.constant 1.000000e+00 : f32
    %480 = vector.broadcast %cst_79 : f32 to vector<2x32xf32>
    %481 = arith.addf %480, %479 : vector<2x32xf32>
    %482 = arith.divf %480, %481 : vector<2x32xf32>
    %483 = vector.extract_strided_slice %474 {offsets = [0, 32], sizes = [2, 32], strides = [1, 1]} : vector<2x96xf32> to vector<2x32xf32>
    %484 = vector.extract_strided_slice %472 {offsets = [0, 32], sizes = [2, 32], strides = [1, 1]} : vector<2x96xf32> to vector<2x32xf32>
    %485 = arith.addf %483, %484 : vector<2x32xf32>
    %486 = arith.negf %485 : vector<2x32xf32>
    %487 = math.exp %486 : vector<2x32xf32>
    %cst_80 = arith.constant 1.000000e+00 : f32
    %488 = vector.broadcast %cst_80 : f32 to vector<2x32xf32>
    %489 = arith.addf %488, %487 : vector<2x32xf32>
    %490 = arith.divf %488, %489 : vector<2x32xf32>
    %491 = vector.extract_strided_slice %474 {offsets = [0, 64], sizes = [2, 32], strides = [1, 1]} : vector<2x96xf32> to vector<2x32xf32>
    %492 = vector.extract_strided_slice %472 {offsets = [0, 64], sizes = [2, 32], strides = [1, 1]} : vector<2x96xf32> to vector<2x32xf32>
    %493 = arith.mulf %482, %492 : vector<2x32xf32>
    %494 = arith.addf %491, %493 : vector<2x32xf32>
    %495 = math.tanh %494 : vector<2x32xf32>
    %cst_81 = arith.constant 1.000000e+00 : f32
    %496 = vector.broadcast %cst_81 : f32 to vector<2x32xf32>
    %497 = arith.subf %496, %490 : vector<2x32xf32>
    %498 = arith.mulf %497, %495 : vector<2x32xf32>
    %499 = arith.mulf %490, %468 : vector<2x32xf32>
    %500 = arith.addf %498, %499 : vector<2x32xf32>
    %501 = arith.truncf %500 : vector<2x32xf32> to vector<2x32xbf16>
    %cst_82 = arith.constant dense<0.000000e+00> : vector<2x96xf32>
    %502 = tpu.matmul %501, %10, %cst_82 {dimension_numbers = #tpu.dot_dimension_numbers<[1], [0], [0], [1], [0, 0, 1, 1], [], []>} : vector<2x32xbf16>, vector<32x96xbf16>, vector<2x96xf32> -> vector<2x96xf32>
    %503 = vector.broadcast %12 : vector<1x96xf32> to vector<2x96xf32>
    %504 = arith.addf %502, %503 : vector<2x96xf32>
    %505 = vector.extract_strided_slice %308 {offsets = [0, 6, 0], sizes = [2, 1, 96], strides = [1, 1, 1]} : vector<2x8x96xf32> to vector<2x1x96xf32>
    %506 = vector.shape_cast %505 : vector<2x1x96xf32> to vector<2x96xf32>
    %507 = vector.extract_strided_slice %506 {offsets = [0, 0], sizes = [2, 32], strides = [1, 1]} : vector<2x96xf32> to vector<2x32xf32>
    %508 = vector.extract_strided_slice %504 {offsets = [0, 0], sizes = [2, 32], strides = [1, 1]} : vector<2x96xf32> to vector<2x32xf32>
    %509 = arith.addf %507, %508 : vector<2x32xf32>
    %510 = arith.negf %509 : vector<2x32xf32>
    %511 = math.exp %510 : vector<2x32xf32>
    %cst_83 = arith.constant 1.000000e+00 : f32
    %512 = vector.broadcast %cst_83 : f32 to vector<2x32xf32>
    %513 = arith.addf %512, %511 : vector<2x32xf32>
    %514 = arith.divf %512, %513 : vector<2x32xf32>
    %515 = vector.extract_strided_slice %506 {offsets = [0, 32], sizes = [2, 32], strides = [1, 1]} : vector<2x96xf32> to vector<2x32xf32>
    %516 = vector.extract_strided_slice %504 {offsets = [0, 32], sizes = [2, 32], strides = [1, 1]} : vector<2x96xf32> to vector<2x32xf32>
    %517 = arith.addf %515, %516 : vector<2x32xf32>
    %518 = arith.negf %517 : vector<2x32xf32>
    %519 = math.exp %518 : vector<2x32xf32>
    %cst_84 = arith.constant 1.000000e+00 : f32
    %520 = vector.broadcast %cst_84 : f32 to vector<2x32xf32>
    %521 = arith.addf %520, %519 : vector<2x32xf32>
    %522 = arith.divf %520, %521 : vector<2x32xf32>
    %523 = vector.extract_strided_slice %506 {offsets = [0, 64], sizes = [2, 32], strides = [1, 1]} : vector<2x96xf32> to vector<2x32xf32>
    %524 = vector.extract_strided_slice %504 {offsets = [0, 64], sizes = [2, 32], strides = [1, 1]} : vector<2x96xf32> to vector<2x32xf32>
    %525 = arith.mulf %514, %524 : vector<2x32xf32>
    %526 = arith.addf %523, %525 : vector<2x32xf32>
    %527 = math.tanh %526 : vector<2x32xf32>
    %cst_85 = arith.constant 1.000000e+00 : f32
    %528 = vector.broadcast %cst_85 : f32 to vector<2x32xf32>
    %529 = arith.subf %528, %522 : vector<2x32xf32>
    %530 = arith.mulf %529, %527 : vector<2x32xf32>
    %531 = arith.mulf %522, %500 : vector<2x32xf32>
    %532 = arith.addf %530, %531 : vector<2x32xf32>
    %533 = arith.truncf %532 : vector<2x32xf32> to vector<2x32xbf16>
    %cst_86 = arith.constant dense<0.000000e+00> : vector<2x96xf32>
    %534 = tpu.matmul %533, %10, %cst_86 {dimension_numbers = #tpu.dot_dimension_numbers<[1], [0], [0], [1], [0, 0, 1, 1], [], []>} : vector<2x32xbf16>, vector<32x96xbf16>, vector<2x96xf32> -> vector<2x96xf32>
    %535 = vector.broadcast %12 : vector<1x96xf32> to vector<2x96xf32>
    %536 = arith.addf %534, %535 : vector<2x96xf32>
    %537 = vector.extract_strided_slice %308 {offsets = [0, 7, 0], sizes = [2, 1, 96], strides = [1, 1, 1]} : vector<2x8x96xf32> to vector<2x1x96xf32>
    %538 = vector.shape_cast %537 : vector<2x1x96xf32> to vector<2x96xf32>
    %539 = vector.extract_strided_slice %538 {offsets = [0, 0], sizes = [2, 32], strides = [1, 1]} : vector<2x96xf32> to vector<2x32xf32>
    %540 = vector.extract_strided_slice %536 {offsets = [0, 0], sizes = [2, 32], strides = [1, 1]} : vector<2x96xf32> to vector<2x32xf32>
    %541 = arith.addf %539, %540 : vector<2x32xf32>
    %542 = arith.negf %541 : vector<2x32xf32>
    %543 = math.exp %542 : vector<2x32xf32>
    %cst_87 = arith.constant 1.000000e+00 : f32
    %544 = vector.broadcast %cst_87 : f32 to vector<2x32xf32>
    %545 = arith.addf %544, %543 : vector<2x32xf32>
    %546 = arith.divf %544, %545 : vector<2x32xf32>
    %547 = vector.extract_strided_slice %538 {offsets = [0, 32], sizes = [2, 32], strides = [1, 1]} : vector<2x96xf32> to vector<2x32xf32>
    %548 = vector.extract_strided_slice %536 {offsets = [0, 32], sizes = [2, 32], strides = [1, 1]} : vector<2x96xf32> to vector<2x32xf32>
    %549 = arith.addf %547, %548 : vector<2x32xf32>
    %550 = arith.negf %549 : vector<2x32xf32>
    %551 = math.exp %550 : vector<2x32xf32>
    %cst_88 = arith.constant 1.000000e+00 : f32
    %552 = vector.broadcast %cst_88 : f32 to vector<2x32xf32>
    %553 = arith.addf %552, %551 : vector<2x32xf32>
    %554 = arith.divf %552, %553 : vector<2x32xf32>
    %555 = vector.extract_strided_slice %538 {offsets = [0, 64], sizes = [2, 32], strides = [1, 1]} : vector<2x96xf32> to vector<2x32xf32>
    %556 = vector.extract_strided_slice %536 {offsets = [0, 64], sizes = [2, 32], strides = [1, 1]} : vector<2x96xf32> to vector<2x32xf32>
    %557 = arith.mulf %546, %556 : vector<2x32xf32>
    %558 = arith.addf %555, %557 : vector<2x32xf32>
    %559 = math.tanh %558 : vector<2x32xf32>
    %cst_89 = arith.constant 1.000000e+00 : f32
    %560 = vector.broadcast %cst_89 : f32 to vector<2x32xf32>
    %561 = arith.subf %560, %554 : vector<2x32xf32>
    %562 = arith.mulf %561, %559 : vector<2x32xf32>
    %563 = arith.mulf %554, %532 : vector<2x32xf32>
    %564 = arith.addf %562, %563 : vector<2x32xf32>
    %565 = vector.shape_cast %340 : vector<2x32xf32> to vector<2x1x32xf32>
    %566 = vector.shape_cast %372 : vector<2x32xf32> to vector<2x1x32xf32>
    %567 = vector.shape_cast %404 : vector<2x32xf32> to vector<2x1x32xf32>
    %568 = vector.shape_cast %436 : vector<2x32xf32> to vector<2x1x32xf32>
    %569 = vector.shape_cast %468 : vector<2x32xf32> to vector<2x1x32xf32>
    %570 = vector.shape_cast %500 : vector<2x32xf32> to vector<2x1x32xf32>
    %571 = vector.shape_cast %532 : vector<2x32xf32> to vector<2x1x32xf32>
    %572 = vector.shape_cast %564 : vector<2x32xf32> to vector<2x1x32xf32>
    %573 = tpu.concatenate %565, %566, %567, %568, %569, %570, %571, %572 in 1 : vector<2x1x32xf32>, vector<2x1x32xf32>, vector<2x1x32xf32>, vector<2x1x32xf32>, vector<2x1x32xf32>, vector<2x1x32xf32>, vector<2x1x32xf32>, vector<2x1x32xf32> -> vector<2x8x32xf32>
    "tpu.trace_start"() <{level = 10 : i32, message = "bqh,bkh->bqk"}> : () -> ()
    %cst_90 = arith.constant dense<0.000000e+00> : vector<2x8x8xf32>
    %574 = tpu.matmul %573, %282, %cst_90 {dimension_numbers = #tpu.dot_dimension_numbers<[2], [2], [1], [1], [0, 0, 0, 1, 1, 1], [0], [0]>} : vector<2x8x32xf32>, vector<2x8x32xf32>, vector<2x8x8xf32> -> vector<2x8x8xf32>
    "tpu.trace_stop"() : () -> ()
    %cst_91 = arith.constant dense<0xFF800000> : vector<2x8xf32>
    %575 = vector.multi_reduction <maximumf>, %574, %cst_91 [2] : vector<2x8x8xf32> to vector<2x8xf32>
    %576 = vector.shape_cast %575 : vector<2x8xf32> to vector<2x8x1xf32>
    %577 = vector.broadcast %576 : vector<2x8x1xf32> to vector<2x8x8xf32>
    %578 = arith.subf %574, %577 : vector<2x8x8xf32>
    %579 = math.exp %578 : vector<2x8x8xf32>
    %cst_92 = arith.constant dense<0.000000e+00> : vector<2x8xf32>
    %580 = vector.multi_reduction <add>, %579, %cst_92 [2] : vector<2x8x8xf32> to vector<2x8xf32>
    %581 = vector.shape_cast %580 : vector<2x8xf32> to vector<2x8x1xf32>
    %582 = tpu.reciprocal %581 {approx = true} : vector<2x8x1xf32> -> vector<2x8x1xf32>
    %583 = vector.broadcast %582 : vector<2x8x1xf32> to vector<2x8x8xf32>
    %584 = arith.mulf %579, %583 : vector<2x8x8xf32>
    "tpu.trace_start"() <{level = 10 : i32, message = "bqk,bkh->bqh"}> : () -> ()
    %cst_93 = arith.constant dense<0.000000e+00> : vector<2x8x32xf32>
    %585 = tpu.matmul %584, %282, %cst_93 {dimension_numbers = #tpu.dot_dimension_numbers<[2], [1], [1], [2], [0, 0, 0, 1, 1, 2], [0], [0]>} : vector<2x8x8xf32>, vector<2x8x32xf32>, vector<2x8x32xf32> -> vector<2x8x32xf32>
    "tpu.trace_stop"() : () -> ()
    %c64_94 = arith.constant 64 : index
    %c0_95 = arith.constant 0 : index
    %586 = vector.load %arg3[%c64_94, %c0_95] : memref<136x32xf32, #tpu.memory_space<vmem>>, vector<32x32xf32>
    %c96_96 = arith.constant 96 : index
    %c0_97 = arith.constant 0 : index
    %587 = vector.load %arg3[%c96_96, %c0_97] : memref<136x32xf32, #tpu.memory_space<vmem>>, vector<32x32xf32>
    %c128_98 = arith.constant 128 : index
    %c0_99 = arith.constant 0 : index
    %588 = vector.load %arg3[%c128_98, %c0_99] : memref<136x32xf32, #tpu.memory_space<vmem>>, vector<1x32xf32>
    %c0_100 = arith.constant 0 : index
    %c0_101 = arith.constant 0 : index
    %589 = vector.load %arg4[%c0_100, %c0_101] : memref<104x3xf32, #tpu.memory_space<vmem>>, vector<32x3xf32>
    %c32 = arith.constant 32 : index
    %c0_102 = arith.constant 0 : index
    %590 = vector.load %arg4[%c32, %c0_102] : memref<104x3xf32, #tpu.memory_space<vmem>>, vector<1x3xf32>
    %591 = vector.shape_cast %573 : vector<2x8x32xf32> to vector<16x32xf32>
    %592 = vector.shape_cast %585 : vector<2x8x32xf32> to vector<16x32xf32>
    %cst_103 = arith.constant dense<0.000000e+00> : vector<16x32xf32>
    %593 = tpu.matmul %591, %586, %cst_103 {dimension_numbers = #tpu.dot_dimension_numbers<[1], [0], [0], [1], [0, 0, 1, 1], [], []>} : vector<16x32xf32>, vector<32x32xf32>, vector<16x32xf32> -> vector<16x32xf32>
    %cst_104 = arith.constant dense<0.000000e+00> : vector<16x32xf32>
    %594 = tpu.matmul %592, %587, %cst_104 {dimension_numbers = #tpu.dot_dimension_numbers<[1], [0], [0], [1], [0, 0, 1, 1], [], []>} : vector<16x32xf32>, vector<32x32xf32>, vector<16x32xf32> -> vector<16x32xf32>
    %595 = arith.addf %593, %594 : vector<16x32xf32>
    %596 = vector.broadcast %588 : vector<1x32xf32> to vector<16x32xf32>
    %597 = arith.addf %595, %596 : vector<16x32xf32>
    %598 = math.tanh %597 : vector<16x32xf32>
    %cst_105 = arith.constant dense<0.000000e+00> : vector<16x3xf32>
    %599 = tpu.matmul %598, %589, %cst_105 {dimension_numbers = #tpu.dot_dimension_numbers<[1], [0], [0], [1], [0, 0, 1, 1], [], []>} : vector<16x32xf32>, vector<32x3xf32>, vector<16x3xf32> -> vector<16x3xf32>
    %600 = vector.broadcast %590 : vector<1x3xf32> to vector<16x3xf32>
    %601 = arith.addf %599, %600 : vector<16x3xf32>
    %602 = math.tanh %601 : vector<16x3xf32>
    %603 = vector.extract_strided_slice %0 {offsets = [0, 0, 20], sizes = [2, 8, 6], strides = [1, 1, 1]} : vector<2x8x26xf32> to vector<2x8x6xf32>
    %604 = vector.shape_cast %603 : vector<2x8x6xf32> to vector<16x6xf32>
    %c40 = arith.constant 40 : index
    %c0_106 = arith.constant 0 : index
    %605 = vector.load %arg4[%c40, %c0_106] : memref<104x3xf32, #tpu.memory_space<vmem>>, vector<9x3xf32>
    %c56_107 = arith.constant 56 : index
    %c0_108 = arith.constant 0 : index
    %606 = vector.load %arg4[%c56_107, %c0_108] : memref<104x3xf32, #tpu.memory_space<vmem>>, vector<18x3xf32>
    %c80 = arith.constant 80 : index
    %c0_109 = arith.constant 0 : index
    %607 = vector.load %arg4[%c80, %c0_109] : memref<104x3xf32, #tpu.memory_space<vmem>>, vector<1x3xf32>
    %608 = vector.extract_strided_slice %605 {offsets = [0, 0], sizes = [3, 3], strides = [1, 1]} : vector<9x3xf32> to vector<3x3xf32>
    %cst_110 = arith.constant dense<0.000000e+00> : vector<16x3xf32>
    %609 = tpu.matmul %602, %608, %cst_110 {dimension_numbers = #tpu.dot_dimension_numbers<[1], [0], [0], [1], [0, 0, 1, 1], [], []>} : vector<16x3xf32>, vector<3x3xf32>, vector<16x3xf32> -> vector<16x3xf32>
    %610 = vector.extract_strided_slice %606 {offsets = [0, 0], sizes = [6, 3], strides = [1, 1]} : vector<18x3xf32> to vector<6x3xf32>
    %cst_111 = arith.constant dense<0.000000e+00> : vector<16x3xf32>
    %611 = tpu.matmul %604, %610, %cst_111 {dimension_numbers = #tpu.dot_dimension_numbers<[1], [0], [0], [1], [0, 0, 1, 1], [], []>} : vector<16x6xf32>, vector<6x3xf32>, vector<16x3xf32> -> vector<16x3xf32>
    %612 = arith.addf %609, %611 : vector<16x3xf32>
    %613 = vector.shape_cast %612 : vector<16x3xf32> to vector<2x8x3xf32>
    %614 = vector.extract_strided_slice %605 {offsets = [3, 0], sizes = [3, 3], strides = [1, 1]} : vector<9x3xf32> to vector<3x3xf32>
    %cst_112 = arith.constant dense<0.000000e+00> : vector<16x3xf32>
    %615 = tpu.matmul %602, %614, %cst_112 {dimension_numbers = #tpu.dot_dimension_numbers<[1], [0], [0], [1], [0, 0, 1, 1], [], []>} : vector<16x3xf32>, vector<3x3xf32>, vector<16x3xf32> -> vector<16x3xf32>
    %616 = vector.extract_strided_slice %606 {offsets = [6, 0], sizes = [6, 3], strides = [1, 1]} : vector<18x3xf32> to vector<6x3xf32>
    %cst_113 = arith.constant dense<0.000000e+00> : vector<16x3xf32>
    %617 = tpu.matmul %604, %616, %cst_113 {dimension_numbers = #tpu.dot_dimension_numbers<[1], [0], [0], [1], [0, 0, 1, 1], [], []>} : vector<16x6xf32>, vector<6x3xf32>, vector<16x3xf32> -> vector<16x3xf32>
    %618 = arith.addf %615, %617 : vector<16x3xf32>
    %619 = vector.shape_cast %618 : vector<16x3xf32> to vector<2x8x3xf32>
    %620 = vector.extract_strided_slice %605 {offsets = [6, 0], sizes = [3, 3], strides = [1, 1]} : vector<9x3xf32> to vector<3x3xf32>
    %cst_114 = arith.constant dense<0.000000e+00> : vector<16x3xf32>
    %621 = tpu.matmul %602, %620, %cst_114 {dimension_numbers = #tpu.dot_dimension_numbers<[1], [0], [0], [1], [0, 0, 1, 1], [], []>} : vector<16x3xf32>, vector<3x3xf32>, vector<16x3xf32> -> vector<16x3xf32>
    %622 = vector.extract_strided_slice %606 {offsets = [12, 0], sizes = [6, 3], strides = [1, 1]} : vector<18x3xf32> to vector<6x3xf32>
    %cst_115 = arith.constant dense<0.000000e+00> : vector<16x3xf32>
    %623 = tpu.matmul %604, %622, %cst_115 {dimension_numbers = #tpu.dot_dimension_numbers<[1], [0], [0], [1], [0, 0, 1, 1], [], []>} : vector<16x6xf32>, vector<6x3xf32>, vector<16x3xf32> -> vector<16x3xf32>
    %624 = arith.addf %621, %623 : vector<16x3xf32>
    %625 = vector.shape_cast %624 : vector<16x3xf32> to vector<2x8x3xf32>
    %cst_116 = arith.constant 0.000000e+00 : f32
    %626 = vector.broadcast %cst_116 : f32 to vector<2x1x3xf32>
    %627 = vector.extract_strided_slice %613 {offsets = [0, 0, 0], sizes = [2, 7, 3], strides = [1, 1, 1]} : vector<2x8x3xf32> to vector<2x7x3xf32>
    %628 = tpu.concatenate %626, %627 in 1 : vector<2x1x3xf32>, vector<2x7x3xf32> -> vector<2x8x3xf32>
    %629 = arith.addf %628, %619 : vector<2x8x3xf32>
    %630 = vector.extract_strided_slice %625 {offsets = [0, 1, 0], sizes = [2, 7, 3], strides = [1, 1, 1]} : vector<2x8x3xf32> to vector<2x7x3xf32>
    %631 = tpu.concatenate %630, %626 in 1 : vector<2x7x3xf32>, vector<2x1x3xf32> -> vector<2x8x3xf32>
    %632 = arith.addf %629, %631 : vector<2x8x3xf32>
    %633 = vector.shape_cast %607 : vector<1x3xf32> to vector<1x1x3xf32>
    %634 = vector.broadcast %633 : vector<1x1x3xf32> to vector<2x8x3xf32>
    %635 = arith.addf %632, %634 : vector<2x8x3xf32>
    %c0_117 = arith.constant 0 : index
    %c0_118 = arith.constant 0 : index
    %c0_119 = arith.constant 0 : index
    %636 = vector.load %arg5[%c0_117, %c0_118, %c0_119] : memref<2x8x3xf32, #tpu.memory_space<vmem>>, vector<2x8x3xf32>
    tpu.vector_store %arg5[%c0_117, %c0_118, %c0_119], %635 {strides = array<i32>} : memref<2x8x3xf32, #tpu.memory_space<vmem>>, vector<2x8x3xf32>,
    return
  }
  func.func @transform_0(%arg0: i32) -> (i32, i32, i32) {
    %c0_i32 = arith.constant 0 : i32
    %c0_i32_0 = arith.constant 0 : i32
    %c0_i32_1 = arith.constant 0 : i32
    %c0_i32_2 = arith.constant 0 : i32
    return %c0_i32, %c0_i32_0, %c0_i32_1 : i32, i32, i32
  }
  func.func @transform_1(%arg0: i32) -> (i32, i32) {
    %c0_i32 = arith.constant 0 : i32
    %c0_i32_0 = arith.constant 0 : i32
    %c0_i32_1 = arith.constant 0 : i32
    return %c0_i32, %c0_i32_0 : i32, i32
  }
  func.func @transform_2(%arg0: i32) -> (i32, i32) {
    %c0_i32 = arith.constant 0 : i32
    %c0_i32_0 = arith.constant 0 : i32
    %c0_i32_1 = arith.constant 0 : i32
    return %c0_i32, %c0_i32_0 : i32, i32
  }
  func.func @transform_3(%arg0: i32) -> (i32, i32) {
    %c0_i32 = arith.constant 0 : i32
    %c0_i32_0 = arith.constant 0 : i32
    %c0_i32_1 = arith.constant 0 : i32
    return %c0_i32, %c0_i32_0 : i32, i32
  }
  func.func @transform_4(%arg0: i32) -> (i32, i32, i32) {
    %c0_i32 = arith.constant 0 : i32
    %c0_i32_0 = arith.constant 0 : i32
    %c0_i32_1 = arith.constant 0 : i32
    %c0_i32_2 = arith.constant 0 : i32
    return %c0_i32, %c0_i32_0, %c0_i32_1 : i32, i32, i32
  }
}

</mosaic_0001>

<bundles_post_ra>
// kernel: seq2seq_forward.1
= control target key start
LH: loop header
LB: loop body
LE: loop exit
PB: predicated region body
PF: predicated region fallthrough
CT: control target
= control target key end

     0   :  { %vm50_vm0 = vcmask 1041408   ;;  %vm43_vm1 = vcmask 80896   ;;  %v2811_v10 = vmov 0   ;;  %s2812_s7 = smov 64   ;;  %s2813_s10 = smov 96   ;;  %vm182_vm10 = vcmask 1041409   ;;  %s3546_s1 = inlined_call_operand.vmem [shape: f32[144,96], index: 1, kind: input, shape index: {}]   ;;  %s3547_s0 = inlined_call_operand.vmem [shape: f32[2,8,26], index: 0, kind: input, shape index: {}]   ;;  %s3548_s2 = inlined_call_operand.vmem [shape: f32[136,32], index: 2, kind: input, shape index: {}]   ;;  %s3549_s3 = inlined_call_operand.vmem [shape: f32[104,3], index: 3, kind: input, shape index: {}]   ;;  %s3550_s4 = inlined_call_operand.vmem [shape: f32[2,8,3], index: 4, kind: output, shape index: {}]  }
   0x1   :  { %v21_v0 = vld [vmem:[%s3546_s1 + $0x8] sm:$0x3]  ;;  %v20_v1 = vld [vmem:[%s3546_s1] sm:$0xff]  ;;  %v22_v5 = vld [vmem:[%s3546_s1 + $0x10] sm:$0xff]  ;;  %vm78_vm11 = vcmask 261120   ;;  %s2814_s15 = smov 118  }
   0x2   :  { %v19_v2 = vld [vmem:[%s3547_s0 + $0x8] sm:$0xff]  ;;  %2581 = vmatpush.msk.msra.mxu1 %vm50_vm0, %v21_v0  ;;  %v24_v3 = vld [vmem:[%s3546_s1 + $0x20] sm:$0xff]  ;;  %2494 = vmatpush.msk.msra.mxu0 %vm50_vm0, %v21_v0  ;;  %v23_v7 = vld [vmem:[%s3546_s1 + $0x18] sm:$0xff]  ;;  %s2815_s23 = smov 108  }
   0x3   :  { %v25_v4 = vld [vmem:[%s3546_s1 + $0x28] sm:$0xff]  ;;  %v18_v8 = vld [vmem:[%s3547_s0] sm:$0xff]  ;;  %v26_v9 = vpack.c.bf16 %v23_v7, %v22_v5  ;;  %v2872_v12 = vld [vmem:[%s3546_s1 + $0x38] ss:$0 sm:$0xff] }
   0x4   :  { %v27_v6 = vpack.c.bf16 %v25_v4, %v24_v3  ;;  %2582 = vmatpush.msra.mxu1 %v20_v1  ;;  %69 = vmatpush.msra.mxu0 %v20_v1  ;;  %v2588_v17 = vld [vmem:[%s3546_s1 + $0x30] ss:$0 sm:$0xff] }
   0x5   :  { %2496 = vmatmul.msk.f32.vlgmr.msra.gmra.mxu1 %vm43_vm1, %v19_v2  ;;  %2495 = vmatmul.msk.f32.vlgmr.msra.gmra.mxu0 %vm43_vm1, %v18_v8 }
   0x6   :  { %88 = vmatpush.bf16.msrb.mxu1 %v27_v6  ;;  %196 = vmatpush.bf16.msra.mxu2 %v27_v6 }
   0x7   :  { %309 = vmatpush.bf16.msra.mxu3 %v27_v6  ;;  %424 = vmatpush.bf16.msrb.mxu0 %v27_v6 }
   0xa   :  { %89 = vmatpush.bf16.msrb.mxu1 %v26_v9  ;;  %197 = vmatpush.bf16.msra.mxu2 %v26_v9 }
   0xb   :  { %310 = vmatpush.bf16.msra.mxu3 %v26_v9  ;;  %425 = vmatpush.bf16.msrb.mxu0 %v26_v9 }
   0xd   :  { %90 = vmatmul.bf16.vlgmr.msrb.gmra.mxu1 %v2811_v10 }
   0xe   :  { %539 = vmatpush.bf16.msra.mxu1 %v27_v6  ;;  %654 = vmatpush.bf16.msrb.mxu2 %v27_v6 }
   0xf   :  { %769 = vmatpush.bf16.msrb.mxu3 %v27_v6  ;;  %884 = vmatpush.bf16.msra.mxu0 %v27_v6 }
  0x12   :  { %540 = vmatpush.bf16.msra.mxu1 %v26_v9  ;;  %655 = vmatpush.bf16.msrb.mxu2 %v26_v9 }
  0x13   :  { %770 = vmatpush.bf16.msrb.mxu3 %v26_v9  ;;  %885 = vmatpush.bf16.msra.mxu0 %v26_v9 }
  0x82   :  { %v74_v11 = vpop.f32.mrf.mxu1  ;;  %v71_v20 = vpop.f32.mrf.mxu0 }
  0x83   :  { %v2880_v18 = vadd.f32 %v2588_v17, %v74_v11  ;;  %v2883_v21 = vadd.f32 %v2588_v17, %v71_v20 }
  0x8a   :  { %v91_v13 = vpop.f32.mrf.mxu1 }
  0x8b   :  { %v92_v14 = vadd.f32 %v2872_v12, %v91_v13 }
  0x8d   :  { %v96_v15 = vrot.slane %v92_v14, 1  ;;  %v99_v23 = vadd.f32 %v92_v14, %v2883_v21 }
  0x8f   :  { %141 = vrot.lane.b32.xlu0 %v96_v15, %s2812_s7  ;;  %v100_v19 = vadd.f32 %v96_v15, %v2880_v18  ;;  %v2497_v24 = vmul.f32 -1.442695, %v99_v23 }
  0x91   :  { %v2498_v22 = vmul.f32 -1.442695, %v100_v19 }
  0x92   :  { %v93_v16 = vpop.f32.mrf.mxu1 }
  0x93   :  { %2597 = vpow2.f32 %v2498_v22 }
  0x94   :  { %2599 = vpow2.f32 %v2497_v24 }
  0x97   :  { %139 = vrot.lane.b32.xlu0 %v92_v14, %s2812_s7 }
  0x99   :  { %v2598_v25 = vpop.eup %2597 }
  0x9a   :  { %v108_v26 = vadd.f32 1.0, %v2598_v25  ;;  %v2600_v27 = vpop.eup %2599 }
  0x9b   :  { %v107_v28 = vadd.f32 1.0, %v2600_v27 }
  0x9c   :  { %2601 = vrcp.f32 %v108_v26  ;;  %v135_v37 = vand.u32 2147483648, %v108_v26  ;;  %vm129_vm3 = vweird.f32 %v108_v26  ;;  %v133_v38 = vand.u32 2147483647, %v108_v26 }
  0x9d   :  { %2603 = vrcp.f32 %v107_v28  ;;  %v120_v46 = vand.u32 2147483648, %v107_v28  ;;  %vm114_vm7 = vweird.f32 %v107_v28  ;;  %v118_v47 = vand.u32 2147483647, %v107_v28 }
  0x9e   :  { %v136_v41 = vor.u32 1.1754944e-38, %v135_v37  ;;  %vm134_vm5 = vcmp.eq.f32.partialorder %v133_v38, 8.507059e+37 }
  0x9f   :  { %v121_v49 = vor.u32 1.1754944e-38, %v120_v46  ;;  %vm119_vm9 = vcmp.eq.f32.partialorder %v118_v47, 8.507059e+37 }
  0xa2   :  { %v2602_v29 = vpop.eup %2601 }
  0xa3   :  { %v125_v30 = vmul.f32 %v2602_v29, %v108_v26  ;;  %v2604_v32 = vpop.eup %2603  ;;  %vm130_vm2 = vweird.f32 %v2602_v29 }
  0xa4   :  { %v110_v34 = vmul.f32 %v2604_v32, %v107_v28  ;;  %vm131_vm4 = vmor %vm129_vm3, %vm130_vm2  ;;  %vm115_vm6 = vweird.f32 %v2604_v32 }
  0xa5   :  { %v126_v31 = vsub.f32 1.0, %v125_v30  ;;  %vm116_vm8 = vmor %vm114_vm7, %vm115_vm6 }
  0xa6   :  { %v111_v36 = vsub.f32 1.0, %v110_v34 }
  0xa7   :  { %v127_v33 = vmul.f32 %v2602_v29, %v126_v31 }
  0xa8   :  { %v112_v40 = vmul.f32 %v2604_v32, %v111_v36 }
  0xa9   :  { %v128_v35 = vadd.f32 %v2602_v29, %v127_v33 }
  0xaa   :  { %v113_v45 = vadd.f32 %v2604_v32, %v112_v40 }
  0xab   :  { %v132_v39 = vsel %vm131_vm4, %v2602_v29, %v128_v35 }
  0xac   :  { %v137_v43 = vsel %vm134_vm5, %v136_v41, %v132_v39  ;;  %v117_v48 = vsel %vm116_vm8, %v2604_v32, %v113_v45 }
  0xad   :  { %v122_v51 = vsel %vm119_vm9, %v121_v49, %v117_v48  ;;  %v160_v59 = vsub.f32 1.0, %v137_v43  ;;  %v172_v61 = vmul.f32 0.0, %v137_v43 }
  0xae   :  { %v159_v1 = vsub.f32 1.0, %v122_v51  ;;  %v171_v3 = vmul.f32 0.0, %v122_v51 }
 0x101   :  { %v142_v42 = vpop.permute.xlu0 %141 }
 0x102   :  { %v146_v44 = vmul.f32 %v142_v42, %v137_v43 }
 0x104   :  { %151 = vrot.lane.b32.xlu1 %v146_v44, %s2812_s7 }
 0x109   :  { %v140_v50 = vpop.permute.xlu0 %139 }
 0x10a   :  { %v145_v52 = vmul.f32 %v140_v50, %v122_v51 }
 0x10c   :  { %149 = vrot.lane.b32.xlu1 %v145_v52, %s2812_s7 }
 0x176   :  { %v152_v53 = vpop.permute.xlu1 %151 }
 0x177   :  { %v156_v54 = vadd.f32 %v152_v53, %v2880_v18 }
 0x179   :  { %2605 = vtanh.f32 %v156_v54 }
 0x17e   :  { %v150_v55 = vpop.permute.xlu1 %149 }
 0x17f   :  { %v2606_v56 = vpop.eup %2605  ;;  %v155_v57 = vadd.f32 %v150_v55, %v2883_v21 }
 0x180   :  { %165 = vrot.lane.b32.xlu2 %v2606_v56, %s2813_s10 }
 0x181   :  { %2607 = vtanh.f32 %v155_v57 }
 0x187   :  { %v2608_v58 = vpop.eup %2607 }
 0x188   :  { %163 = vrot.lane.b32.xlu2 %v2608_v58, %s2813_s10 }
 0x1da   :  { %v166_v60 = vpop.permute.xlu2 %165 }
 0x1db   :  { %v170_v62 = vmul.f32 %v166_v60, %v160_v59 }
 0x1dd   :  { %v2892_v63 = vadd.f32 %v172_v61, %v170_v62 }
 0x1df   :  { %v176_v0 = vpack.c.bf16 %v2892_v63, %v2892_v63  ;;  %v282_v59 = vrot.slane %v2892_v63, 7 }
 0x1e1   :  { %v180_v5 = vunpack.c.l.b16 %v176_v0 }
 0x1e2   :  { %v164_v2 = vpop.permute.xlu2 %163 }
 0x1e3   :  { %v169_v4 = vmul.f32 %v164_v2, %v159_v1  ;;  %v181_v8 = vrot.slane %v180_v5, 7 }
 0x1e5   :  { %v2896_v6 = vadd.f32 %v171_v3, %v169_v4 }
 0x1e7   :  { %v175_v7 = vpack.c.bf16 %v2896_v6, %v2896_v6  ;;  %v281_v1 = vrot.slane %v2896_v6, 7 }
 0x1e9   :  { %v179_v9 = vunpack.c.l.b16 %v175_v7 }
 0x1eb   :  { %v183_v10 = vsel %vm182_vm10, %v181_v8, %v179_v9 }
 0x1ec   :  { %v184_v11 = vpack.c.b16 %v183_v10, %v183_v10 }
 0x1ee   :  { %185 = vrot.lane.b32.xlu0 %v184_v11, %s2813_s10 }
 0x260   :  { %v186_v13 = vpop.permute.xlu0 %185 }
 0x261   :  { %2499 = vmatmul.msk.bf16.vlgmr.msra.gmra.mxu2 %vm78_vm11, %v186_v13 }
 0x2e4   :  { %v199_v14 = vpop.f32.mrf.mxu2 }
 0x2e5   :  { %v200_v15 = vadd.f32 %v2872_v12, %v199_v14 }
 0x2e7   :  { %249 = vrot.lane.b32.xlu2 %v200_v15, %s2812_s7  ;;  %v204_v16 = vrot.slane %v200_v15, 7  ;;  %v208_v19 = vadd.f32 %v200_v15, %v2880_v18 }
 0x2e9   :  { %247 = vrot.lane.b32.xlu1 %v204_v16, %s2812_s7  ;;  %v2501_v20 = vmul.f32 -1.442695, %v208_v19  ;;  %v207_v24 = vadd.f32 %v204_v16, %v2883_v21 }
 0x2eb   :  { %2609 = vpow2.f32 %v2501_v20  ;;  %v2500_v26 = vmul.f32 -1.442695, %v207_v24 }
 0x2ec   :  { %v201_v17 = vpop.f32.mrf.mxu2 }
 0x2f1   :  { %v2610_v22 = vpop.eup %2609 }
 0x2f2   :  { %v216_v23 = vadd.f32 1.0, %v2610_v22 }
 0x2f4   :  { %2611 = vrcp.f32 %v216_v23  ;;  %v243_v33 = vand.u32 2147483648, %v216_v23  ;;  %vm237_vm13 = vweird.f32 %v216_v23  ;;  %v241_v34 = vand.u32 2147483647, %v216_v23 }
 0x2f5   :  { %2613 = vpow2.f32 %v2500_v26 }
 0x2f6   :  { %v244_v36 = vor.u32 1.1754944e-38, %v243_v33  ;;  %vm242_vm15 = vcmp.eq.f32.partialorder %v241_v34, 8.507059e+37 }
 0x2fa   :  { %v2612_v25 = vpop.eup %2611 }
 0x2fb   :  { %v233_v27 = vmul.f32 %v2612_v25, %v216_v23  ;;  %v2614_v30 = vpop.eup %2613  ;;  %vm238_vm12 = vweird.f32 %v2612_v25 }
 0x2fc   :  { %v215_v32 = vadd.f32 1.0, %v2614_v30  ;;  %vm239_vm14 = vmor %vm237_vm13, %vm238_vm12 }
 0x2fd   :  { %v234_v28 = vsub.f32 1.0, %v233_v27 }
 0x2fe   :  { %2615 = vrcp.f32 %v215_v32  ;;  %v228_v45 = vand.u32 2147483648, %v215_v32  ;;  %vm222_vm3 = vweird.f32 %v215_v32  ;;  %v226_v46 = vand.u32 2147483647, %v215_v32 }
 0x2ff   :  { %v235_v29 = vmul.f32 %v2612_v25, %v234_v28 }
 0x300   :  { %v229_v48 = vor.u32 1.1754944e-38, %v228_v45  ;;  %vm227_vm5 = vcmp.eq.f32.partialorder %v226_v46, 8.507059e+37 }
 0x301   :  { %v236_v31 = vadd.f32 %v2612_v25, %v235_v29 }
 0x303   :  { %v240_v35 = vsel %vm239_vm14, %v2612_v25, %v236_v31 }
 0x304   :  { %v245_v38 = vsel %vm242_vm15, %v244_v36, %v240_v35  ;;  %v2616_v40 = vpop.eup %2615 }
 0x305   :  { %v218_v41 = vmul.f32 %v2616_v40, %v215_v32  ;;  %vm223_vm2 = vweird.f32 %v2616_v40  ;;  %v268_v58 = vsub.f32 1.0, %v245_v38  ;;  %v286_v61 = vmul.f32 %v282_v59, %v245_v38 }
 0x306   :  { %vm224_vm4 = vmor %vm222_vm3, %vm223_vm2  ;;  %vm978_vm2 = vcmask 1040384  }
 0x307   :  { %v219_v42 = vsub.f32 1.0, %v218_v41 }
 0x309   :  { %v220_v43 = vmul.f32 %v2616_v40, %v219_v42 }
 0x30b   :  { %v221_v44 = vadd.f32 %v2616_v40, %v220_v43 }
 0x30d   :  { %v225_v47 = vsel %vm224_vm4, %v2616_v40, %v221_v44 }
 0x30e   :  { %v230_v50 = vsel %vm227_vm5, %v229_v48, %v225_v47 }
 0x30f   :  { %v267_v0 = vsub.f32 1.0, %v230_v50  ;;  %v285_v4 = vmul.f32 %v281_v1, %v230_v50 }
 0x341   :  { %v250_v37 = vpop.permute.xlu2 %249 }
 0x342   :  { %v254_v39 = vmul.f32 %v250_v37, %v245_v38 }
 0x344   :  { %259 = vrot.lane.b32.xlu1 %v254_v39, %s2812_s7 }
 0x35b   :  { %v248_v49 = vpop.permute.xlu1 %247 }
 0x35c   :  { %v253_v51 = vmul.f32 %v248_v49, %v230_v50 }
 0x35e   :  { %257 = vrot.lane.b32.xlu0 %v253_v51, %s2812_s7 }
 0x3b6   :  { %v260_v52 = vpop.permute.xlu1 %259 }
 0x3b7   :  { %v264_v53 = vadd.f32 %v260_v52, %v2880_v18 }
 0x3b9   :  { %2617 = vtanh.f32 %v264_v53 }
 0x3bf   :  { %v2618_v54 = vpop.eup %2617 }
 0x3c0   :  { %273 = vrot.lane.b32.xlu0 %v2618_v54, %s2813_s10 }
 0x3d0   :  { %v258_v55 = vpop.permute.xlu0 %257 }
 0x3d1   :  { %v263_v56 = vadd.f32 %v258_v55, %v2883_v21 }
 0x3d3   :  { %2619 = vtanh.f32 %v263_v56 }
 0x3d9   :  { %v2620_v57 = vpop.eup %2619 }
 0x3da   :  { %271 = vrot.lane.b32.xlu2 %v2620_v57, %s2813_s10 }
 0x432   :  { %v274_v60 = vpop.permute.xlu0 %273 }
 0x433   :  { %v278_v62 = vmul.f32 %v274_v60, %v268_v58 }
 0x434   :  { %v272_v2 = vpop.permute.xlu2 %271 }
 0x435   :  { %v2916_v3 = vadd.f32 %v286_v61, %v278_v62  ;;  %v277_v5 = vmul.f32 %v272_v2, %v267_v0 }
 0x437   :  { %v2918_v7 = vadd.f32 %v285_v4, %v277_v5  ;;  %v290_v8 = vpack.c.bf16 %v2916_v3, %v2916_v3  ;;  %v396_v2 = vrot.slane %v2916_v3, 7 }
 0x439   :  { %v289_v9 = vpack.c.bf16 %v2918_v7, %v2918_v7  ;;  %v294_v11 = vunpack.c.l.b16 %v290_v8  ;;  %v395_v37 = vrot.slane %v2918_v7, 7 }
 0x43b   :  { %v293_v10 = vunpack.c.l.b16 %v289_v9 }
 0x43d   :  { %v295_v13 = vrot.slane %v293_v10, 1 }
 0x43f   :  { %v296_v14 = vsel %vm182_vm10, %v294_v11, %v295_v13 }
 0x440   :  { %v297_v15 = vpack.c.b16 %v296_v14, %v296_v14  ;;  %v980_v14 = vsel %vm978_vm2, %v2892_v63, %v2916_v3 }
 0x442   :  { %298 = vrot.lane.b32.xlu1 %v297_v15, %s2813_s10 }
 0x4b4   :  { %v299_v16 = vpop.permute.xlu1 %298 }
 0x4b5   :  { %2502 = vmatmul.msk.bf16.vlgmr.msra.gmra.mxu3 %vm78_vm11, %v299_v16  ;;  %v979_v16 = vsel %vm978_vm2, %v2896_v6, %v2918_v7 }
 0x538   :  { %v312_v17 = vpop.f32.mrf.mxu3 }
 0x539   :  { %v313_v19 = vadd.f32 %v2872_v12, %v312_v17 }
 0x53b   :  { %v317_v20 = vrot.slane %v313_v19, 6  ;;  %v318_v22 = vrot.slane %v313_v19, 7 }
 0x53d   :  { %v321_v23 = vadd.f32 %v317_v20, %v2883_v21  ;;  %363 = vrot.lane.b32.xlu0 %v318_v22, %s2812_s7  ;;  %361 = vrot.lane.b32.xlu2 %v317_v20, %s2812_s7  ;;  %v322_v40 = vadd.f32 %v318_v22, %v2880_v18 }
 0x53f   :  { %v2503_v24 = vmul.f32 -1.442695, %v321_v23  ;;  %v2504_v41 = vmul.f32 -1.442695, %v322_v40 }
 0x540   :  { %v314_v25 = vpop.f32.mrf.mxu3 }
 0x541   :  { %2621 = vpow2.f32 %v2503_v24 }
 0x547   :  { %v2622_v26 = vpop.eup %2621 }
 0x548   :  { %v329_v27 = vadd.f32 1.0, %v2622_v26 }
 0x54a   :  { %2623 = vrcp.f32 %v329_v27  ;;  %v342_v31 = vand.u32 2147483648, %v329_v27  ;;  %v340_v33 = vand.u32 2147483647, %v329_v27  ;;  %vm336_vm7 = vweird.f32 %v329_v27 }
 0x54b   :  { %2625 = vpow2.f32 %v2504_v41 }
 0x54c   :  { %v343_v35 = vor.u32 1.1754944e-38, %v342_v31  ;;  %vm341_vm9 = vcmp.eq.f32.partialorder %v340_v33, 8.507059e+37 }
 0x550   :  { %v2624_v28 = vpop.eup %2623 }
 0x551   :  { %v332_v29 = vmul.f32 %v2624_v28, %v329_v27  ;;  %vm337_vm6 = vweird.f32 %v2624_v28  ;;  %v2626_v42 = vpop.eup %2625 }
 0x552   :  { %vm338_vm8 = vmor %vm336_vm7, %vm337_vm6  ;;  %v330_v43 = vadd.f32 1.0, %v2626_v42 }
 0x553   :  { %v333_v30 = vsub.f32 1.0, %v332_v29 }
 0x554   :  { %2627 = vrcp.f32 %v330_v43  ;;  %v357_v51 = vand.u32 2147483648, %v330_v43  ;;  %vm351_vm13 = vweird.f32 %v330_v43  ;;  %v355_v52 = vand.u32 2147483647, %v330_v43 }
 0x555   :  { %v334_v32 = vmul.f32 %v2624_v28, %v333_v30 }
 0x556   :  { %v358_v54 = vor.u32 1.1754944e-38, %v357_v51  ;;  %vm356_vm15 = vcmp.eq.f32.partialorder %v355_v52, 8.507059e+37 }
 0x557   :  { %v335_v34 = vadd.f32 %v2624_v28, %v334_v32 }
 0x559   :  { %v339_v36 = vsel %vm338_vm8, %v2624_v28, %v335_v34 }
 0x55a   :  { %v344_v38 = vsel %vm341_vm9, %v343_v35, %v339_v36  ;;  %v2628_v46 = vpop.eup %2627 }
 0x55b   :  { %v399_v39 = vmul.f32 %v395_v37, %v344_v38  ;;  %v347_v47 = vmul.f32 %v2628_v46, %v330_v43  ;;  %vm352_vm12 = vweird.f32 %v2628_v46  ;;  %v381_v4 = vsub.f32 1.0, %v344_v38 }
 0x55c   :  { %vm353_vm14 = vmor %vm351_vm13, %vm352_vm12  ;;  %vm983_vm13 = vcmask 1042432  }
 0x55d   :  { %v348_v48 = vsub.f32 1.0, %v347_v47 }
 0x55f   :  { %v349_v49 = vmul.f32 %v2628_v46, %v348_v48 }
 0x561   :  { %v350_v50 = vadd.f32 %v2628_v46, %v349_v49 }
 0x563   :  { %v354_v53 = vsel %vm353_vm14, %v2628_v46, %v350_v50 }
 0x564   :  { %v359_v56 = vsel %vm356_vm15, %v358_v54, %v354_v53 }
 0x565   :  { %v382_v1 = vsub.f32 1.0, %v359_v56  ;;  %v400_v9 = vmul.f32 %v396_v2, %v359_v56 }
 0x597   :  { %v362_v44 = vpop.permute.xlu2 %361 }
 0x598   :  { %v367_v45 = vmul.f32 %v362_v44, %v344_v38 }
 0x59a   :  { %371 = vrot.lane.b32.xlu1 %v367_v45, %s2812_s7 }
 0x5af   :  { %v364_v55 = vpop.permute.xlu0 %363 }
 0x5b0   :  { %v368_v57 = vmul.f32 %v364_v55, %v359_v56 }
 0x5b2   :  { %373 = vrot.lane.b32.xlu2 %v368_v57, %s2812_s7 }
 0x60c   :  { %v374_v58 = vpop.permute.xlu2 %373  ;;  %v372_v59 = vpop.permute.xlu1 %371 }
 0x60d   :  { %v378_v60 = vadd.f32 %v374_v58, %v2880_v18  ;;  %v377_v61 = vadd.f32 %v372_v59, %v2883_v21 }
 0x60f   :  { %2629 = vtanh.f32 %v378_v60 }
 0x610   :  { %2631 = vtanh.f32 %v377_v61 }
 0x615   :  { %v2630_v62 = vpop.eup %2629 }
 0x616   :  { %v2632_v0 = vpop.eup %2631  ;;  %387 = vrot.lane.b32.xlu1 %v2630_v62, %s2813_s10 }
 0x617   :  { %385 = vrot.lane.b32.xlu0 %v2632_v0, %s2813_s10 }
 0x688   :  { %v388_v5 = vpop.permute.xlu1 %387 }
 0x689   :  { %v386_v8 = vpop.permute.xlu0 %385  ;;  %v392_v10 = vmul.f32 %v388_v5, %v382_v1 }
 0x68a   :  { %v391_v11 = vmul.f32 %v386_v8, %v381_v4 }
 0x68b   :  { %v2940_v13 = vadd.f32 %v400_v9, %v392_v10 }
 0x68c   :  { %v2945_v15 = vadd.f32 %v399_v39, %v391_v11 }
 0x68d   :  { %v404_v17 = vpack.c.bf16 %v2940_v13, %v2940_v13  ;;  %v2954_v19 = vsel %vm50_vm0, %v980_v14, %v2940_v13  ;;  %v511_v14 = vrot.slane %v2940_v13, 7 }
 0x68e   :  { %v403_v20 = vpack.c.bf16 %v2945_v15, %v2945_v15  ;;  %v2960_v22 = vsel %vm50_vm0, %v979_v16, %v2945_v15  ;;  %v510_v10 = vrot.slane %v2945_v15, 7 }
 0x68f   :  { %v408_v63 = vunpack.c.l.b16 %v404_v17 }
 0x690   :  { %v407_v3 = vunpack.c.l.b16 %v403_v20 }
 0x691   :  { %v410_v23 = vrot.slane %v408_v63, 1 }
 0x692   :  { %v409_v24 = vrot.slane %v407_v3, 2 }
 0x694   :  { %v411_v6 = vsel %vm182_vm10, %v410_v23, %v409_v24 }
 0x695   :  { %v412_v7 = vpack.c.b16 %v411_v6, %v411_v6 }
 0x697   :  { %413 = vrot.lane.b32.xlu2 %v412_v7, %s2813_s10 }
 0x6f1   :  { %v414_v25 = vpop.permute.xlu2 %413 }
 0x6f2   :  { %2505 = vmatmul.msk.bf16.vlgmr.msrb.gmra.mxu0 %vm78_vm11, %v414_v25 }
 0x76f   :  { %v427_v26 = vpop.f32.mrf.mxu0 }
 0x770   :  { %v428_v27 = vadd.f32 %v2872_v12, %v427_v26 }
 0x772   :  { %v432_v28 = vrot.slane %v428_v27, 5  ;;  %v433_v29 = vrot.slane %v428_v27, 6 }
 0x774   :  { %478 = vrot.lane.b32.xlu1 %v433_v29, %s2812_s7  ;;  %476 = vrot.lane.b32.xlu0 %v432_v28, %s2812_s7  ;;  %v436_v31 = vadd.f32 %v432_v28, %v2883_v21  ;;  %v437_v32 = vadd.f32 %v433_v29, %v2880_v18 }
 0x776   :  { %v2506_v33 = vmul.f32 -1.442695, %v436_v31  ;;  %v2507_v34 = vmul.f32 -1.442695, %v437_v32 }
 0x777   :  { %v429_v30 = vpop.f32.mrf.mxu0 }
 0x778   :  { %2633 = vpow2.f32 %v2506_v33 }
 0x779   :  { %2635 = vpow2.f32 %v2507_v34 }
 0x77e   :  { %v2634_v35 = vpop.eup %2633 }
 0x77f   :  { %v2636_v36 = vpop.eup %2635  ;;  %v444_v37 = vadd.f32 1.0, %v2634_v35 }
 0x780   :  { %v445_v38 = vadd.f32 1.0, %v2636_v36 }
 0x781   :  { %2637 = vrcp.f32 %v444_v37  ;;  %vm451_vm5 = vweird.f32 %v444_v37  ;;  %v457_v50 = vand.u32 2147483648, %v444_v37  ;;  %v455_v52 = vand.u32 2147483647, %v444_v37 }
 0x782   :  { %2639 = vrcp.f32 %v445_v38  ;;  %v472_v49 = vand.u32 2147483648, %v445_v38  ;;  %vm466_vm6 = vweird.f32 %v445_v38  ;;  %v470_v51 = vand.u32 2147483647, %v445_v38 }
 0x783   :  { %v458_v56 = vor.u32 1.1754944e-38, %v457_v50  ;;  %vm456_vm12 = vcmp.eq.f32.partialorder %v455_v52, 8.507059e+37 }
 0x784   :  { %v473_v55 = vor.u32 1.1754944e-38, %v472_v49  ;;  %vm471_vm9 = vcmp.eq.f32.partialorder %v470_v51, 8.507059e+37 }
 0x787   :  { %v2638_v39 = vpop.eup %2637 }
 0x788   :  { %v2640_v40 = vpop.eup %2639  ;;  %v447_v42 = vmul.f32 %v2638_v39, %v444_v37  ;;  %vm452_vm3 = vweird.f32 %v2638_v39 }
 0x789   :  { %v462_v41 = vmul.f32 %v2640_v40, %v445_v38  ;;  %vm467_vm4 = vweird.f32 %v2640_v40  ;;  %vm453_vm7 = vmor %vm451_vm5, %vm452_vm3 }
 0x78a   :  { %v448_v44 = vsub.f32 1.0, %v447_v42  ;;  %vm468_vm8 = vmor %vm466_vm6, %vm467_vm4 }
 0x78b   :  { %v463_v43 = vsub.f32 1.0, %v462_v41 }
 0x78c   :  { %v449_v46 = vmul.f32 %v2638_v39, %v448_v44 }
 0x78d   :  { %v464_v45 = vmul.f32 %v2640_v40, %v463_v43 }
 0x78e   :  { %v450_v48 = vadd.f32 %v2638_v39, %v449_v46 }
 0x78f   :  { %v465_v47 = vadd.f32 %v2640_v40, %v464_v45 }
 0x790   :  { %v454_v54 = vsel %vm453_vm7, %v2638_v39, %v450_v48 }
 0x791   :  { %v469_v53 = vsel %vm468_vm8, %v2640_v40, %v465_v47  ;;  %v459_v60 = vsel %vm456_vm12, %v458_v56, %v454_v54 }
 0x792   :  { %v474_v58 = vsel %vm471_vm9, %v473_v55, %v469_v53  ;;  %v496_v9 = vsub.f32 1.0, %v459_v60  ;;  %v514_v20 = vmul.f32 %v510_v10, %v459_v60  ;;  %vm986_vm9 = vcmask 1043456  }
 0x793   :  { %v497_v11 = vsub.f32 1.0, %v474_v58  ;;  %v515_v3 = vmul.f32 %v511_v14, %v474_v58 }
 0x7e6   :  { %v479_v57 = vpop.permute.xlu1 %478  ;;  %v477_v59 = vpop.permute.xlu0 %476 }
 0x7e7   :  { %v483_v61 = vmul.f32 %v479_v57, %v474_v58  ;;  %v482_v62 = vmul.f32 %v477_v59, %v459_v60 }
 0x7e9   :  { %488 = vrot.lane.b32.xlu0 %v483_v61, %s2812_s7  ;;  %486 = vrot.lane.b32.xlu2 %v482_v62, %s2812_s7 }
 0x843   :  { %v487_v0 = vpop.permute.xlu2 %486 }
 0x844   :  { %v492_v1 = vadd.f32 %v487_v0, %v2883_v21 }
 0x846   :  { %2641 = vtanh.f32 %v492_v1 }
 0x84c   :  { %v2642_v2 = vpop.eup %2641 }
 0x84d   :  { %500 = vrot.lane.b32.xlu1 %v2642_v2, %s2813_s10 }
 0x85b   :  { %v489_v4 = vpop.permute.xlu0 %488 }
 0x85c   :  { %v493_v5 = vadd.f32 %v489_v4, %v2880_v18 }
 0x85e   :  { %2643 = vtanh.f32 %v493_v5 }
 0x864   :  { %v2644_v8 = vpop.eup %2643 }
 0x865   :  { %502 = vrot.lane.b32.xlu2 %v2644_v8, %s2813_s10 }
 0x8bf   :  { %v501_v16 = vpop.permute.xlu1 %500  ;;  %v503_v17 = vpop.permute.xlu2 %502 }
 0x8c0   :  { %v506_v63 = vmul.f32 %v501_v16, %v496_v9  ;;  %v507_v23 = vmul.f32 %v503_v17, %v497_v11 }
 0x8c2   :  { %v2978_v24 = vadd.f32 %v514_v20, %v506_v63  ;;  %v517_v6 = vadd.f32 %v515_v3, %v507_v23 }
 0x8c4   :  { %v518_v7 = vpack.c.bf16 %v2978_v24, %v2978_v24  ;;  %v2985_v15 = vsel %vm983_vm13, %v2960_v22, %v2978_v24  ;;  %v519_v25 = vpack.c.bf16 %v517_v6, %v517_v6  ;;  %v2989_v13 = vsel %vm983_vm13, %v2954_v19, %v517_v6 }
 0x8c5   :  { %v626_v49 = vrot.slane %v517_v6, 7  ;;  %v625_v3 = vrot.slane %v2978_v24, 7 }
 0x8c6   :  { %v522_v26 = vunpack.c.l.b16 %v518_v7  ;;  %v523_v27 = vunpack.c.l.b16 %v519_v25 }
 0x8c8   :  { %v524_v28 = vrot.slane %v522_v26, 3  ;;  %v525_v29 = vrot.slane %v523_v27, 2 }
 0x8ca   :  { %v526_v30 = vsel %vm182_vm10, %v525_v29, %v524_v28 }
 0x8cb   :  { %v527_v31 = vpack.c.b16 %v526_v30, %v526_v30 }
 0x8cd   :  { %528 = vrot.lane.b32.xlu0 %v527_v31, %s2813_s10 }
 0x93f   :  { %v529_v32 = vpop.permute.xlu0 %528 }
 0x940   :  { %2508 = vmatmul.msk.bf16.vlgmr.msra.gmra.mxu1 %vm78_vm11, %v529_v32 }
 0x9bd   :  { %v542_v33 = vpop.f32.mrf.mxu1 }
 0x9be   :  { %v543_v22 = vadd.f32 %v2872_v12, %v542_v33 }
 0x9c0   :  { %v547_v34 = vrot.slane %v543_v22, 4  ;;  %v548_v35 = vrot.slane %v543_v22, 5 }
 0x9c2   :  { %v552_v19 = vadd.f32 %v548_v35, %v2880_v18  ;;  %593 = vrot.lane.b32.xlu2 %v548_v35, %s2812_s7  ;;  %591 = vrot.lane.b32.xlu1 %v547_v34, %s2812_s7  ;;  %v551_v52 = vadd.f32 %v547_v34, %v2883_v21 }
 0x9c4   :  { %v2510_v36 = vmul.f32 -1.442695, %v552_v19  ;;  %v2509_v53 = vmul.f32 -1.442695, %v551_v52 }
 0x9c5   :  { %v544_v37 = vpop.f32.mrf.mxu1 }
 0x9c6   :  { %2645 = vpow2.f32 %v2510_v36 }
 0x9cc   :  { %v2646_v38 = vpop.eup %2645 }
 0x9cd   :  { %v560_v39 = vadd.f32 1.0, %v2646_v38 }
 0x9cf   :  { %2647 = vrcp.f32 %v560_v39  ;;  %v587_v43 = vand.u32 2147483648, %v560_v39  ;;  %v585_v45 = vand.u32 2147483647, %v560_v39  ;;  %vm581_vm15 = vweird.f32 %v560_v39 }
 0x9d0   :  { %2649 = vpow2.f32 %v2509_v53 }
 0x9d1   :  { %v588_v47 = vor.u32 1.1754944e-38, %v587_v43  ;;  %vm586_vm4 = vcmp.eq.f32.partialorder %v585_v45, 8.507059e+37 }
 0x9d5   :  { %v2648_v40 = vpop.eup %2647 }
 0x9d6   :  { %v577_v41 = vmul.f32 %v2648_v40, %v560_v39  ;;  %vm582_vm14 = vweird.f32 %v2648_v40  ;;  %v2650_v54 = vpop.eup %2649 }
 0x9d7   :  { %vm583_vm3 = vmor %vm581_vm15, %vm582_vm14  ;;  %v559_v55 = vadd.f32 1.0, %v2650_v54 }
 0x9d8   :  { %v578_v42 = vsub.f32 1.0, %v577_v41 }
 0x9d9   :  { %2651 = vrcp.f32 %v559_v55  ;;  %v572_v0 = vand.u32 2147483648, %v559_v55  ;;  %vm566_vm6 = vweird.f32 %v559_v55  ;;  %v570_v1 = vand.u32 2147483647, %v559_v55 }
 0x9da   :  { %v579_v44 = vmul.f32 %v2648_v40, %v578_v42 }
 0x9db   :  { %v573_v4 = vor.u32 1.1754944e-38, %v572_v0  ;;  %vm571_vm8 = vcmp.eq.f32.partialorder %v570_v1, 8.507059e+37 }
 0x9dc   :  { %v580_v46 = vadd.f32 %v2648_v40, %v579_v44 }
 0x9de   :  { %v584_v48 = vsel %vm583_vm3, %v2648_v40, %v580_v46 }
 0x9df   :  { %v589_v50 = vsel %vm586_vm4, %v588_v47, %v584_v48  ;;  %v2652_v58 = vpop.eup %2651 }
 0x9e0   :  { %v630_v51 = vmul.f32 %v626_v49, %v589_v50  ;;  %v562_v59 = vmul.f32 %v2652_v58, %v559_v55  ;;  %vm567_vm5 = vweird.f32 %v2652_v58  ;;  %v612_v23 = vsub.f32 1.0, %v589_v50 }
 0x9e1   :  { %vm568_vm7 = vmor %vm566_vm6, %vm567_vm5 }
 0x9e2   :  { %v563_v60 = vsub.f32 1.0, %v562_v59 }
 0x9e4   :  { %v564_v61 = vmul.f32 %v2652_v58, %v563_v60 }
 0x9e6   :  { %v565_v62 = vadd.f32 %v2652_v58, %v564_v61 }
 0x9e8   :  { %v569_v2 = vsel %vm568_vm7, %v2652_v58, %v565_v62 }
 0x9e9   :  { %v574_v8 = vsel %vm571_vm8, %v573_v4, %v569_v2  ;;  %vm989_vm8 = vcmask 1044480  }
 0x9ea   :  { %v611_v63 = vsub.f32 1.0, %v574_v8  ;;  %v629_v25 = vmul.f32 %v625_v3, %v574_v8 }
 0xa1c   :  { %v594_v56 = vpop.permute.xlu2 %593 }
 0xa1d   :  { %v598_v57 = vmul.f32 %v594_v56, %v589_v50 }
 0xa1f   :  { %603 = vrot.lane.b32.xlu1 %v598_v57, %s2812_s7 }
 0xa34   :  { %v592_v5 = vpop.permute.xlu1 %591 }
 0xa35   :  { %v597_v9 = vmul.f32 %v592_v5, %v574_v8 }
 0xa37   :  { %601 = vrot.lane.b32.xlu0 %v597_v9, %s2812_s7 }
 0xa91   :  { %v604_v10 = vpop.permute.xlu1 %603 }
 0xa92   :  { %v608_v11 = vadd.f32 %v604_v10, %v2880_v18 }
 0xa94   :  { %2653 = vtanh.f32 %v608_v11 }
 0xa9a   :  { %v2654_v14 = vpop.eup %2653 }
 0xa9b   :  { %617 = vrot.lane.b32.xlu0 %v2654_v14, %s2813_s10 }
 0xaa9   :  { %v602_v16 = vpop.permute.xlu0 %601 }
 0xaaa   :  { %v607_v17 = vadd.f32 %v602_v16, %v2883_v21 }
 0xaac   :  { %2655 = vtanh.f32 %v607_v17 }
 0xab2   :  { %v2656_v20 = vpop.eup %2655 }
 0xab3   :  { %615 = vrot.lane.b32.xlu2 %v2656_v20, %s2813_s10 }
 0xb0d   :  { %v616_v6 = vpop.permute.xlu2 %615  ;;  %v618_v7 = vpop.permute.xlu0 %617 }
 0xb0e   :  { %v621_v26 = vmul.f32 %v616_v6, %v611_v63  ;;  %v622_v27 = vmul.f32 %v618_v7, %v612_v23 }
 0xb10   :  { %v631_v28 = vadd.f32 %v629_v25, %v621_v26  ;;  %v3006_v29 = vadd.f32 %v630_v51, %v622_v27 }
 0xb12   :  { %v633_v30 = vpack.c.bf16 %v631_v28, %v631_v28  ;;  %v3010_v31 = vsel %vm986_vm9, %v2985_v15, %v631_v28  ;;  %v634_v32 = vpack.c.bf16 %v3006_v29, %v3006_v29  ;;  %v3017_v24 = vsel %vm986_vm9, %v2989_v13, %v3006_v29 }
 0xb13   :  { %v740_v53 = vrot.slane %v631_v28, 7  ;;  %v741_v25 = vrot.slane %v3006_v29, 7 }
 0xb14   :  { %v637_v33 = vunpack.c.l.b16 %v633_v30  ;;  %v638_v22 = vunpack.c.l.b16 %v634_v32 }
 0xb16   :  { %v639_v34 = vrot.slane %v637_v33, 4  ;;  %v640_v35 = vrot.slane %v638_v22, 3 }
 0xb18   :  { %v641_v19 = vsel %vm182_vm10, %v640_v35, %v639_v34 }
 0xb19   :  { %v642_v36 = vpack.c.b16 %v641_v19, %v641_v19 }
 0xb1b   :  { %643 = vrot.lane.b32.xlu1 %v642_v36, %s2813_s10 }
 0xb8d   :  { %v644_v37 = vpop.permute.xlu1 %643 }
 0xb8e   :  { %2511 = vmatmul.msk.bf16.vlgmr.msrb.gmra.mxu2 %vm78_vm11, %v644_v37 }
 0xc11   :  { %v657_v15 = vpop.f32.mrf.mxu2 }
 0xc12   :  { %v658_v38 = vadd.f32 %v2872_v12, %v657_v15 }
 0xc14   :  { %v662_v39 = vrot.slane %v658_v38, 3  ;;  %v663_v40 = vrot.slane %v658_v38, 4 }
 0xc16   :  { %v666_v13 = vadd.f32 %v662_v39, %v2883_v21  ;;  %708 = vrot.lane.b32.xlu0 %v663_v40, %s2812_s7  ;;  %706 = vrot.lane.b32.xlu2 %v662_v39, %s2812_s7  ;;  %v667_v56 = vadd.f32 %v663_v40, %v2880_v18 }
 0xc18   :  { %v2512_v41 = vmul.f32 -1.442695, %v666_v13  ;;  %v2513_v57 = vmul.f32 -1.442695, %v667_v56 }
 0xc19   :  { %v659_v42 = vpop.f32.mrf.mxu2 }
 0xc1a   :  { %2657 = vpow2.f32 %v2512_v41  ;;  %v3058_v42 = vld [vmem:[%s3546_s1 + $0x38] ss:$0 sm:$0xff] }
 0xc20   :  { %v2658_v43 = vpop.eup %2657 }
 0xc21   :  { %v674_v44 = vadd.f32 1.0, %v2658_v43 }
 0xc23   :  { %2659 = vrcp.f32 %v674_v44  ;;  %v687_v48 = vand.u32 2147483648, %v674_v44  ;;  %v685_v12 = vand.u32 2147483647, %v674_v44  ;;  %vm681_vm14 = vweird.f32 %v674_v44 }
 0xc24   :  { %2661 = vpow2.f32 %v2513_v57 }
 0xc25   :  { %v688_v51 = vor.u32 1.1754944e-38, %v687_v48  ;;  %vm686_vm3 = vcmp.eq.f32.partialorder %v685_v12, 8.507059e+37 }
 0xc29   :  { %v2660_v45 = vpop.eup %2659 }
 0xc2a   :  { %v677_v46 = vmul.f32 %v2660_v45, %v674_v44  ;;  %vm682_vm12 = vweird.f32 %v2660_v45  ;;  %v2662_v58 = vpop.eup %2661 }
 0xc2b   :  { %vm683_vm15 = vmor %vm681_vm14, %vm682_vm12  ;;  %v675_v59 = vadd.f32 1.0, %v2662_v58 }
 0xc2c   :  { %v678_v47 = vsub.f32 1.0, %v677_v46 }
 0xc2d   :  { %2663 = vrcp.f32 %v675_v59  ;;  %v702_v5 = vand.u32 2147483648, %v675_v59  ;;  %vm696_vm5 = vweird.f32 %v675_v59  ;;  %v700_v8 = vand.u32 2147483647, %v675_v59 }
 0xc2e   :  { %v679_v49 = vmul.f32 %v2660_v45, %v678_v47 }
 0xc2f   :  { %v703_v10 = vor.u32 1.1754944e-38, %v702_v5  ;;  %vm701_vm7 = vcmp.eq.f32.partialorder %v700_v8, 8.507059e+37 }
 0xc30   :  { %v680_v50 = vadd.f32 %v2660_v45, %v679_v49 }
 0xc32   :  { %v684_v52 = vsel %vm683_vm15, %v2660_v45, %v680_v50 }
 0xc33   :  { %v689_v54 = vsel %vm686_vm3, %v688_v51, %v684_v52  ;;  %v2664_v62 = vpop.eup %2663 }
 0xc34   :  { %v744_v55 = vmul.f32 %v740_v53, %v689_v54  ;;  %v692_v0 = vmul.f32 %v2664_v62, %v675_v59  ;;  %vm697_vm4 = vweird.f32 %v2664_v62  ;;  %v726_v26 = vsub.f32 1.0, %v689_v54 }
 0xc35   :  { %vm698_vm6 = vmor %vm696_vm5, %vm697_vm4 }
 0xc36   :  { %v693_v1 = vsub.f32 1.0, %v692_v0 }
 0xc38   :  { %v694_v2 = vmul.f32 %v2664_v62, %v693_v1 }
 0xc3a   :  { %v695_v4 = vadd.f32 %v2664_v62, %v694_v2 }
 0xc3c   :  { %v699_v9 = vsel %vm698_vm6, %v2664_v62, %v695_v4 }
 0xc3d   :  { %v704_v14 = vsel %vm701_vm7, %v703_v10, %v699_v9 }
 0xc3e   :  { %v727_v7 = vsub.f32 1.0, %v704_v14  ;;  %v745_v30 = vmul.f32 %v741_v25, %v704_v14 }
 0xc70   :  { %v707_v60 = vpop.permute.xlu2 %706 }
 0xc71   :  { %v712_v61 = vmul.f32 %v707_v60, %v689_v54 }
 0xc73   :  { %716 = vrot.lane.b32.xlu1 %v712_v61, %s2812_s7 }
 0xc88   :  { %v709_v11 = vpop.permute.xlu0 %708 }
 0xc89   :  { %v713_v16 = vmul.f32 %v709_v11, %v704_v14 }
 0xc8b   :  { %718 = vrot.lane.b32.xlu2 %v713_v16, %s2812_s7 }
 0xce5   :  { %v719_v17 = vpop.permute.xlu2 %718  ;;  %v717_v20 = vpop.permute.xlu1 %716 }
 0xce6   :  { %v723_v63 = vadd.f32 %v719_v17, %v2880_v18  ;;  %v722_v3 = vadd.f32 %v717_v20, %v2883_v21 }
 0xce8   :  { %2665 = vtanh.f32 %v723_v63 }
 0xce9   :  { %2667 = vtanh.f32 %v722_v3 }
 0xcee   :  { %v2666_v23 = vpop.eup %2665 }
 0xcef   :  { %v2668_v6 = vpop.eup %2667  ;;  %732 = vrot.lane.b32.xlu1 %v2666_v23, %s2813_s10 }
 0xcf0   :  { %730 = vrot.lane.b32.xlu0 %v2668_v6, %s2813_s10 }
 0xd61   :  { %v733_v27 = vpop.permute.xlu1 %732 }
 0xd62   :  { %v731_v28 = vpop.permute.xlu0 %730  ;;  %v737_v32 = vmul.f32 %v733_v27, %v727_v7 }
 0xd63   :  { %v736_v33 = vmul.f32 %v731_v28, %v726_v26 }
 0xd64   :  { %v3034_v22 = vadd.f32 %v745_v30, %v737_v32 }
 0xd65   :  { %v3036_v34 = vadd.f32 %v744_v55, %v736_v33 }
 0xd66   :  { %v749_v35 = vpack.c.bf16 %v3034_v22, %v3034_v22  ;;  %v3043_v19 = vsel %vm989_vm8, %v3017_v24, %v3034_v22  ;;  %v856_v32 = vrot.slane %v3034_v22, 7 }
 0xd67   :  { %v748_v29 = vpack.c.bf16 %v3036_v34, %v3036_v34  ;;  %v3050_v36 = vsel %vm989_vm8, %v3010_v31, %v3036_v34  ;;  %v855_v28 = vrot.slane %v3036_v34, 7 }
 0xd68   :  { %v753_v37 = vunpack.c.l.b16 %v749_v35 }
 0xd69   :  { %v752_v15 = vunpack.c.l.b16 %v748_v29 }
 0xd6a   :  { %v755_v38 = vrot.slane %v753_v37, 4 }
 0xd6b   :  { %v754_v39 = vrot.slane %v752_v15, 5 }
 0xd6d   :  { %v756_v40 = vsel %vm182_vm10, %v755_v38, %v754_v39  ;;  %v2806_v39 = vld [vmem:[%s3547_s0] sm:$0xff] }
 0xd6e   :  { %v757_v13 = vpack.c.b16 %v756_v40, %v756_v40  ;;  %v2807_v40 = vld [vmem:[%s3547_s0 + $0x8] sm:$0xff] }
 0xd70   :  { %758 = vrot.lane.b32.xlu2 %v757_v13, %s2813_s10 }
 0xdca   :  { %v759_v41 = vpop.permute.xlu2 %758 }
 0xdcb   :  { %2514 = vmatmul.msk.bf16.vlgmr.msrb.gmra.mxu3 %vm78_vm11, %v759_v41 }
 0xe4e   :  { %v772_v24 = vpop.f32.mrf.mxu3 }
 0xe4f   :  { %v773_v31 = vadd.f32 %v3058_v42, %v772_v24 }
 0xe51   :  { %v777_v43 = vrot.slane %v773_v31, 2  ;;  %v778_v44 = vrot.slane %v773_v31, 3 }
 0xe53   :  { %823 = vrot.lane.b32.xlu1 %v778_v44, %s2812_s7  ;;  %821 = vrot.lane.b32.xlu0 %v777_v43, %s2812_s7  ;;  %v781_v46 = vadd.f32 %v777_v43, %v2883_v21  ;;  %v782_v47 = vadd.f32 %v778_v44, %v2880_v18 }
 0xe55   :  { %v2515_v48 = vmul.f32 -1.442695, %v781_v46  ;;  %v2516_v49 = vmul.f32 -1.442695, %v782_v47 }
 0xe56   :  { %v774_v45 = vpop.f32.mrf.mxu3 }
 0xe57   :  { %2669 = vpow2.f32 %v2515_v48 }
 0xe58   :  { %2671 = vpow2.f32 %v2516_v49 }
 0xe5d   :  { %v2670_v12 = vpop.eup %2669 }
 0xe5e   :  { %v2672_v50 = vpop.eup %2671  ;;  %v789_v51 = vadd.f32 1.0, %v2670_v12 }
 0xe5f   :  { %v790_v52 = vadd.f32 1.0, %v2672_v50 }
 0xe60   :  { %2673 = vrcp.f32 %v789_v51  ;;  %vm796_vm15 = vweird.f32 %v789_v51  ;;  %v802_v1 = vand.u32 2147483648, %v789_v51  ;;  %v800_v4 = vand.u32 2147483647, %v789_v51 }
 0xe61   :  { %2675 = vrcp.f32 %v790_v52  ;;  %v817_v0 = vand.u32 2147483648, %v790_v52  ;;  %vm811_vm3 = vweird.f32 %v790_v52  ;;  %v815_v2 = vand.u32 2147483647, %v790_v52 }
 0xe62   :  { %v803_v10 = vor.u32 1.1754944e-38, %v802_v1  ;;  %vm801_vm7 = vcmp.eq.f32.partialorder %v800_v4, 8.507059e+37 }
 0xe63   :  { %v818_v9 = vor.u32 1.1754944e-38, %v817_v0  ;;  %vm816_vm6 = vcmp.eq.f32.partialorder %v815_v2, 8.507059e+37 }
 0xe66   :  { %v2674_v53 = vpop.eup %2673 }
 0xe67   :  { %v2676_v54 = vpop.eup %2675  ;;  %v792_v56 = vmul.f32 %v2674_v53, %v789_v51  ;;  %vm797_vm12 = vweird.f32 %v2674_v53 }
 0xe68   :  { %v807_v55 = vmul.f32 %v2676_v54, %v790_v52  ;;  %vm812_vm14 = vweird.f32 %v2676_v54  ;;  %vm798_vm4 = vmor %vm796_vm15, %vm797_vm12  ;;  %vm992_vm12 = vcmask 1045504  }
 0xe69   :  { %v793_v58 = vsub.f32 1.0, %v792_v56  ;;  %vm813_vm5 = vmor %vm811_vm3, %vm812_vm14 }
 0xe6a   :  { %v808_v57 = vsub.f32 1.0, %v807_v55 }
 0xe6b   :  { %v794_v60 = vmul.f32 %v2674_v53, %v793_v58 }
 0xe6c   :  { %v809_v59 = vmul.f32 %v2676_v54, %v808_v57 }
 0xe6d   :  { %v795_v62 = vadd.f32 %v2674_v53, %v794_v60 }
 0xe6e   :  { %v810_v61 = vadd.f32 %v2676_v54, %v809_v59 }
 0xe6f   :  { %v799_v8 = vsel %vm798_vm4, %v2674_v53, %v795_v62 }
 0xe70   :  { %v814_v5 = vsel %vm813_vm5, %v2676_v54, %v810_v61  ;;  %v804_v17 = vsel %vm801_vm7, %v803_v10, %v799_v8 }
 0xe71   :  { %v819_v14 = vsel %vm816_vm6, %v818_v9, %v814_v5  ;;  %v841_v27 = vsub.f32 1.0, %v804_v17  ;;  %v859_v29 = vmul.f32 %v855_v28, %v804_v17 }
 0xe72   :  { %v842_v30 = vsub.f32 1.0, %v819_v14  ;;  %v860_v15 = vmul.f32 %v856_v32, %v819_v14 }
 0xec5   :  { %v824_v11 = vpop.permute.xlu1 %823  ;;  %v822_v16 = vpop.permute.xlu0 %821 }
 0xec6   :  { %v828_v20 = vmul.f32 %v824_v11, %v819_v14  ;;  %v827_v63 = vmul.f32 %v822_v16, %v804_v17 }
 0xec8   :  { %833 = vrot.lane.b32.xlu0 %v828_v20, %s2812_s7  ;;  %831 = vrot.lane.b32.xlu2 %v827_v63, %s2812_s7 }
 0xf22   :  { %v832_v3 = vpop.permute.xlu2 %831 }
 0xf23   :  { %v837_v23 = vadd.f32 %v832_v3, %v2883_v21 }
 0xf25   :  { %2677 = vtanh.f32 %v837_v23 }
 0xf2b   :  { %v2678_v6 = vpop.eup %2677 }
 0xf2c   :  { %845 = vrot.lane.b32.xlu1 %v2678_v6, %s2813_s10 }
 0xf34   :  { %1007 = vrot.lane.b32.xlu1 %v2806_v39, %s2814_s15 }
 0xf3a   :  { %v834_v7 = vpop.permute.xlu0 %833 }
 0xf3b   :  { %v838_v25 = vadd.f32 %v834_v7, %v2880_v18 }
 0xf3d   :  { %2679 = vtanh.f32 %v838_v25 }
 0xf43   :  { %v2680_v26 = vpop.eup %2679 }
 0xf44   :  { %847 = vrot.lane.b32.xlu2 %v2680_v26, %s2813_s10 }
 0xf4c   :  { %1009 = vrot.lane.b32.xlu2 %v2807_v40, %s2814_s15 }
 0xf9e   :  { %v846_v33 = vpop.permute.xlu1 %845  ;;  %v848_v35 = vpop.permute.xlu2 %847 }
 0xf9f   :  { %v851_v37 = vmul.f32 %v846_v33, %v841_v27  ;;  %v852_v38 = vmul.f32 %v848_v35, %v842_v30  ;;  %v1004_v33 = vld [vmem:[%s3548_s2 + $0x30] sm:$0xff]  ;;  %v1003_v35 = vld [vmem:[%s3548_s2 + $0x28] sm:$0xff] }
 0xfa0   :  { %1066 = vmatpush.msra.mxu2 %v1004_v33 }
 0xfa1   :  { %v3079_v34 = vadd.f32 %v859_v29, %v851_v37  ;;  %v3081_v22 = vadd.f32 %v860_v15, %v852_v38  ;;  %v1002_v29 = vld [vmem:[%s3548_s2 + $0x20] sm:$0xff]  ;;  %v2590_v37 = vld [vmem:[%s3548_s2 + $0x10] ss:$0 sm:$0xff] }
 0xfa2   :  { %1067 = vmatpush.msra.mxu2 %v1003_v35 }
 0xfa3   :  { %v863_v13 = vpack.c.bf16 %v3079_v34, %v3079_v34  ;;  %v864_v41 = vpack.c.bf16 %v3081_v22, %v3081_v22  ;;  %v3090_v24 = vsel %vm992_vm12, %v3050_v36, %v3079_v34  ;;  %v3095_v31 = vsel %vm992_vm12, %v3043_v19, %v3081_v22  ;;  %v999_v36 = vld [vmem:[%s3548_s2 + $0x8] sm:$0x3]  ;;  %v998_v19 = vld [vmem:[%s3548_s2] sm:$0xff] }
 0xfa4   :  { %2520 = vmatpush.msk.msrb.mxu1 %vm50_vm0, %v999_v36  ;;  %1068 = vmatpush.msra.mxu2 %v1002_v29 }
 0xfa5   :  { %v867_v43 = vunpack.c.l.b16 %v863_v13  ;;  %v868_v44 = vunpack.c.l.b16 %v864_v41  ;;  %v1001_v13 = vld [vmem:[%s3548_s2 + $0x18] sm:$0xff] }
 0xfa6   :  { %v1008_v12 = vpop.permute.xlu1 %1007  ;;  %1033 = vmatpush.msrb.mxu1 %v998_v19  ;;  %1069 = vmatpush.msra.mxu2 %v1001_v13 }
 0xfa7   :  { %v869_v45 = vrot.slane %v867_v43, 6  ;;  %v870_v46 = vrot.slane %v868_v44, 5  ;;  %2521 = vmatmul.msk.f32.vlgmr.msrb.gmra.mxu1 %vm43_vm1, %v1008_v12  ;;  %v32_v12 = vld [vmem:[%s3546_s1 + $0x50] sm:$0xff] }
 0xfa9   :  { %v871_v47 = vsel %vm182_vm10, %v870_v46, %v869_v45 }
 0xfaa   :  { %v872_v48 = vpack.c.b16 %v871_v47, %v871_v47 }
 0xfac   :  { %873 = vrot.lane.b32.xlu0 %v872_v48, %s2813_s10 }
0x101e   :  { %v874_v49 = vpop.permute.xlu0 %873 }
0x101f   :  { %2517 = vmatmul.msk.bf16.vlgmr.msra.gmra.mxu0 %vm78_vm11, %v874_v49 }
0x1024   :  { %v1035_v15 = vpop.f32.mrf.mxu1 }
0x1025   :  { %v1036_v38 = vadd.f32 %v2590_v37, %v1035_v15 }
0x1027   :  { %v1043_v39 = vmul.f32 0.01, %v1036_v38 }
0x109c   :  { %v887_v50 = vpop.f32.mrf.mxu0 }
0x109d   :  { %v888_v51 = vadd.f32 %v3058_v42, %v887_v50  ;;  %v1010_v42 = vpop.permute.xlu2 %1009  ;;  %v36_v50 = vld [vmem:[%s3546_s1 + $0x70] sm:$0xff] }
0x109e   :  { %2522 = vmatmul.msk.f32.gmra.mxu1 %vm43_vm1, %v1010_v42  ;;  %v2591_v42 = vld [vmem:[%s3548_s2 + $0x38] ss:$0 sm:$0xff] }
0x109f   :  { %v892_v52 = vrot.slane %v888_v51, 1  ;;  %v893_v53 = vrot.slane %v888_v51, 2  ;;  %v37_v51 = vld [vmem:[%s3546_s1 + $0x78] sm:$0xff] }
0x10a1   :  { %938 = vrot.lane.b32.xlu1 %v893_v53, %s2812_s7  ;;  %936 = vrot.lane.b32.xlu0 %v892_v52, %s2812_s7  ;;  %v896_v55 = vadd.f32 %v892_v52, %v2883_v21  ;;  %v897_v56 = vadd.f32 %v893_v53, %v2880_v18  ;;  %v39_v52 = vpack.c.bf16 %v37_v51, %v36_v50  ;;  %v30_v53 = vld [vmem:[%s3546_s1 + $0x40] sm:$0xff] }
0x10a3   :  { %v2518_v57 = vmul.f32 -1.442695, %v896_v55  ;;  %v2519_v58 = vmul.f32 -1.442695, %v897_v56  ;;  %1135 = vmatpush.bf16.msrb.mxu0 %v39_v52  ;;  %v35_v55 = vld [vmem:[%s3546_s1 + $0x68] sm:$0xff]  ;;  %1248 = vmatpush.bf16.msra.mxu1 %v39_v52 }
0x10a4   :  { %v889_v54 = vpop.f32.mrf.mxu0  ;;  %1361 = vmatpush.bf16.msrb.mxu2 %v39_v52 }
0x10a5   :  { %2681 = vpow2.f32 %v2518_v57  ;;  %v34_v54 = vld [vmem:[%s3546_s1 + $0x60] sm:$0xff] }
0x10a6   :  { %2683 = vpow2.f32 %v2519_v58  ;;  %v38_v56 = vpack.c.bf16 %v35_v55, %v34_v54  ;;  %v970_v58 = vrot.slane %v3079_v34, 7 }
0x10a8   :  { %1136 = vmatpush.bf16.msrb.mxu0 %v38_v56  ;;  %1249 = vmatpush.bf16.msra.mxu1 %v38_v56 }
0x10a9   :  { %1362 = vmatpush.bf16.msrb.mxu2 %v38_v56 }
0x10ab   :  { %v2682_v59 = vpop.eup %2681 }
0x10ac   :  { %v2684_v60 = vpop.eup %2683  ;;  %v904_v61 = vadd.f32 1.0, %v2682_v59  ;;  %1591 = vmatpush.bf16.msra.mxu0 %v39_v52  ;;  %1706 = vmatpush.bf16.msrb.mxu1 %v39_v52 }
0x10ad   :  { %v905_v62 = vadd.f32 1.0, %v2684_v60  ;;  %v971_v60 = vrot.slane %v3081_v22, 7 }
0x10ae   :  { %2685 = vrcp.f32 %v904_v61  ;;  %vm911_vm3 = vweird.f32 %v904_v61  ;;  %v917_v17 = vand.u32 2147483648, %v904_v61  ;;  %v915_v63 = vand.u32 2147483647, %v904_v61 }
0x10af   :  { %2687 = vrcp.f32 %v905_v62  ;;  %v932_v16 = vand.u32 2147483648, %v905_v62  ;;  %vm926_vm4 = vweird.f32 %v905_v62  ;;  %v930_v20 = vand.u32 2147483647, %v905_v62 }
0x10b0   :  { %v918_v7 = vor.u32 1.1754944e-38, %v917_v17  ;;  %vm916_vm7 = vcmp.eq.f32.partialorder %v915_v63, 8.507059e+37  ;;  %1592 = vmatpush.bf16.msra.mxu0 %v38_v56  ;;  %1707 = vmatpush.bf16.msrb.mxu1 %v38_v56 }
0x10b1   :  { %v933_v6 = vor.u32 1.1754944e-38, %v932_v16  ;;  %vm931_vm6 = vcmp.eq.f32.partialorder %v930_v20, 8.507059e+37 }
0x10b4   :  { %v2686_v0 = vpop.eup %2685 }
0x10b5   :  { %v2688_v1 = vpop.eup %2687  ;;  %v907_v4 = vmul.f32 %v2686_v0, %v904_v61  ;;  %vm912_vm14 = vweird.f32 %v2686_v0 }
0x10b6   :  { %v922_v2 = vmul.f32 %v2688_v1, %v905_v62  ;;  %vm927_vm15 = vweird.f32 %v2688_v1  ;;  %vm913_vm5 = vmor %vm911_vm3, %vm912_vm14  ;;  %vm1041_vm14 = vcmp.ge.f32.partialorder %v1036_v38, 0.0  ;;  %vm3551_vm3 = vcmask 1046528  }
0x10b7   :  { %v908_v8 = vsub.f32 1.0, %v907_v4  ;;  %vm928_vm1 = vmor %vm926_vm4, %vm927_vm15  ;;  %v1045_v40 = vsel %vm1041_vm14, %v1036_v38, %v1043_v39 }
0x10b8   :  { %v923_v5 = vsub.f32 1.0, %v922_v2  ;;  %2523 = vmatmul.msk.f32.vlgmr.msra.gmra.mxu2 %vm78_vm11, %v1045_v40 }
0x10b9   :  { %v909_v10 = vmul.f32 %v2686_v0, %v908_v8  ;;  %1821 = vmatpush.bf16.msra.mxu2 %v39_v52 }
0x10ba   :  { %v924_v9 = vmul.f32 %v2688_v1, %v923_v5 }
0x10bb   :  { %v910_v14 = vadd.f32 %v2686_v0, %v909_v10 }
0x10bc   :  { %v925_v11 = vadd.f32 %v2688_v1, %v924_v9 }
0x10bd   :  { %v914_v23 = vsel %vm913_vm5, %v2686_v0, %v910_v14  ;;  %1822 = vmatpush.bf16.msra.mxu2 %v38_v56 }
0x10be   :  { %v929_v3 = vsel %vm928_vm1, %v2688_v1, %v925_v11  ;;  %v3116_v28 = vsel %vm916_vm7, %v918_v7, %v914_v23 }
0x10bf   :  { %v3114_v26 = vsel %vm931_vm6, %v933_v6, %v929_v3  ;;  %v956_v57 = vsub.f32 1.0, %v3116_v28  ;;  %v974_v0 = vmul.f32 %v970_v58, %v3116_v28 }
0x10c0   :  { %v957_v59 = vsub.f32 1.0, %v3114_v26  ;;  %v975_v2 = vmul.f32 %v971_v60, %v3114_v26 }
0x1113   :  { %v939_v25 = vpop.permute.xlu1 %938  ;;  %v937_v27 = vpop.permute.xlu0 %936 }
0x1114   :  { %v943_v30 = vmul.f32 %v939_v25, %v3114_v26  ;;  %v942_v32 = vmul.f32 %v937_v27, %v3116_v28  ;;  %v2592_v28 = vld [vmem:[%s3546_s1 + $0x80] ss:$0 sm:$0xff] }
0x1116   :  { %948 = vrot.lane.b32.xlu0 %v943_v30, %s2812_s7  ;;  %946 = vrot.lane.b32.xlu2 %v942_v32, %s2812_s7  ;;  %v3200_v30 = vld [vmem:[%s3546_s1 + $0x88] ss:$0 sm:$0xff] }
0x111b   :  { %v1038_v44 = vpop.f32.mrf.mxu1 }
0x111c   :  { %v1039_v45 = vadd.f32 %v2590_v37, %v1038_v44 }
0x111e   :  { %v1044_v46 = vmul.f32 0.01, %v1039_v45  ;;  %vm1042_vm15 = vcmp.ge.f32.partialorder %v1039_v45, 0.0 }
0x1120   :  { %v1046_v48 = vsel %vm1042_vm15, %v1039_v45, %v1044_v46 }
0x1121   :  { %2524 = vmatmul.msk.f32.gmra.mxu2 %vm78_vm11, %v1046_v48 }
0x113b   :  { %v1071_v34 = vpop.f32.mrf.mxu2 }
0x113c   :  { %v1072_v9 = vadd.f32 %v2591_v42, %v1071_v34 }
0x113e   :  { %vm1077_vm4 = vcmp.ge.f32.partialorder %v1072_v9, 0.0  ;;  %v1079_v11 = vmul.f32 0.01, %v1072_v9 }
0x1140   :  { %v1081_v63 = vsel %vm1077_vm4, %v1072_v9, %v1079_v11 }
0x1170   :  { %v947_v41 = vpop.permute.xlu2 %946 }
0x1171   :  { %v952_v43 = vadd.f32 %v947_v41, %v2883_v21  ;;  %v33_v21 = vld [vmem:[%s3546_s1 + $0x58] sm:$0xff] }
0x1172   :  { %1102 = vmatpush.msra.mxu3 %v33_v21 }
0x1173   :  { %2689 = vtanh.f32 %v952_v43 }
0x1174   :  { %1103 = vmatpush.msra.mxu3 %v32_v12 }
0x1179   :  { %v2690_v47 = vpop.eup %2689 }
0x117a   :  { %960 = vrot.lane.b32.xlu1 %v2690_v47, %s2813_s10 }
0x1188   :  { %v949_v49 = vpop.permute.xlu0 %948 }
0x1189   :  { %v953_v36 = vadd.f32 %v949_v49, %v2880_v18  ;;  %v31_v18 = vld [vmem:[%s3546_s1 + $0x48] sm:$0xff] }
0x118a   :  { %1104 = vmatpush.msra.mxu3 %v31_v18 }
0x118b   :  { %2691 = vtanh.f32 %v953_v36 }
0x118c   :  { %1105 = vmatpush.msra.mxu3 %v30_v53 }
0x118d   :  { %2525 = vmatmul.msk.f32.vlgmr.msra.gmra.mxu3 %vm78_vm11, %v1081_v63 }
0x118e   :  { %1476 = vmatpush.bf16.msrb.mxu3 %v39_v52 }
0x1191   :  { %v2692_v19 = vpop.eup %2691 }
0x1192   :  { %962 = vrot.lane.b32.xlu2 %v2692_v19, %s2813_s10  ;;  %1477 = vmatpush.bf16.msrb.mxu3 %v38_v56 }
0x1196   :  { %1936 = vmatpush.bf16.msra.mxu3 %v39_v52 }
0x119a   :  { %1937 = vmatpush.bf16.msra.mxu3 %v38_v56 }
0x11ec   :  { %v961_v61 = vpop.permute.xlu1 %960  ;;  %v963_v62 = vpop.permute.xlu2 %962 }
0x11ed   :  { %v966_v1 = vmul.f32 %v961_v61, %v956_v57  ;;  %v967_v4 = vmul.f32 %v963_v62, %v957_v59 }
0x11ef   :  { %v976_v5 = vadd.f32 %v974_v0, %v966_v1  ;;  %v3176_v8 = vadd.f32 %v975_v2, %v967_v4 }
0x11f1   :  { %v1113_v10 = vpack.c.bf16 %v976_v5, %v976_v5  ;;  %v1114_v22 = vpack.c.bf16 %v3176_v8, %v3176_v8  ;;  %v3182_v14 = vsel %vm3551_vm3, %v3090_v24, %v976_v5  ;;  %v3187_v16 = vsel %vm3551_vm3, %v3095_v31, %v3176_v8  ;;  %v1074_v24 = vpop.f32.mrf.mxu2 }
0x11f2   :  { %v1075_v25 = vadd.f32 %v2591_v42, %v1074_v24  ;;  %v1220_v19 = vrot.slane %v976_v5, 7 }
0x11f3   :  { %v1118_v17 = vunpack.c.l.b16 %v1113_v10  ;;  %v1119_v20 = vunpack.c.l.b16 %v1114_v22 }
0x11f4   :  { %v1080_v26 = vmul.f32 0.01, %v1075_v25  ;;  %vm1078_vm5 = vcmp.ge.f32.partialorder %v1075_v25, 0.0 }
0x11f5   :  { %v1120_v3 = vrot.slane %v1118_v17, 7  ;;  %v1121_v23 = vrot.slane %v1119_v20, 6 }
0x11f6   :  { %v1082_v31 = vsel %vm1078_vm5, %v1075_v25, %v1080_v26 }
0x11f7   :  { %v1122_v6 = vsel %vm182_vm10, %v1121_v23, %v1120_v3  ;;  %2526 = vmatmul.msk.f32.gmra.mxu3 %vm78_vm11, %v1082_v31 }
0x11f8   :  { %v1123_v7 = vpack.c.b16 %v1122_v6, %v1122_v6  ;;  %v1221_v6 = vrot.slane %v3176_v8, 7 }
0x11fa   :  { %1124 = vrot.lane.b32.xlu0 %v1123_v7, %s2813_s10 }
0x1210   :  { %v1107_v32 = vpop.f32.mrf.mxu3 }
0x1211   :  { %v3202_v35 = vadd.f32 %v2592_v28, %v1107_v32 }
0x126c   :  { %v1125_v27 = vpop.permute.xlu0 %1124 }
0x126d   :  { %2527 = vmatmul.msk.bf16.vlgmr.msrb.gmra.mxu0 %vm78_vm11, %v1125_v27 }
0x127a   :  { %v1110_v50 = vpop.f32.mrf.mxu3 }
0x127b   :  { %v3208_v18 = vadd.f32 %v2592_v28, %v1110_v50 }
0x12ea   :  { %v1138_v33 = vpop.f32.mrf.mxu0 }
0x12eb   :  { %v1139_v29 = vadd.f32 %v3200_v30, %v1138_v33 }
0x12ed   :  { %v1146_v37 = vadd.f32 %v1139_v29, %v3202_v35  ;;  %1186 = vrot.lane.b32.xlu2 %v1139_v29, %s2812_s7  ;;  %v1143_v15 = vrot.slane %v1139_v29, 1 }
0x12ef   :  { %v2528_v38 = vmul.f32 -1.442695, %v1146_v37  ;;  %1188 = vrot.lane.b32.xlu1 %v1143_v15, %s2812_s7  ;;  %v1147_v51 = vadd.f32 %v1143_v15, %v3208_v18 }
0x12f1   :  { %2693 = vpow2.f32 %v2528_v38  ;;  %v2529_v52 = vmul.f32 -1.442695, %v1147_v51 }
0x12f2   :  { %v1140_v39 = vpop.f32.mrf.mxu0 }
0x12f7   :  { %v2694_v40 = vpop.eup %2693 }
0x12f8   :  { %v1154_v13 = vadd.f32 1.0, %v2694_v40 }
0x12fa   :  { %2695 = vrcp.f32 %v1154_v13  ;;  %v1167_v45 = vand.u32 2147483648, %v1154_v13  ;;  %v1165_v47 = vand.u32 2147483647, %v1154_v13  ;;  %vm1161_vm6 = vweird.f32 %v1154_v13 }
0x12fb   :  { %2697 = vpow2.f32 %v2529_v52 }
0x12fc   :  { %v1168_v49 = vor.u32 1.1754944e-38, %v1167_v45  ;;  %vm1166_vm14 = vcmp.eq.f32.partialorder %v1165_v47, 8.507059e+37 }
0x1300   :  { %v2696_v41 = vpop.eup %2695 }
0x1301   :  { %v1157_v43 = vmul.f32 %v2696_v41, %v1154_v13  ;;  %vm1162_vm1 = vweird.f32 %v2696_v41  ;;  %v2698_v53 = vpop.eup %2697 }
0x1302   :  { %vm1163_vm7 = vmor %vm1161_vm6, %vm1162_vm1  ;;  %v1155_v54 = vadd.f32 1.0, %v2698_v53 }
0x1303   :  { %v1158_v44 = vsub.f32 1.0, %v1157_v43 }
0x1304   :  { %2699 = vrcp.f32 %v1155_v54  ;;  %v1182_v62 = vand.u32 2147483648, %v1155_v54  ;;  %vm1176_vm4 = vweird.f32 %v1155_v54  ;;  %v1180_v42 = vand.u32 2147483647, %v1155_v54 }
0x1305   :  { %v1159_v46 = vmul.f32 %v2696_v41, %v1158_v44 }
0x1306   :  { %v1183_v1 = vor.u32 1.1754944e-38, %v1182_v62  ;;  %vm1181_vm1 = vcmp.eq.f32.partialorder %v1180_v42, 8.507059e+37 }
0x1307   :  { %v1160_v48 = vadd.f32 %v2696_v41, %v1159_v46 }
0x1309   :  { %v1164_v36 = vsel %vm1163_vm7, %v2696_v41, %v1160_v48 }
0x130a   :  { %v1169_v21 = vsel %vm1166_vm14, %v1168_v49, %v1164_v36  ;;  %v2700_v57 = vpop.eup %2699 }
0x130b   :  { %v1224_v12 = vmul.f32 %v1220_v19, %v1169_v21  ;;  %v1172_v58 = vmul.f32 %v2700_v57, %v1155_v54  ;;  %vm1177_vm15 = vweird.f32 %v2700_v57  ;;  %v1206_v20 = vsub.f32 1.0, %v1169_v21 }
0x130c   :  { %vm1178_vm5 = vmor %vm1176_vm4, %vm1177_vm15 }
0x130d   :  { %v1173_v59 = vsub.f32 1.0, %v1172_v58 }
0x130f   :  { %v1174_v60 = vmul.f32 %v2700_v57, %v1173_v59 }
0x1311   :  { %v1175_v61 = vadd.f32 %v2700_v57, %v1174_v60 }
0x1313   :  { %v1179_v0 = vsel %vm1178_vm5, %v2700_v57, %v1175_v61 }
0x1314   :  { %v1184_v4 = vsel %vm1181_vm1, %v1183_v1, %v1179_v0 }
0x1315   :  { %v1207_v23 = vsub.f32 1.0, %v1184_v4  ;;  %v1225_v25 = vmul.f32 %v1221_v6, %v1184_v4 }
0x1347   :  { %v1187_v55 = vpop.permute.xlu2 %1186 }
0x1348   :  { %v1192_v56 = vmul.f32 %v1187_v55, %v1169_v21 }
0x134a   :  { %1196 = vrot.lane.b32.xlu1 %v1192_v56, %s2812_s7 }
0x1361   :  { %v1189_v2 = vpop.permute.xlu1 %1188 }
0x1362   :  { %v1193_v5 = vmul.f32 %v1189_v2, %v1184_v4 }
0x1364   :  { %1198 = vrot.lane.b32.xlu0 %v1193_v5, %s2812_s7 }
0x13bc   :  { %v1197_v34 = vpop.permute.xlu1 %1196 }
0x13bd   :  { %v1202_v9 = vadd.f32 %v1197_v34, %v3202_v35 }
0x13bf   :  { %2701 = vtanh.f32 %v1202_v9 }
0x13c5   :  { %v2702_v10 = vpop.eup %2701 }
0x13c6   :  { %1210 = vrot.lane.b32.xlu0 %v2702_v10, %s2813_s10 }
0x13d6   :  { %v1199_v22 = vpop.permute.xlu0 %1198 }
0x13d7   :  { %v1203_v11 = vadd.f32 %v1199_v22, %v3208_v18 }
0x13d9   :  { %2703 = vtanh.f32 %v1203_v11 }
0x13df   :  { %v2704_v17 = vpop.eup %2703 }
0x13e0   :  { %1212 = vrot.lane.b32.xlu2 %v2704_v17, %s2813_s10 }
0x1438   :  { %v1211_v63 = vpop.permute.xlu0 %1210 }
0x1439   :  { %v1216_v3 = vmul.f32 %v1211_v63, %v1206_v20 }
0x143a   :  { %v1213_v7 = vpop.permute.xlu2 %1212 }
0x143b   :  { %v3218_v24 = vadd.f32 %v1224_v12, %v1216_v3  ;;  %v1217_v26 = vmul.f32 %v1213_v7, %v1207_v23 }
0x143d   :  { %v3220_v31 = vadd.f32 %v1225_v25, %v1217_v26  ;;  %v1228_v27 = vpack.c.bf16 %v3218_v24, %v3218_v24  ;;  %v1333_v26 = vrot.slane %v3218_v24, 7 }
0x143f   :  { %v1229_v28 = vpack.c.bf16 %v3220_v31, %v3220_v31  ;;  %v1232_v33 = vunpack.c.l.b16 %v1228_v27  ;;  %v1334_v3 = vrot.slane %v3220_v31, 7 }
0x1441   :  { %v1233_v32 = vunpack.c.l.b16 %v1229_v28 }
0x1443   :  { %v1234_v29 = vrot.slane %v1233_v32, 7 }
0x1445   :  { %v1235_v37 = vsel %vm182_vm10, %v1234_v29, %v1232_v33 }
0x1446   :  { %v1236_v15 = vpack.c.b16 %v1235_v37, %v1235_v37 }
0x1448   :  { %1237 = vrot.lane.b32.xlu1 %v1236_v15, %s2813_s10 }
0x14ba   :  { %v1238_v8 = vpop.permute.xlu1 %1237 }
0x14bb   :  { %2530 = vmatmul.msk.bf16.vlgmr.msra.gmra.mxu1 %vm78_vm11, %v1238_v8 }
0x1538   :  { %v1251_v38 = vpop.f32.mrf.mxu1 }
0x1539   :  { %v1252_v39 = vadd.f32 %v3200_v30, %v1251_v38 }
0x153b   :  { %1301 = vrot.lane.b32.xlu0 %v1252_v39, %s2812_s7  ;;  %v1256_v40 = vrot.slane %v1252_v39, 7  ;;  %v1260_v46 = vadd.f32 %v1252_v39, %v3208_v18 }
0x153d   :  { %1299 = vrot.lane.b32.xlu2 %v1256_v40, %s2812_s7  ;;  %v1259_v41 = vadd.f32 %v1256_v40, %v3202_v35  ;;  %v2532_v47 = vmul.f32 -1.442695, %v1260_v46 }
0x153f   :  { %v2531_v43 = vmul.f32 -1.442695, %v1259_v41 }
0x1540   :  { %v1253_v13 = vpop.f32.mrf.mxu1 }
0x1541   :  { %2705 = vpow2.f32 %v2531_v43 }
0x1547   :  { %v2706_v44 = vpop.eup %2705 }
0x1548   :  { %v1267_v45 = vadd.f32 1.0, %v2706_v44 }
0x154a   :  { %2707 = vrcp.f32 %v1267_v45  ;;  %v1280_v51 = vand.u32 2147483648, %v1267_v45  ;;  %vm1274_vm7 = vweird.f32 %v1267_v45  ;;  %v1278_v52 = vand.u32 2147483647, %v1267_v45 }
0x154b   :  { %2709 = vpow2.f32 %v2532_v47 }
0x154c   :  { %v1281_v54 = vor.u32 1.1754944e-38, %v1280_v51  ;;  %vm1279_vm15 = vcmp.eq.f32.partialorder %v1278_v52, 8.507059e+37 }
0x1550   :  { %v2708_v48 = vpop.eup %2707 }
0x1551   :  { %v1270_v49 = vmul.f32 %v2708_v48, %v1267_v45  ;;  %v2710_v19 = vpop.eup %2709  ;;  %vm1275_vm6 = vweird.f32 %v2708_v48 }
0x1552   :  { %v1268_v12 = vadd.f32 1.0, %v2710_v19  ;;  %vm1276_vm14 = vmor %vm1274_vm7, %vm1275_vm6 }
0x1553   :  { %v1271_v36 = vsub.f32 1.0, %v1270_v49 }
0x1554   :  { %2711 = vrcp.f32 %v1268_v12  ;;  %v1295_v42 = vand.u32 2147483648, %v1268_v12  ;;  %vm1289_vm5 = vweird.f32 %v1268_v12  ;;  %v1293_v0 = vand.u32 2147483647, %v1268_v12 }
0x1555   :  { %v1272_v21 = vmul.f32 %v2708_v48, %v1271_v36 }
0x1556   :  { %v1296_v2 = vor.u32 1.1754944e-38, %v1295_v42  ;;  %vm1294_vm6 = vcmp.eq.f32.partialorder %v1293_v0, 8.507059e+37 }
0x1557   :  { %v1273_v50 = vadd.f32 %v2708_v48, %v1272_v21 }
0x1559   :  { %v1277_v53 = vsel %vm1276_vm14, %v2708_v48, %v1273_v50 }
0x155a   :  { %v2712_v55 = vpop.eup %2711  ;;  %v1282_v57 = vsel %vm1279_vm15, %v1281_v54, %v1277_v53 }
0x155b   :  { %v1285_v59 = vmul.f32 %v2712_v55, %v1268_v12  ;;  %vm1290_vm4 = vweird.f32 %v2712_v55  ;;  %v1319_v25 = vsub.f32 1.0, %v1282_v57  ;;  %v1337_v32 = vmul.f32 %v1333_v26, %v1282_v57 }
0x155c   :  { %vm1291_vm1 = vmor %vm1289_vm5, %vm1290_vm4 }
0x155d   :  { %v1286_v60 = vsub.f32 1.0, %v1285_v59 }
0x155f   :  { %v1287_v61 = vmul.f32 %v2712_v55, %v1286_v60 }
0x1561   :  { %v1288_v62 = vadd.f32 %v2712_v55, %v1287_v61 }
0x1563   :  { %v1292_v1 = vsel %vm1291_vm1, %v2712_v55, %v1288_v62 }
0x1564   :  { %v1297_v5 = vsel %vm1294_vm6, %v1296_v2, %v1292_v1 }
0x1565   :  { %v1320_v63 = vsub.f32 1.0, %v1297_v5  ;;  %v1338_v6 = vmul.f32 %v1334_v3, %v1297_v5 }
0x1597   :  { %v1300_v56 = vpop.permute.xlu2 %1299 }
0x1598   :  { %v1305_v58 = vmul.f32 %v1300_v56, %v1282_v57 }
0x159a   :  { %1309 = vrot.lane.b32.xlu1 %v1305_v58, %s2812_s7 }
0x15ad   :  { %v1302_v4 = vpop.permute.xlu0 %1301 }
0x15ae   :  { %v1306_v34 = vmul.f32 %v1302_v4, %v1297_v5 }
0x15b0   :  { %1311 = vrot.lane.b32.xlu2 %v1306_v34, %s2812_s7 }
0x160a   :  { %v1312_v9 = vpop.permute.xlu2 %1311 }
0x160b   :  { %v1316_v10 = vadd.f32 %v1312_v9, %v3208_v18 }
0x160c   :  { %v1310_v22 = vpop.permute.xlu1 %1309 }
0x160d   :  { %2713 = vtanh.f32 %v1316_v10  ;;  %v1315_v11 = vadd.f32 %v1310_v22, %v3202_v35 }
0x160f   :  { %2715 = vtanh.f32 %v1315_v11 }
0x1613   :  { %v2714_v17 = vpop.eup %2713 }
0x1614   :  { %1325 = vrot.lane.b32.xlu1 %v2714_v17, %s2813_s10 }
0x1615   :  { %v2716_v20 = vpop.eup %2715 }
0x1616   :  { %1323 = vrot.lane.b32.xlu0 %v2716_v20, %s2813_s10 }
0x1686   :  { %v1326_v23 = vpop.permute.xlu1 %1325 }
0x1687   :  { %v1330_v7 = vmul.f32 %v1326_v23, %v1320_v63 }
0x1688   :  { %v1324_v27 = vpop.permute.xlu0 %1323 }
0x1689   :  { %v3242_v28 = vadd.f32 %v1338_v6, %v1330_v7  ;;  %v1329_v33 = vmul.f32 %v1324_v27, %v1319_v25 }
0x168b   :  { %v3244_v29 = vadd.f32 %v1337_v32, %v1329_v33  ;;  %v1342_v37 = vpack.c.bf16 %v3242_v28, %v3242_v28  ;;  %v1448_v33 = vrot.slane %v3242_v28, 7 }
0x168d   :  { %v1341_v15 = vpack.c.bf16 %v3244_v29, %v3244_v29  ;;  %v1346_v38 = vunpack.c.l.b16 %v1342_v37  ;;  %v1447_v27 = vrot.slane %v3244_v29, 7 }
0x168f   :  { %v1345_v8 = vunpack.c.l.b16 %v1341_v15 }
0x1691   :  { %v1347_v39 = vrot.slane %v1345_v8, 1 }
0x1693   :  { %v1348_v40 = vsel %vm182_vm10, %v1346_v38, %v1347_v39 }
0x1694   :  { %v1349_v13 = vpack.c.b16 %v1348_v40, %v1348_v40 }
0x1696   :  { %1350 = vrot.lane.b32.xlu2 %v1349_v13, %s2813_s10 }
0x16f0   :  { %v1351_v41 = vpop.permute.xlu2 %1350 }
0x16f1   :  { %2533 = vmatmul.msk.bf16.vlgmr.msrb.gmra.mxu2 %vm78_vm11, %v1351_v41 }
0x1774   :  { %v1364_v43 = vpop.f32.mrf.mxu2 }
0x1775   :  { %v1365_v44 = vadd.f32 %v3200_v30, %v1364_v43  ;;  %v2031_v43 = vsel %vm978_vm2, %v3220_v31, %v3242_v28 }
0x1777   :  { %v1369_v45 = vrot.slane %v1365_v44, 6  ;;  %v1370_v46 = vrot.slane %v1365_v44, 7  ;;  %v2030_v44 = vsel %vm978_vm2, %v3218_v24, %v3244_v29 }
0x1779   :  { %1415 = vrot.lane.b32.xlu1 %v1370_v46, %s2812_s7  ;;  %1413 = vrot.lane.b32.xlu0 %v1369_v45, %s2812_s7  ;;  %v1373_v48 = vadd.f32 %v1369_v45, %v3202_v35  ;;  %v1374_v49 = vadd.f32 %v1370_v46, %v3208_v18 }
0x177b   :  { %v2534_v36 = vmul.f32 -1.442695, %v1373_v48  ;;  %v2535_v19 = vmul.f32 -1.442695, %v1374_v49 }
0x177c   :  { %v1366_v47 = vpop.f32.mrf.mxu2 }
0x177d   :  { %2717 = vpow2.f32 %v2534_v36 }
0x177e   :  { %2719 = vpow2.f32 %v2535_v19 }
0x1783   :  { %v2718_v21 = vpop.eup %2717 }
0x1784   :  { %v2720_v12 = vpop.eup %2719  ;;  %v1381_v50 = vadd.f32 1.0, %v2718_v21 }
0x1785   :  { %v1382_v51 = vadd.f32 1.0, %v2720_v12 }
0x1786   :  { %2721 = vrcp.f32 %v1381_v50  ;;  %vm1388_vm15 = vweird.f32 %v1381_v50  ;;  %v1394_v42 = vand.u32 2147483648, %v1381_v50  ;;  %v1392_v1 = vand.u32 2147483647, %v1381_v50 }
0x1787   :  { %2723 = vrcp.f32 %v1382_v51  ;;  %v1409_v62 = vand.u32 2147483648, %v1382_v51  ;;  %vm1403_vm4 = vweird.f32 %v1382_v51  ;;  %v1407_v0 = vand.u32 2147483647, %v1382_v51 }
0x1788   :  { %v1395_v34 = vor.u32 1.1754944e-38, %v1394_v42  ;;  %vm1393_vm3 = vcmp.eq.f32.partialorder %v1392_v1, 8.507059e+37 }
0x1789   :  { %v1410_v5 = vor.u32 1.1754944e-38, %v1409_v62  ;;  %vm1408_vm6 = vcmp.eq.f32.partialorder %v1407_v0, 8.507059e+37 }
0x178c   :  { %v2722_v52 = vpop.eup %2721 }
0x178d   :  { %v2724_v53 = vpop.eup %2723  ;;  %v1384_v55 = vmul.f32 %v2722_v52, %v1381_v50  ;;  %vm1389_vm7 = vweird.f32 %v2722_v52 }
0x178e   :  { %v1399_v54 = vmul.f32 %v2724_v53, %v1382_v51  ;;  %vm1404_vm14 = vweird.f32 %v2724_v53  ;;  %vm1390_vm5 = vmor %vm1388_vm15, %vm1389_vm7 }
0x178f   :  { %v1385_v57 = vsub.f32 1.0, %v1384_v55  ;;  %vm1405_vm1 = vmor %vm1403_vm4, %vm1404_vm14 }
0x1790   :  { %v1400_v56 = vsub.f32 1.0, %v1399_v54 }
0x1791   :  { %v1386_v59 = vmul.f32 %v2722_v52, %v1385_v57 }
0x1792   :  { %v1401_v58 = vmul.f32 %v2724_v53, %v1400_v56 }
0x1793   :  { %v1387_v61 = vadd.f32 %v2722_v52, %v1386_v59 }
0x1794   :  { %v1402_v60 = vadd.f32 %v2724_v53, %v1401_v58 }
0x1795   :  { %v1391_v4 = vsel %vm1390_vm5, %v2722_v52, %v1387_v61 }
0x1796   :  { %v1406_v2 = vsel %vm1405_vm1, %v2724_v53, %v1402_v60  ;;  %v1396_v11 = vsel %vm1393_vm3, %v1395_v34, %v1391_v4 }
0x1797   :  { %v1411_v10 = vsel %vm1408_vm6, %v1410_v5, %v1406_v2  ;;  %v1433_v26 = vsub.f32 1.0, %v1396_v11  ;;  %v1451_v8 = vmul.f32 %v1447_v27, %v1396_v11 }
0x1798   :  { %v1434_v32 = vsub.f32 1.0, %v1411_v10  ;;  %v1452_v39 = vmul.f32 %v1448_v33, %v1411_v10 }
0x17eb   :  { %v1416_v9 = vpop.permute.xlu1 %1415  ;;  %v1414_v22 = vpop.permute.xlu0 %1413 }
0x17ec   :  { %v1420_v17 = vmul.f32 %v1416_v9, %v1411_v10  ;;  %v1419_v20 = vmul.f32 %v1414_v22, %v1396_v11 }
0x17ee   :  { %1425 = vrot.lane.b32.xlu0 %v1420_v17, %s2812_s7  ;;  %1423 = vrot.lane.b32.xlu2 %v1419_v20, %s2812_s7 }
0x1848   :  { %v1424_v63 = vpop.permute.xlu2 %1423 }
0x1849   :  { %v1429_v3 = vadd.f32 %v1424_v63, %v3202_v35 }
0x184b   :  { %2725 = vtanh.f32 %v1429_v3 }
0x1851   :  { %v2726_v23 = vpop.eup %2725 }
0x1852   :  { %1437 = vrot.lane.b32.xlu1 %v2726_v23, %s2813_s10 }
0x1860   :  { %v1426_v6 = vpop.permute.xlu0 %1425 }
0x1861   :  { %v1430_v7 = vadd.f32 %v1426_v6, %v3208_v18 }
0x1863   :  { %2727 = vtanh.f32 %v1430_v7 }
0x1869   :  { %v2728_v25 = vpop.eup %2727 }
0x186a   :  { %1439 = vrot.lane.b32.xlu2 %v2728_v25, %s2813_s10 }
0x18c4   :  { %v1438_v37 = vpop.permute.xlu1 %1437  ;;  %v1440_v15 = vpop.permute.xlu2 %1439 }
0x18c5   :  { %v1443_v38 = vmul.f32 %v1438_v37, %v1433_v26  ;;  %v1444_v40 = vmul.f32 %v1440_v15, %v1434_v32 }
0x18c7   :  { %v3266_v13 = vadd.f32 %v1451_v8, %v1443_v38  ;;  %v1454_v41 = vadd.f32 %v1452_v39, %v1444_v40 }
0x18c9   :  { %v1455_v45 = vpack.c.bf16 %v3266_v13, %v3266_v13  ;;  %v3278_v46 = vsel %vm50_vm0, %v2030_v44, %v3266_v13  ;;  %v1456_v47 = vpack.c.bf16 %v1454_v41, %v1454_v41  ;;  %v3281_v48 = vsel %vm50_vm0, %v2031_v43, %v1454_v41 }
0x18ca   :  { %v1563_v2 = vrot.slane %v1454_v41, 7  ;;  %v1562_v44 = vrot.slane %v3266_v13, 7 }
0x18cb   :  { %v1459_v49 = vunpack.c.l.b16 %v1455_v45  ;;  %v1460_v36 = vunpack.c.l.b16 %v1456_v47 }
0x18cd   :  { %v1461_v19 = vrot.slane %v1459_v49, 2  ;;  %v1462_v21 = vrot.slane %v1460_v36, 1 }
0x18cf   :  { %v1463_v31 = vsel %vm182_vm10, %v1462_v21, %v1461_v19 }
0x18d0   :  { %v1464_v28 = vpack.c.b16 %v1463_v31, %v1463_v31 }
0x18d2   :  { %1465 = vrot.lane.b32.xlu0 %v1464_v28, %s2813_s10 }
0x1944   :  { %v1466_v24 = vpop.permute.xlu0 %1465 }
0x1945   :  { %2536 = vmatmul.msk.bf16.vlgmr.msrb.gmra.mxu3 %vm78_vm11, %v1466_v24 }
0x19c8   :  { %v1479_v29 = vpop.f32.mrf.mxu3 }
0x19c9   :  { %v1480_v12 = vadd.f32 %v3200_v30, %v1479_v29 }
0x19cb   :  { %v1484_v50 = vrot.slane %v1480_v12, 5  ;;  %v1485_v51 = vrot.slane %v1480_v12, 6 }
0x19cd   :  { %v1489_v52 = vadd.f32 %v1485_v51, %v3208_v18  ;;  %1530 = vrot.lane.b32.xlu2 %v1485_v51, %s2812_s7  ;;  %1528 = vrot.lane.b32.xlu1 %v1484_v50, %s2812_s7  ;;  %v1488_v34 = vadd.f32 %v1484_v50, %v3202_v35 }
0x19cf   :  { %v2538_v53 = vmul.f32 -1.442695, %v1489_v52  ;;  %v2537_v9 = vmul.f32 -1.442695, %v1488_v34 }
0x19d0   :  { %v1481_v54 = vpop.f32.mrf.mxu3 }
0x19d1   :  { %2729 = vpow2.f32 %v2538_v53 }
0x19d7   :  { %v2730_v55 = vpop.eup %2729 }
0x19d8   :  { %v1497_v56 = vadd.f32 1.0, %v2730_v55 }
0x19da   :  { %2731 = vrcp.f32 %v1497_v56  ;;  %v1524_v60 = vand.u32 2147483648, %v1497_v56  ;;  %v1522_v62 = vand.u32 2147483647, %v1497_v56  ;;  %vm1518_vm7 = vweird.f32 %v1497_v56 }
0x19db   :  { %2733 = vpow2.f32 %v2537_v9 }
0x19dc   :  { %v1525_v0 = vor.u32 1.1754944e-38, %v1524_v60  ;;  %vm1523_vm15 = vcmp.eq.f32.partialorder %v1522_v62, 8.507059e+37 }
0x19e0   :  { %v2732_v57 = vpop.eup %2731 }
0x19e1   :  { %v1514_v58 = vmul.f32 %v2732_v57, %v1497_v56  ;;  %vm1519_vm3 = vweird.f32 %v2732_v57  ;;  %v2734_v10 = vpop.eup %2733 }
0x19e2   :  { %vm1520_vm14 = vmor %vm1518_vm7, %vm1519_vm3  ;;  %v1496_v22 = vadd.f32 1.0, %v2734_v10 }
0x19e3   :  { %v1515_v59 = vsub.f32 1.0, %v1514_v58 }
0x19e4   :  { %2735 = vrcp.f32 %v1496_v22  ;;  %v1509_v7 = vand.u32 2147483648, %v1496_v22  ;;  %vm1503_vm5 = vweird.f32 %v1496_v22  ;;  %v1507_v25 = vand.u32 2147483647, %v1496_v22 }
0x19e5   :  { %v1516_v61 = vmul.f32 %v2732_v57, %v1515_v59 }
0x19e6   :  { %v1510_v27 = vor.u32 1.1754944e-38, %v1509_v7  ;;  %vm1508_vm6 = vcmp.eq.f32.partialorder %v1507_v25, 8.507059e+37 }
0x19e7   :  { %v1517_v42 = vadd.f32 %v2732_v57, %v1516_v61 }
0x19e9   :  { %v1521_v1 = vsel %vm1520_vm14, %v2732_v57, %v1517_v42 }
0x19ea   :  { %v1526_v4 = vsel %vm1523_vm15, %v1525_v0, %v1521_v1  ;;  %v2736_v20 = vpop.eup %2735 }
0x19eb   :  { %v1567_v5 = vmul.f32 %v1563_v2, %v1526_v4  ;;  %v1499_v63 = vmul.f32 %v2736_v20, %v1496_v22  ;;  %vm1504_vm4 = vweird.f32 %v2736_v20  ;;  %v1549_v45 = vsub.f32 1.0, %v1526_v4 }
0x19ec   :  { %vm1505_vm1 = vmor %vm1503_vm5, %vm1504_vm4 }
0x19ed   :  { %v1500_v3 = vsub.f32 1.0, %v1499_v63 }
0x19ef   :  { %v1501_v23 = vmul.f32 %v2736_v20, %v1500_v3 }
0x19f1   :  { %v1502_v6 = vadd.f32 %v2736_v20, %v1501_v23 }
0x19f3   :  { %v1506_v26 = vsel %vm1505_vm1, %v2736_v20, %v1502_v6 }
0x19f4   :  { %v1511_v33 = vsel %vm1508_vm6, %v1510_v27, %v1506_v26 }
0x19f5   :  { %v1548_v43 = vsub.f32 1.0, %v1511_v33  ;;  %v1566_v36 = vmul.f32 %v1562_v44, %v1511_v33 }
0x1a27   :  { %v1531_v11 = vpop.permute.xlu2 %1530 }
0x1a28   :  { %v1535_v17 = vmul.f32 %v1531_v11, %v1526_v4 }
0x1a2a   :  { %1540 = vrot.lane.b32.xlu1 %v1535_v17, %s2812_s7 }
0x1a3f   :  { %v1529_v32 = vpop.permute.xlu1 %1528 }
0x1a40   :  { %v1534_v37 = vmul.f32 %v1529_v32, %v1511_v33 }
0x1a42   :  { %1538 = vrot.lane.b32.xlu0 %v1534_v37, %s2812_s7 }
0x1a9c   :  { %v1541_v15 = vpop.permute.xlu1 %1540 }
0x1a9d   :  { %v1545_v8 = vadd.f32 %v1541_v15, %v3208_v18 }
0x1a9f   :  { %2737 = vtanh.f32 %v1545_v8 }
0x1aa5   :  { %v2738_v38 = vpop.eup %2737 }
0x1aa6   :  { %1554 = vrot.lane.b32.xlu0 %v2738_v38, %s2813_s10 }
0x1ab4   :  { %v1539_v39 = vpop.permute.xlu0 %1538 }
0x1ab5   :  { %v1544_v40 = vadd.f32 %v1539_v39, %v3202_v35 }
0x1ab7   :  { %2739 = vtanh.f32 %v1544_v40 }
0x1abd   :  { %v2740_v41 = vpop.eup %2739 }
0x1abe   :  { %1552 = vrot.lane.b32.xlu2 %v2740_v41, %s2813_s10 }
0x1b18   :  { %v1553_v47 = vpop.permute.xlu2 %1552  ;;  %v1555_v49 = vpop.permute.xlu0 %1554 }
0x1b19   :  { %v1558_v19 = vmul.f32 %v1553_v47, %v1548_v43  ;;  %v1559_v21 = vmul.f32 %v1555_v49, %v1549_v45 }
0x1b1b   :  { %v1568_v31 = vadd.f32 %v1566_v36, %v1558_v19  ;;  %v3298_v28 = vadd.f32 %v1567_v5, %v1559_v21 }
0x1b1d   :  { %v1570_v24 = vpack.c.bf16 %v1568_v31, %v1568_v31  ;;  %v3302_v29 = vsel %vm983_vm13, %v3278_v46, %v1568_v31  ;;  %v1571_v12 = vpack.c.bf16 %v3298_v28, %v3298_v28  ;;  %v3309_v13 = vsel %vm983_vm13, %v3281_v48, %v3298_v28 }
0x1b1e   :  { %v1677_v11 = vrot.slane %v1568_v31, 7  ;;  %v1678_v31 = vrot.slane %v3298_v28, 7 }
0x1b1f   :  { %v1574_v50 = vunpack.c.l.b16 %v1570_v24  ;;  %v1575_v51 = vunpack.c.l.b16 %v1571_v12 }
0x1b21   :  { %v1576_v52 = vrot.slane %v1574_v50, 3  ;;  %v1577_v53 = vrot.slane %v1575_v51, 2 }
0x1b23   :  { %v1578_v54 = vsel %vm182_vm10, %v1577_v53, %v1576_v52 }
0x1b24   :  { %v1579_v55 = vpack.c.b16 %v1578_v54, %v1578_v54 }
0x1b26   :  { %1580 = vrot.lane.b32.xlu1 %v1579_v55, %s2813_s10 }
0x1b98   :  { %v1581_v56 = vpop.permute.xlu1 %1580 }
0x1b99   :  { %2539 = vmatmul.msk.bf16.vlgmr.msra.gmra.mxu0 %vm78_vm11, %v1581_v56 }
0x1c16   :  { %v1594_v46 = vpop.f32.mrf.mxu0 }
0x1c17   :  { %v1595_v57 = vadd.f32 %v3200_v30, %v1594_v46 }
0x1c19   :  { %v1599_v58 = vrot.slane %v1595_v57, 4  ;;  %v1600_v59 = vrot.slane %v1595_v57, 5 }
0x1c1b   :  { %v1603_v48 = vadd.f32 %v1599_v58, %v3202_v35  ;;  %1645 = vrot.lane.b32.xlu0 %v1600_v59, %s2812_s7  ;;  %1643 = vrot.lane.b32.xlu2 %v1599_v58, %s2812_s7  ;;  %v1604_v63 = vadd.f32 %v1600_v59, %v3208_v18 }
0x1c1d   :  { %v2540_v60 = vmul.f32 -1.442695, %v1603_v48  ;;  %v2541_v3 = vmul.f32 -1.442695, %v1604_v63 }
0x1c1e   :  { %v1596_v61 = vpop.f32.mrf.mxu0 }
0x1c1f   :  { %2741 = vpow2.f32 %v2540_v60 }
0x1c25   :  { %v2742_v62 = vpop.eup %2741 }
0x1c26   :  { %v1611_v42 = vadd.f32 1.0, %v2742_v62 }
0x1c28   :  { %2743 = vrcp.f32 %v1611_v42  ;;  %v1624_v4 = vand.u32 2147483648, %v1611_v42  ;;  %v1622_v34 = vand.u32 2147483647, %v1611_v42  ;;  %vm1618_vm7 = vweird.f32 %v1611_v42 }
0x1c29   :  { %2745 = vpow2.f32 %v2541_v3 }
0x1c2a   :  { %v1625_v10 = vor.u32 1.1754944e-38, %v1624_v4  ;;  %vm1623_vm15 = vcmp.eq.f32.partialorder %v1622_v34, 8.507059e+37 }
0x1c2e   :  { %v2744_v0 = vpop.eup %2743 }
0x1c2f   :  { %v1614_v1 = vmul.f32 %v2744_v0, %v1611_v42  ;;  %vm1619_vm3 = vweird.f32 %v2744_v0  ;;  %v2746_v23 = vpop.eup %2745 }
0x1c30   :  { %vm1620_vm14 = vmor %vm1618_vm7, %vm1619_vm3  ;;  %v1612_v6 = vadd.f32 1.0, %v2746_v23 }
0x1c31   :  { %v1615_v2 = vsub.f32 1.0, %v1614_v1 }
0x1c32   :  { %2747 = vrcp.f32 %v1612_v6  ;;  %v1639_v15 = vand.u32 2147483648, %v1612_v6  ;;  %vm1633_vm5 = vweird.f32 %v1612_v6  ;;  %v1637_v8 = vand.u32 2147483647, %v1612_v6 }
0x1c33   :  { %v1616_v5 = vmul.f32 %v2744_v0, %v1615_v2 }
0x1c34   :  { %v1640_v39 = vor.u32 1.1754944e-38, %v1639_v15  ;;  %vm1638_vm6 = vcmp.eq.f32.partialorder %v1637_v8, 8.507059e+37 }
0x1c35   :  { %v1617_v9 = vadd.f32 %v2744_v0, %v1616_v5 }
0x1c37   :  { %v1621_v22 = vsel %vm1620_vm14, %v2744_v0, %v1617_v9 }
0x1c38   :  { %v1626_v17 = vsel %vm1623_vm15, %v1625_v10, %v1621_v22  ;;  %v2748_v26 = vpop.eup %2747 }
0x1c39   :  { %v1681_v20 = vmul.f32 %v1677_v11, %v1626_v17  ;;  %v1629_v27 = vmul.f32 %v2748_v26, %v1612_v6  ;;  %vm1634_vm4 = vweird.f32 %v2748_v26  ;;  %v1663_v24 = vsub.f32 1.0, %v1626_v17 }
0x1c3a   :  { %vm1635_vm1 = vmor %vm1633_vm5, %vm1634_vm4 }
0x1c3b   :  { %v1630_v32 = vsub.f32 1.0, %v1629_v27 }
0x1c3d   :  { %v1631_v33 = vmul.f32 %v2748_v26, %v1630_v32 }
0x1c3f   :  { %v1632_v37 = vadd.f32 %v2748_v26, %v1631_v33 }
0x1c41   :  { %v1636_v38 = vsel %vm1635_vm1, %v2748_v26, %v1632_v37 }
0x1c42   :  { %v1641_v41 = vsel %vm1638_vm6, %v1640_v39, %v1636_v38 }
0x1c43   :  { %v1664_v21 = vsub.f32 1.0, %v1641_v41  ;;  %v1682_v51 = vmul.f32 %v1678_v31, %v1641_v41 }
0x1c75   :  { %v1644_v7 = vpop.permute.xlu2 %1643 }
0x1c76   :  { %v1649_v25 = vmul.f32 %v1644_v7, %v1626_v17 }
0x1c78   :  { %1653 = vrot.lane.b32.xlu1 %v1649_v25, %s2812_s7 }
0x1c8d   :  { %v1646_v40 = vpop.permute.xlu0 %1645 }
0x1c8e   :  { %v1650_v43 = vmul.f32 %v1646_v40, %v1641_v41 }
0x1c90   :  { %1655 = vrot.lane.b32.xlu2 %v1650_v43, %s2812_s7 }
0x1cea   :  { %v1656_v44 = vpop.permute.xlu2 %1655  ;;  %v1654_v45 = vpop.permute.xlu1 %1653 }
0x1ceb   :  { %v1660_v47 = vadd.f32 %v1656_v44, %v3208_v18  ;;  %v1659_v49 = vadd.f32 %v1654_v45, %v3202_v35 }
0x1ced   :  { %2749 = vtanh.f32 %v1660_v47 }
0x1cee   :  { %2751 = vtanh.f32 %v1659_v49 }
0x1cf3   :  { %v2750_v36 = vpop.eup %2749 }
0x1cf4   :  { %v2752_v19 = vpop.eup %2751  ;;  %1669 = vrot.lane.b32.xlu1 %v2750_v36, %s2813_s10 }
0x1cf5   :  { %1667 = vrot.lane.b32.xlu0 %v2752_v19, %s2813_s10 }
0x1d66   :  { %v1670_v12 = vpop.permute.xlu1 %1669 }
0x1d67   :  { %v1668_v50 = vpop.permute.xlu0 %1667  ;;  %v1674_v52 = vmul.f32 %v1670_v12, %v1664_v21 }
0x1d68   :  { %v1673_v53 = vmul.f32 %v1668_v50, %v1663_v24 }
0x1d69   :  { %v3326_v54 = vadd.f32 %v1682_v51, %v1674_v52 }
0x1d6a   :  { %v3328_v55 = vadd.f32 %v1681_v20, %v1673_v53 }
0x1d6b   :  { %v1686_v56 = vpack.c.bf16 %v3326_v54, %v3326_v54  ;;  %v3335_v46 = vsel %vm986_vm9, %v3309_v13, %v3326_v54  ;;  %v1793_v53 = vrot.slane %v3326_v54, 7 }
0x1d6c   :  { %v1685_v28 = vpack.c.bf16 %v3328_v55, %v3328_v55  ;;  %v3342_v57 = vsel %vm986_vm9, %v3302_v29, %v3328_v55  ;;  %v1792_v51 = vrot.slane %v3328_v55, 7 }
0x1d6d   :  { %v1690_v58 = vunpack.c.l.b16 %v1686_v56 }
0x1d6e   :  { %v1689_v59 = vunpack.c.l.b16 %v1685_v28 }
0x1d6f   :  { %v1692_v48 = vrot.slane %v1690_v58, 3 }
0x1d70   :  { %v1691_v60 = vrot.slane %v1689_v59, 4 }
0x1d72   :  { %v1693_v61 = vsel %vm182_vm10, %v1692_v48, %v1691_v60 }
0x1d73   :  { %v1694_v62 = vpack.c.b16 %v1693_v61, %v1693_v61 }
0x1d75   :  { %1695 = vrot.lane.b32.xlu2 %v1694_v62, %s2813_s10 }
0x1dcf   :  { %v1696_v42 = vpop.permute.xlu2 %1695 }
0x1dd0   :  { %2542 = vmatmul.msk.bf16.vlgmr.msrb.gmra.mxu1 %vm78_vm11, %v1696_v42 }
0x1e4d   :  { %v1709_v13 = vpop.f32.mrf.mxu1 }
0x1e4e   :  { %v1710_v0 = vadd.f32 %v3200_v30, %v1709_v13 }
0x1e50   :  { %v1714_v1 = vrot.slane %v1710_v0, 3  ;;  %v1715_v2 = vrot.slane %v1710_v0, 4 }
0x1e52   :  { %1760 = vrot.lane.b32.xlu1 %v1715_v2, %s2812_s7  ;;  %1758 = vrot.lane.b32.xlu0 %v1714_v1, %s2812_s7  ;;  %v1718_v4 = vadd.f32 %v1714_v1, %v3202_v35  ;;  %v1719_v5 = vadd.f32 %v1715_v2, %v3208_v18 }
0x1e54   :  { %v2543_v34 = vmul.f32 -1.442695, %v1718_v4  ;;  %v2544_v9 = vmul.f32 -1.442695, %v1719_v5 }
0x1e55   :  { %v1711_v29 = vpop.f32.mrf.mxu1 }
0x1e56   :  { %2753 = vpow2.f32 %v2543_v34 }
0x1e57   :  { %2755 = vpow2.f32 %v2544_v9 }
0x1e5c   :  { %v2754_v10 = vpop.eup %2753 }
0x1e5d   :  { %v2756_v22 = vpop.eup %2755  ;;  %v1726_v11 = vadd.f32 1.0, %v2754_v10 }
0x1e5e   :  { %v1727_v17 = vadd.f32 1.0, %v2756_v22 }
0x1e5f   :  { %2757 = vrcp.f32 %v1726_v11  ;;  %vm1733_vm14 = vweird.f32 %v1726_v11  ;;  %v1739_v33 = vand.u32 2147483648, %v1726_v11  ;;  %v1737_v15 = vand.u32 2147483647, %v1726_v11 }
0x1e60   :  { %2759 = vrcp.f32 %v1727_v17  ;;  %v1754_v32 = vand.u32 2147483648, %v1727_v17  ;;  %vm1748_vm15 = vweird.f32 %v1727_v17  ;;  %v1752_v37 = vand.u32 2147483647, %v1727_v17 }
0x1e61   :  { %v1740_v40 = vor.u32 1.1754944e-38, %v1739_v33  ;;  %vm1738_vm6 = vcmp.eq.f32.partialorder %v1737_v15, 8.507059e+37 }
0x1e62   :  { %v1755_v39 = vor.u32 1.1754944e-38, %v1754_v32  ;;  %vm1753_vm1 = vcmp.eq.f32.partialorder %v1752_v37, 8.507059e+37 }
0x1e65   :  { %v2758_v30 = vpop.eup %2757 }
0x1e66   :  { %v2760_v20 = vpop.eup %2759  ;;  %v1729_v3 = vmul.f32 %v2758_v30, %v1726_v11  ;;  %vm1734_vm3 = vweird.f32 %v2758_v30 }
0x1e67   :  { %v1744_v63 = vmul.f32 %v2760_v20, %v1727_v17  ;;  %vm1749_vm7 = vweird.f32 %v2760_v20  ;;  %vm1735_vm4 = vmor %vm1733_vm14, %vm1734_vm3 }
0x1e68   :  { %v1730_v6 = vsub.f32 1.0, %v1729_v3  ;;  %vm1750_vm5 = vmor %vm1748_vm15, %vm1749_vm7 }
0x1e69   :  { %v1745_v23 = vsub.f32 1.0, %v1744_v63 }
0x1e6a   :  { %v1731_v25 = vmul.f32 %v2758_v30, %v1730_v6 }
0x1e6b   :  { %v1746_v7 = vmul.f32 %v2760_v20, %v1745_v23 }
0x1e6c   :  { %v1732_v27 = vadd.f32 %v2758_v30, %v1731_v25 }
0x1e6d   :  { %v1747_v26 = vadd.f32 %v2760_v20, %v1746_v7 }
0x1e6e   :  { %v1736_v38 = vsel %vm1735_vm4, %v2758_v30, %v1732_v27 }
0x1e6f   :  { %v1751_v8 = vsel %vm1750_vm5, %v2760_v20, %v1747_v26  ;;  %v1741_v45 = vsel %vm1738_vm6, %v1740_v40, %v1736_v38 }
0x1e70   :  { %v1756_v43 = vsel %vm1753_vm1, %v1755_v39, %v1751_v8  ;;  %v1778_v50 = vsub.f32 1.0, %v1741_v45  ;;  %v1796_v58 = vmul.f32 %v1792_v51, %v1741_v45 }
0x1e71   :  { %v1779_v52 = vsub.f32 1.0, %v1756_v43  ;;  %v1797_v48 = vmul.f32 %v1793_v53, %v1756_v43 }
0x1ec4   :  { %v1761_v41 = vpop.permute.xlu1 %1760  ;;  %v1759_v44 = vpop.permute.xlu0 %1758 }
0x1ec5   :  { %v1765_v47 = vmul.f32 %v1761_v41, %v1756_v43  ;;  %v1764_v49 = vmul.f32 %v1759_v44, %v1741_v45 }
0x1ec7   :  { %1770 = vrot.lane.b32.xlu0 %v1765_v47, %s2812_s7  ;;  %1768 = vrot.lane.b32.xlu2 %v1764_v49, %s2812_s7 }
0x1f21   :  { %v1769_v36 = vpop.permute.xlu2 %1768 }
0x1f22   :  { %v1774_v19 = vadd.f32 %v1769_v36, %v3202_v35 }
0x1f24   :  { %2761 = vtanh.f32 %v1774_v19 }
0x1f2a   :  { %v2762_v21 = vpop.eup %2761 }
0x1f2b   :  { %1782 = vrot.lane.b32.xlu1 %v2762_v21, %s2813_s10 }
0x1f39   :  { %v1771_v31 = vpop.permute.xlu0 %1770 }
0x1f3a   :  { %v1775_v24 = vadd.f32 %v1771_v31, %v3208_v18 }
0x1f3c   :  { %2763 = vtanh.f32 %v1775_v24 }
0x1f42   :  { %v2764_v12 = vpop.eup %2763 }
0x1f43   :  { %1784 = vrot.lane.b32.xlu2 %v2764_v12, %s2813_s10 }
0x1f9d   :  { %v1783_v56 = vpop.permute.xlu1 %1782  ;;  %v1785_v28 = vpop.permute.xlu2 %1784 }
0x1f9e   :  { %v1788_v59 = vmul.f32 %v1783_v56, %v1778_v50  ;;  %v1789_v60 = vmul.f32 %v1785_v28, %v1779_v52 }
0x1fa0   :  { %v3360_v61 = vadd.f32 %v1796_v58, %v1788_v59  ;;  %v1799_v62 = vadd.f32 %v1797_v48, %v1789_v60 }
0x1fa2   :  { %v1800_v42 = vpack.c.bf16 %v3360_v61, %v3360_v61  ;;  %v1801_v13 = vpack.c.bf16 %v1799_v62, %v1799_v62  ;;  %v3367_v55 = vsel %vm989_vm8, %v3342_v57, %v3360_v61  ;;  %v3371_v54 = vsel %vm989_vm8, %v3335_v46, %v1799_v62  ;;  %v3379_v57 = vld [vmem:[%s3546_s1 + $0x88] ss:$0 sm:$0xff] }
0x1fa3   :  { %v1908_v37 = vrot.slane %v1799_v62, 7  ;;  %v1907_v62 = vrot.slane %v3360_v61, 7 }
0x1fa4   :  { %v1804_v0 = vunpack.c.l.b16 %v1800_v42  ;;  %v1805_v1 = vunpack.c.l.b16 %v1801_v13 }
0x1fa6   :  { %v1806_v2 = vrot.slane %v1804_v0, 5  ;;  %v1807_v29 = vrot.slane %v1805_v1, 4 }
0x1fa8   :  { %v1808_v4 = vsel %vm182_vm10, %v1807_v29, %v1806_v2 }
0x1fa9   :  { %v1809_v5 = vpack.c.b16 %v1808_v4, %v1808_v4 }
0x1fab   :  { %1810 = vrot.lane.b32.xlu0 %v1809_v5, %s2813_s10 }
0x201d   :  { %v1811_v34 = vpop.permute.xlu0 %1810 }
0x201e   :  { %2545 = vmatmul.msk.bf16.vlgmr.msra.gmra.mxu2 %vm78_vm11, %v1811_v34 }
0x20a1   :  { %v1824_v9 = vpop.f32.mrf.mxu2 }
0x20a2   :  { %v1825_v46 = vadd.f32 %v3379_v57, %v1824_v9 }
0x20a4   :  { %v1829_v10 = vrot.slane %v1825_v46, 2  ;;  %v1830_v22 = vrot.slane %v1825_v46, 3 }
0x20a6   :  { %v1834_v11 = vadd.f32 %v1830_v22, %v3208_v18  ;;  %1875 = vrot.lane.b32.xlu2 %v1830_v22, %s2812_s7  ;;  %1873 = vrot.lane.b32.xlu1 %v1829_v10, %s2812_s7  ;;  %v1833_v38 = vadd.f32 %v1829_v10, %v3202_v35 }
0x20a8   :  { %v2547_v17 = vmul.f32 -1.442695, %v1834_v11  ;;  %v2546_v39 = vmul.f32 -1.442695, %v1833_v38 }
0x20a9   :  { %v1826_v30 = vpop.f32.mrf.mxu2 }
0x20aa   :  { %2765 = vpow2.f32 %v2547_v17 }
0x20b0   :  { %v2766_v20 = vpop.eup %2765 }
0x20b1   :  { %v1842_v63 = vadd.f32 1.0, %v2766_v20 }
0x20b3   :  { %2767 = vrcp.f32 %v1842_v63  ;;  %v1869_v7 = vand.u32 2147483648, %v1842_v63  ;;  %v1867_v26 = vand.u32 2147483647, %v1842_v63  ;;  %vm1863_vm3 = vweird.f32 %v1842_v63 }
0x20b4   :  { %2769 = vpow2.f32 %v2546_v39 }
0x20b5   :  { %v1870_v32 = vor.u32 1.1754944e-38, %v1869_v7  ;;  %vm1868_vm14 = vcmp.eq.f32.partialorder %v1867_v26, 8.507059e+37 }
0x20b9   :  { %v2768_v3 = vpop.eup %2767 }
0x20ba   :  { %v1859_v23 = vmul.f32 %v2768_v3, %v1842_v63  ;;  %vm1864_vm8 = vweird.f32 %v2768_v3  ;;  %v2770_v40 = vpop.eup %2769 }
0x20bb   :  { %vm1865_vm7 = vmor %vm1863_vm3, %vm1864_vm8  ;;  %v1841_v41 = vadd.f32 1.0, %v2770_v40 }
0x20bc   :  { %v1860_v6 = vsub.f32 1.0, %v1859_v23 }
0x20bd   :  { %2771 = vrcp.f32 %v1841_v41  ;;  %v1854_v21 = vand.u32 2147483648, %v1841_v41  ;;  %vm1848_vm4 = vweird.f32 %v1841_v41  ;;  %v1852_v31 = vand.u32 2147483647, %v1841_v41 }
0x20be   :  { %v1861_v25 = vmul.f32 %v2768_v3, %v1860_v6 }
0x20bf   :  { %v1855_v12 = vor.u32 1.1754944e-38, %v1854_v21  ;;  %vm1853_vm1 = vcmp.eq.f32.partialorder %v1852_v31, 8.507059e+37 }
0x20c0   :  { %v1862_v27 = vadd.f32 %v2768_v3, %v1861_v25 }
0x20c2   :  { %v1866_v33 = vsel %vm1865_vm7, %v2768_v3, %v1862_v27 }
0x20c3   :  { %v1871_v15 = vsel %vm1868_vm14, %v1870_v32, %v1866_v33  ;;  %v2772_v45 = vpop.eup %2771 }
0x20c4   :  { %v1912_v8 = vmul.f32 %v1908_v37, %v1871_v15  ;;  %v1844_v47 = vmul.f32 %v2772_v45, %v1841_v41  ;;  %vm1849_vm15 = vweird.f32 %v2772_v45  ;;  %v1894_v42 = vsub.f32 1.0, %v1871_v15 }
0x20c5   :  { %vm1850_vm5 = vmor %vm1848_vm4, %vm1849_vm15 }
0x20c6   :  { %v1845_v49 = vsub.f32 1.0, %v1844_v47 }
0x20c8   :  { %v1846_v36 = vmul.f32 %v2772_v45, %v1845_v49 }
0x20ca   :  { %v1847_v19 = vadd.f32 %v2772_v45, %v1846_v36 }
0x20cc   :  { %v1851_v24 = vsel %vm1850_vm5, %v2772_v45, %v1847_v19  ;;  %vm3552_vm5 = vcmask 1046528  }
0x20cd   :  { %v1856_v51 = vsel %vm1853_vm1, %v1855_v12, %v1851_v24  ;;  %vm3553_vm1 = vmmov %vm3552_vm5 }
0x20ce   :  { %v1893_v60 = vsub.f32 1.0, %v1856_v51  ;;  %v1911_v1 = vmul.f32 %v1907_v62, %v1856_v51 }
0x2100   :  { %v1876_v43 = vpop.permute.xlu2 %1875 }
0x2101   :  { %v1880_v44 = vmul.f32 %v1876_v43, %v1871_v15 }
0x2103   :  { %1885 = vrot.lane.b32.xlu1 %v1880_v44, %s2812_s7 }
0x2118   :  { %v1874_v50 = vpop.permute.xlu1 %1873 }
0x2119   :  { %v1879_v52 = vmul.f32 %v1874_v50, %v1856_v51 }
0x211b   :  { %1883 = vrot.lane.b32.xlu0 %v1879_v52, %s2812_s7 }
0x2175   :  { %v1886_v53 = vpop.permute.xlu1 %1885 }
0x2176   :  { %v1890_v56 = vadd.f32 %v1886_v53, %v3208_v18 }
0x2178   :  { %2773 = vtanh.f32 %v1890_v56 }
0x217e   :  { %v2774_v28 = vpop.eup %2773 }
0x217f   :  { %1899 = vrot.lane.b32.xlu0 %v2774_v28, %s2813_s10 }
0x218d   :  { %v1884_v58 = vpop.permute.xlu0 %1883 }
0x218e   :  { %v1889_v59 = vadd.f32 %v1884_v58, %v3202_v35 }
0x2190   :  { %2775 = vtanh.f32 %v1889_v59 }
0x2196   :  { %v2776_v48 = vpop.eup %2775 }
0x2197   :  { %1897 = vrot.lane.b32.xlu2 %v2776_v48, %s2813_s10 }
0x21f1   :  { %v1898_v13 = vpop.permute.xlu2 %1897  ;;  %v1900_v0 = vpop.permute.xlu0 %1899 }
0x21f2   :  { %v1903_v2 = vmul.f32 %v1898_v13, %v1893_v60  ;;  %v1904_v29 = vmul.f32 %v1900_v0, %v1894_v42 }
0x21f4   :  { %v1913_v4 = vadd.f32 %v1911_v1, %v1903_v2  ;;  %v3393_v5 = vadd.f32 %v1912_v8, %v1904_v29 }
0x21f6   :  { %v1915_v34 = vpack.c.bf16 %v1913_v4, %v1913_v4  ;;  %v1916_v9 = vpack.c.bf16 %v3393_v5, %v3393_v5  ;;  %v3399_v46 = vsel %vm992_vm12, %v3367_v55, %v1913_v4  ;;  %v3404_v61 = vsel %vm992_vm12, %v3371_v54, %v3393_v5 }
0x21f7   :  { %v2022_v41 = vrot.slane %v1913_v4, 7 }
0x21f8   :  { %v1919_v10 = vunpack.c.l.b16 %v1915_v34  ;;  %v1920_v22 = vunpack.c.l.b16 %v1916_v9 }
0x21fa   :  { %v1921_v11 = vrot.slane %v1919_v10, 6  ;;  %v1922_v17 = vrot.slane %v1920_v22, 5 }
0x21fc   :  { %v1923_v30 = vsel %vm182_vm10, %v1922_v17, %v1921_v11 }
0x21fd   :  { %v1924_v20 = vpack.c.b16 %v1923_v30, %v1923_v30 }
0x21ff   :  { %1925 = vrot.lane.b32.xlu1 %v1924_v20, %s2813_s10  ;;  %v2177_v20 = vld [vmem:[%s3548_s2 + $0x50] sm:$0xff] }
0x2271   :  { %v1926_v63 = vpop.permute.xlu1 %1925 }
0x2272   :  { %2548 = vmatmul.msk.bf16.vlgmr.msra.gmra.mxu3 %vm78_vm11, %v1926_v63 }
0x22f5   :  { %v1939_v3 = vpop.f32.mrf.mxu3 }
0x22f6   :  { %v1940_v55 = vadd.f32 %v3379_v57, %v1939_v3 }
0x22f8   :  { %v1944_v23 = vrot.slane %v1940_v55, 1  ;;  %v1945_v6 = vrot.slane %v1940_v55, 2 }
0x22fa   :  { %v1948_v54 = vadd.f32 %v1944_v23, %v3202_v35  ;;  %1990 = vrot.lane.b32.xlu0 %v1945_v6, %s2812_s7  ;;  %1988 = vrot.lane.b32.xlu2 %v1944_v23, %s2812_s7  ;;  %v1949_v45 = vadd.f32 %v1945_v6, %v3208_v18 }
0x22fc   :  { %v2549_v7 = vmul.f32 -1.442695, %v1948_v54  ;;  %v2550_v47 = vmul.f32 -1.442695, %v1949_v45 }
0x22fd   :  { %v1941_v25 = vpop.f32.mrf.mxu3 }
0x22fe   :  { %2777 = vpow2.f32 %v2549_v7 }
0x2304   :  { %v2778_v26 = vpop.eup %2777 }
0x2305   :  { %v1956_v27 = vadd.f32 1.0, %v2778_v26 }
0x2307   :  { %2779 = vrcp.f32 %v1956_v27  ;;  %v1969_v15 = vand.u32 2147483648, %v1956_v27  ;;  %v1967_v57 = vand.u32 2147483647, %v1956_v27  ;;  %vm1963_vm6 = vweird.f32 %v1956_v27 }
0x2308   :  { %2781 = vpow2.f32 %v2550_v47 }
0x2309   :  { %v1970_v39 = vor.u32 1.1754944e-38, %v1969_v15  ;;  %vm1968_vm3 = vcmp.eq.f32.partialorder %v1967_v57, 8.507059e+37 }
0x230d   :  { %v2780_v32 = vpop.eup %2779 }
0x230e   :  { %v1959_v33 = vmul.f32 %v2780_v32, %v1956_v27  ;;  %vm1964_vm10 = vweird.f32 %v2780_v32  ;;  %v2782_v49 = vpop.eup %2781 }
0x230f   :  { %vm1965_vm8 = vmor %vm1963_vm6, %vm1964_vm10  ;;  %v1957_v36 = vadd.f32 1.0, %v2782_v49  ;;  %vm2104_vm10 = vcmask 64512   ;;  %vm2288_vm6 = vcmask 48128  }
0x2310   :  { %v1960_v37 = vsub.f32 1.0, %v1959_v33 }
0x2311   :  { %2783 = vrcp.f32 %v1957_v36  ;;  %v1984_v52 = vand.u32 2147483648, %v1957_v36  ;;  %vm1978_vm14 = vweird.f32 %v1957_v36  ;;  %v1982_v53 = vand.u32 2147483647, %v1957_v36 }
0x2312   :  { %v1961_v8 = vmul.f32 %v2780_v32, %v1960_v37 }
0x2313   :  { %v1985_v28 = vor.u32 1.1754944e-38, %v1984_v52  ;;  %vm1983_vm4 = vcmp.eq.f32.partialorder %v1982_v53, 8.507059e+37  ;;  %v2184_v52 = vld [vmem:[%s3549_s3] sm:$0xff]  ;;  %v2280_v53 = vld [vmem:[%s3549_s3 + $0x38] sm:$0xff] }
0x2314   :  { %v1962_v38 = vadd.f32 %v2780_v32, %v1961_v8 }
0x2316   :  { %v1966_v40 = vsel %vm1965_vm8, %v2780_v32, %v1962_v38  ;;  %v2182_v38 = vld [vmem:[%s3548_s2 + $0x78] sm:$0xff] }
0x2317   :  { %v1971_v43 = vsel %vm1968_vm3, %v1970_v39, %v1966_v40  ;;  %v2784_v31 = vpop.eup %2783  ;;  %v2181_v39 = vld [vmem:[%s3548_s2 + $0x70] sm:$0xff]  ;;  %v2180_v40 = vld [vmem:[%s3548_s2 + $0x68] sm:$0xff] }
0x2318   :  { %v2026_v44 = vmul.f32 %v2022_v41, %v1971_v43  ;;  %v1974_v24 = vmul.f32 %v2784_v31, %v1957_v36  ;;  %vm1979_vm7 = vweird.f32 %v2784_v31  ;;  %v2008_v29 = vsub.f32 1.0, %v1971_v43  ;;  %v2179_v41 = vld [vmem:[%s3548_s2 + $0x60] sm:$0xff] }
0x2319   :  { %vm1980_vm15 = vmor %vm1978_vm14, %vm1979_vm7 }
0x231a   :  { %v1975_v12 = vsub.f32 1.0, %v1974_v24  ;;  %v2810_v24 = vld [vmem:[%s3547_s0 + $0x8] sm:$0xff] }
0x231c   :  { %v1976_v50 = vmul.f32 %v2784_v31, %v1975_v12  ;;  %v2187_v12 = vld [vmem:[%s3549_s3 + $0x18] sm:$0xff] }
0x231e   :  { %v1977_v51 = vadd.f32 %v2784_v31, %v1976_v50  ;;  %v2186_v50 = vld [vmem:[%s3549_s3 + $0x10] sm:$0xff] }
0x2320   :  { %v1981_v56 = vsel %vm1980_vm15, %v2784_v31, %v1977_v51  ;;  %v2809_v31 = vld [vmem:[%s3547_s0] sm:$0xff]  ;;  %v2185_v51 = vld [vmem:[%s3549_s3 + $0x8] sm:$0xff] }
0x2321   :  { %v1986_v59 = vsel %vm1983_vm4, %v1985_v28, %v1981_v56  ;;  %v2278_v56 = vld [vmem:[%s3549_s3 + $0x28] sm:$0xff] }
0x2322   :  { %v2381_v28 = vrot.slane %v2278_v56, 3 }
0x2354   :  { %v1989_v19 = vpop.permute.xlu2 %1988 }
0x2355   :  { %v1994_v21 = vmul.f32 %v1989_v19, %v1971_v43 }
0x2357   :  { %1998 = vrot.lane.b32.xlu1 %v1994_v21, %s2812_s7 }
0x236c   :  { %v1991_v58 = vpop.permute.xlu0 %1990 }
0x236d   :  { %v1995_v48 = vmul.f32 %v1991_v58, %v1986_v59 }
0x236f   :  { %2000 = vrot.lane.b32.xlu2 %v1995_v48, %s2812_s7 }
0x2377   :  { %2048 = vrot.lane.b32.xlu2 %v3182_v14, %s2813_s10  ;;  %v2009_v14 = vsub.f32 1.0, %v1986_v59 }
0x23c9   :  { %v2001_v60 = vpop.permute.xlu2 %2000  ;;  %v1999_v62 = vpop.permute.xlu1 %1998 }
0x23ca   :  { %v2005_v42 = vadd.f32 %v2001_v60, %v3208_v18  ;;  %v2004_v13 = vadd.f32 %v1999_v62, %v3202_v35  ;;  %v2023_v18 = vrot.slane %v3393_v5, 7  ;;  %v2178_v5 = vld [vmem:[%s3548_s2 + $0x58] sm:$0xff] }
0x23cc   :  { %2785 = vtanh.f32 %v2005_v42  ;;  %v2027_v34 = vmul.f32 %v2023_v18, %v1986_v59  ;;  %v2594_v59 = vld [vmem:[%s3548_s2 + $0x80] ss:$0 sm:$0xff] }
0x23cd   :  { %2787 = vtanh.f32 %v2004_v13 }
0x23d1   :  { %v2049_v0 = vpop.permute.xlu2 %2048 }
0x23d2   :  { %v2786_v1 = vpop.eup %2785  ;;  %2551 = vmatpush.xpose.msk.msrb.mxu0 %vm78_vm11, %v2049_v0  ;;  %2146 = vmatpush.msrb.mxu2 %v2049_v0 }
0x23d3   :  { %v2788_v2 = vpop.eup %2787  ;;  %2014 = vrot.lane.b32.xlu1 %v2786_v1, %s2813_s10 }
0x23d4   :  { %2012 = vrot.lane.b32.xlu0 %v2788_v2, %s2813_s10  ;;  %2265 = vmatpush.msra.mxu2 %v2187_v12 }
0x23d6   :  { %2207 = vmatpush.msra.mxu0 %v2182_v38  ;;  %2266 = vmatpush.msra.mxu2 %v2186_v50 }
0x23d8   :  { %2208 = vmatpush.msra.mxu0 %v2181_v39  ;;  %2267 = vmatpush.msra.mxu2 %v2185_v51 }
0x23da   :  { %2209 = vmatpush.msra.mxu0 %v2180_v40  ;;  %2268 = vmatpush.msra.mxu2 %v2184_v52 }
0x23db   :  { %2078 = vrot.lane.b32.xlu1 %v3187_v16, %s2813_s10 }
0x23dc   :  { %2210 = vmatpush.msra.mxu0 %v2179_v41 }
0x2445   :  { %v2015_v35 = vpop.permute.xlu1 %2014 }
0x2446   :  { %v2013_v4 = vpop.permute.xlu0 %2012  ;;  %v2019_v9 = vmul.f32 %v2015_v35, %v2009_v14  ;;  %v2353_v35 = vrot.slane %v2280_v53, 6 }
0x2447   :  { %v2018_v10 = vmul.f32 %v2013_v4, %v2008_v29  ;;  %v2281_v4 = vld [vmem:[%s3549_s3 + $0x40] sm:$0xff] }
0x2448   :  { %v2029_v22 = vadd.f32 %v2027_v34, %v2019_v9  ;;  %v2282_v34 = vld [vmem:[%s3549_s3 + $0x48] sm:$0x3]  ;;  %v2354_v9 = vrot.slane %v2281_v4, 6 }
0x2449   :  { %v2028_v11 = vadd.f32 %v2026_v44, %v2018_v10  ;;  %v2408_v10 = vrot.slane %v2281_v4, 4 }
0x244a   :  { %v2043_v17 = vsel %vm3552_vm5, %v3404_v61, %v2029_v22  ;;  %v2175_v61 = vld [vmem:[%s3548_s2 + $0x40] sm:$0xff]  ;;  %v2409_v22 = vrot.slane %v2282_v34, 4 }
0x244b   :  { %v2042_v30 = vsel %vm3553_vm1, %v3399_v46, %v2028_v11  ;;  %2075 = vrot.lane.b32.xlu2 %v2043_v17, %s2813_s10  ;;  %v2176_v46 = vld [vmem:[%s3548_s2 + $0x48] sm:$0xff]  ;;  %v2355_v11 = vsel %vm50_vm0, %v2353_v35, %v2354_v9 }
0x244c   :  { %2045 = vrot.lane.b32.xlu0 %v2042_v30, %s2813_s10  ;;  %v2410_v17 = vsel %vm986_vm9, %v2408_v10, %v2409_v22  ;;  %v2437_v30 = vrot.slane %v2278_v56, 6 }
0x244d   :  { %v2079_v16 = vpop.permute.xlu1 %2078 }
0x244e   :  { %2553 = vmatpush.xpose.msk.msra.mxu1 %vm78_vm11, %v2079_v16  ;;  %2170 = vmatpush.msrb.mxu3 %v2079_v16  ;;  %v2279_v16 = vld [vmem:[%s3549_s3 + $0x30] sm:$0x1] }
0x2450   :  { %2563 = vmatpush.msk.msra.mxu3 %vm992_vm12, %v2280_v53 }
0x2452   :  { %2230 = vmatpush.msrb.mxu1 %v2178_v5  ;;  %v2438_v5 = vrot.slane %v2279_v16, 6 }
0x2454   :  { %2231 = vmatpush.msrb.mxu1 %v2177_v20  ;;  %v2439_v20 = vsel %vm50_vm0, %v2437_v30, %v2438_v5  ;;  %vm3554_vm0 = vmmov %vm3553_vm1 }
0x2456   :  { %2232 = vmatpush.msrb.mxu1 %v2176_v46  ;;  %v2595_v46 = vld [vmem:[%s3549_s3 + $0x20] ss:$0 sm:$0xff] }
0x2458   :  { %2233 = vmatpush.msrb.mxu1 %v2175_v61 }
0x24a5   :  { %v2076_v63 = vpop.permute.xlu2 %2075 }
0x24a6   :  { %2554 = vmatmul.msk.f32.vlgmr.msra.gmra.mxu1 %vm78_vm11, %v2076_v63 }
0x24a7   :  { %2569 = vmatpush.msk.msra.mxu1 %vm992_vm12, %v2355_v11 }
0x24be   :  { %v2046_v3 = vpop.permute.xlu0 %2045 }
0x24bf   :  { %2552 = vmatmul.msk.f32.vlgmr.msrb.gmra.mxu0 %vm78_vm11, %v2046_v3  ;;  %2559 = vmatmul.msk.f32.vlgmr.msrb.gmra.mxu1 %vm78_vm11, %v2046_v3 }
0x24c0   :  { %2566 = vmatpush.msk.msrb.mxu0 %vm983_vm13, %v2278_v56 }
0x24c7   :  { %2560 = vmatmul.msk.f32.gmra.mxu1 %vm78_vm11, %v2076_v63 }
0x2523   :  { %v2101_v55 = vpop.f32.mrf.mxu1 }
0x2524   :  { %v2108_v23 = vsel %vm2104_vm10, %v2101_v55, -inf }
0x2525   :  { %2109 = vmax.xlane.f32.xlu1 %v2108_v23 }
0x253c   :  { %v2071_v6 = vpop.f32.mrf.mxu0  ;;  %v2235_v58 = vpop.f32.mrf.mxu1 }
0x253d   :  { %v2105_v54 = vsel %vm2104_vm10, %v2071_v6, -inf }
0x253e   :  { %2106 = vmax.xlane.f32.xlu0 %v2105_v54  ;;  %2286 = vrot.lane.b32.xlu1 %v2810_v24, %s2815_s23 }
0x2544   :  { %v2238_v0 = vpop.f32.mrf.mxu1 }
0x2552   :  { %2284 = vrot.lane.b32.xlu0 %v2809_v31, %s2815_s23 }
0x2598   :  { %v2110_v7 = vpop.xlane.xlu1 %2109 }
0x2599   :  { %v2112_v27 = vsub.f32 %v2101_v55, %v2110_v7 }
0x259b   :  { %v2115_v33 = vmul.f32 1.442695, %v2112_v27 }
0x25b0   :  { %v2287_v13 = vpop.permute.xlu1 %2286 }
0x25b1   :  { %v2107_v25 = vpop.xlane.xlu0 %2106 }
0x25b2   :  { %v2111_v26 = vsub.f32 %v2071_v6, %v2107_v25 }
0x25b4   :  { %v2113_v32 = vmul.f32 1.442695, %v2111_v26 }
0x25b6   :  { %2789 = vpow2.f32 %v2113_v32 }
0x25b7   :  { %2791 = vpow2.f32 %v2115_v33 }
0x25bc   :  { %v2790_v37 = vpop.eup %2789 }
0x25bd   :  { %v2117_v15 = vsel %vm2104_vm10, %v2790_v37, 0.0  ;;  %v2792_v8 = vpop.eup %2791 }
0x25be   :  { %2118 = vadd.xlane.f32.xlu2 %v2117_v15  ;;  %v2120_v57 = vsel %vm2104_vm10, %v2792_v8, 0.0 }
0x25c4   :  { %v2285_v60 = vpop.permute.xlu0 %2284 }
0x25c5   :  { %2570 = vmatmul.msk.f32.vlgmr.msra.gmra.mxu1 %vm2288_vm6, %v2285_v60 }
0x25c6   :  { %2121 = vadd.xlane.f32.xlu2 %v2120_v57 }
0x25cd   :  { %2571 = vmatmul.msk.f32.gmra.mxu1 %vm2288_vm6, %v2287_v13 }
0x2631   :  { %v2119_v43 = vpop.xlane.xlu2 %2118 }
0x2632   :  { %2793 = vrcp.f32 %v2119_v43 }
0x2638   :  { %v2794_v44 = vpop.eup %2793 }
0x2639   :  { %v2125_v45 = vmul.f32 %v2794_v44, %v2790_v37  ;;  %v2122_v47 = vpop.xlane.xlu2 %2121  ;;  %v2596_v44 = vld [vmem:[%s3549_s3 + $0x50] ss:$0 sm:$0xff] }
0x263a   :  { %2795 = vrcp.f32 %v2122_v47 }
0x263b   :  { %2555 = vmatmul.msk.f32.vlgmr.msrb.gmra.mxu2 %vm2104_vm10, %v2125_v45 }
0x263c   :  { %2572 = vmatpush.msk.msrb.mxu2 %vm983_vm13, %v2381_v28 }
0x2640   :  { %v2796_v49 = vpop.eup %2795 }
0x2641   :  { %v2126_v36 = vmul.f32 %v2796_v49, %v2792_v8 }
0x2642   :  { %v2375_v33 = vpop.f32.mrf.mxu1 }
0x2643   :  { %2556 = vmatmul.msk.f32.vlgmr.msrb.gmra.mxu3 %vm2104_vm10, %v2126_v36 }
0x2644   :  { %2575 = vmatpush.msk.msrb.mxu3 %vm992_vm12, %v2410_v17 }
0x264a   :  { %v2378_v36 = vpop.f32.mrf.mxu1 }
0x264b   :  { %2564 = vmatmul.msk.f32.vlgmr.msra.gmra.mxu3 %vm2288_vm6, %v2285_v60 }
0x2653   :  { %2565 = vmatmul.msk.f32.gmra.mxu3 %vm2288_vm6, %v2287_v13 }
0x265b   :  { %2576 = vmatmul.msk.f32.vlgmr.msrb.gmra.mxu3 %vm2288_vm6, %v2285_v60 }
0x2663   :  { %2577 = vmatmul.msk.f32.gmra.mxu3 %vm2288_vm6, %v2287_v13 }
0x26be   :  { %v2148_v19 = vpop.f32.mrf.mxu2 }
0x26bf   :  { %2557 = vmatmul.msk.f32.vlgmr.msra.gmra.mxu0 %vm78_vm11, %v2148_v19 }
0x26c0   :  { %2578 = vmatpush.msk.msra.mxu0 %vm983_vm13, %v2439_v20  ;;  %vm3555_vm13 = vmmov %vm3554_vm0 }
0x26c6   :  { %v2172_v21 = vpop.f32.mrf.mxu3 }
0x26c7   :  { %2558 = vmatmul.msk.f32.gmra.mxu0 %vm78_vm11, %v2172_v21 }
0x26ce   :  { %v2313_v54 = vpop.f32.mrf.mxu3 }
0x26d6   :  { %v2316_v25 = vpop.f32.mrf.mxu3 }
0x26de   :  { %v2430_v37 = vpop.f32.mrf.mxu3 }
0x26e6   :  { %v2433_v21 = vpop.f32.mrf.mxu3 }
0x273c   :  { %v2212_v48 = vpop.f32.mrf.mxu0 }
0x273d   :  { %v2236_v62 = vadd.f32 %v2235_v58, %v2212_v48 }
0x273f   :  { %v2242_v42 = vadd.f32 %v2594_v59, %v2236_v62 }
0x2741   :  { %2797 = vtanh.f32 %v2242_v42 }
0x2744   :  { %v2215_v1 = vpop.f32.mrf.mxu0 }
0x2745   :  { %v2239_v2 = vadd.f32 %v2238_v0, %v2215_v1 }
0x2747   :  { %v2798_v14 = vpop.eup %2797  ;;  %v2243_v18 = vadd.f32 %v2594_v59, %v2239_v2 }
0x2748   :  { %2561 = vmatmul.msk.f32.vlgmr.msra.gmra.mxu2 %vm78_vm11, %v2798_v14 }
0x2749   :  { %2799 = vtanh.f32 %v2243_v18 }
0x274f   :  { %v2800_v29 = vpop.eup %2799 }
0x2750   :  { %2562 = vmatmul.msk.f32.gmra.mxu2 %vm78_vm11, %v2800_v29  ;;  %vm2319_vm11 = vcmask 23552  }
0x27cb   :  { %v2270_v61 = vpop.f32.mrf.mxu2 }
0x27cc   :  { %v2271_v63 = vadd.f32 %v2595_v46, %v2270_v61 }
0x27ce   :  { %2801 = vtanh.f32 %v2271_v63 }
0x27d3   :  { %v2273_v3 = vpop.f32.mrf.mxu2 }
0x27d4   :  { %v2802_v55 = vpop.eup %2801  ;;  %v2274_v23 = vadd.f32 %v2595_v46, %v2273_v3 }
0x27d5   :  { %2567 = vmatmul.msk.f32.vlgmr.msrb.gmra.mxu0 %vm2319_vm11, %v2802_v55  ;;  %2573 = vmatmul.msk.f32.vlgmr.msrb.gmra.mxu2 %vm2319_vm11, %v2802_v55 }
0x27d6   :  { %2803 = vtanh.f32 %v2274_v23 }
0x27dc   :  { %v2804_v6 = vpop.eup %2803 }
0x27dd   :  { %2568 = vmatmul.msk.f32.gmra.mxu0 %vm2319_vm11, %v2804_v6  ;;  %2574 = vmatmul.msk.f32.gmra.mxu2 %vm2319_vm11, %v2804_v6 }
0x27e5   :  { %2579 = vmatmul.msk.f32.vlgmr.msra.gmra.mxu0 %vm2319_vm11, %v2802_v55 }
0x27ed   :  { %2580 = vmatmul.msk.f32.gmra.mxu0 %vm2319_vm11, %v2804_v6 }
0x2852   :  { %v2346_v7 = vpop.f32.mrf.mxu0 }
0x2853   :  { %v2347_v27 = vadd.f32 %v2346_v7, %v2313_v54 }
0x2855   :  { %v2467_v15 = vrot.slane %v2347_v27, 7 }
0x2857   :  { %v2471_v39 = vsel %vm978_vm2, 0.0, %v2467_v15 }
0x2858   :  { %v2401_v32 = vpop.f32.mrf.mxu2 }
0x2859   :  { %v2402_v8 = vadd.f32 %v2401_v32, %v2375_v33 }
0x285a   :  { %v2349_v26 = vpop.f32.mrf.mxu0 }
0x285b   :  { %v2350_v40 = vadd.f32 %v2349_v26, %v2316_v25  ;;  %v2473_v43 = vadd.f32 %v2471_v39, %v2402_v8 }
0x285d   :  { %v2468_v19 = vrot.slane %v2350_v40, 7 }
0x285f   :  { %v2472_v51 = vsel %vm978_vm2, 0.0, %v2468_v19 }
0x2860   :  { %v2404_v45 = vpop.f32.mrf.mxu2 }
0x2861   :  { %v2405_v31 = vadd.f32 %v2404_v45, %v2378_v36 }
0x2862   :  { %v2459_v57 = vpop.f32.mrf.mxu0 }
0x2863   :  { %v2460_v38 = vadd.f32 %v2459_v57, %v2430_v37  ;;  %v2474_v53 = vadd.f32 %v2472_v51, %v2405_v31 }
0x2865   :  { %v2477_v41 = vrot.slane %v2460_v38, 1 }
0x2867   :  { %v2481_v47 = vsel %vm3554_vm0, %v2477_v41, 0.0 }
0x2868   :  { %v2483_v49 = vadd.f32 %v2481_v47, %v2473_v43 }
0x286a   :  { %v2486_v24 = vadd.f32 %v2596_v44, %v2483_v49  ;;  %v2462_v12 = vpop.f32.mrf.mxu0 }
0x286b   :  { %v2463_v50 = vadd.f32 %v2462_v12, %v2433_v21 }
0x286c   :  { %2488 = vst.msk [vmem:[%s3550_s4] sm:$0xff] %vm2319_vm11, %v2486_v24 }
0x286d   :  { %v2478_v52 = vrot.slane %v2463_v50, 1 }
0x286f   :  { %v2482_v56 = vsel %vm3555_vm13, %v2478_v52, 0.0 }
0x2870   :  { %v2484_v28 = vadd.f32 %v2482_v56, %v2474_v53 }
0x2872   :  { %v2487_v58 = vadd.f32 %v2596_v44, %v2484_v28 }
0x2874   :  { %2489 = vst.msk [vmem:[%s3550_s4 + $0x8] sm:$0xff] %vm2319_vm11, %v2487_v58 }

</bundles_post_ra>
